<compile_context>
chip_gen: v7x
topology: tpu7x:2x2x1
jax: 0.10.0
libtpu: 0.0.40
codegen_flags: <defaults>
</compile_context>

<pallas_src>
import functools

import jax
import jax.numpy as jnp
from jax.experimental import pallas as pl
from jax.experimental.pallas import tpu as pltpu

_LANES = 128
_SUBLANES = 8
_TARGET_BLOCK_BYTES = 4 << 20   # ~4 MiB of HBM traffic per input per grid step
_SMALL_ROWS = 512               # below this, pallas_call fixed cost dominates


def _num_tensorcores() -> int:
    """2 on dual-TensorCore chips (v7x); 1 on v5e/v6e and anything unknown."""
    try:
        kind = jax.devices()[0].device_kind.lower()
    except Exception:
        return 1
    return 2 if ("v7" in kind or "7x" in kind) else 1


def _mse_kernel(x_ref, y_ref, o_ref, *, rows, block_rows, blocks_per_core):
    """Accumulate lane-wise partial sums of (x - y)^2 into the output tile."""
    c = pl.program_id(0)          # "core" (parallel) axis
    k = pl.program_id(1)          # reduction (arbitrary) axis

    @pl.when(k == 0)
    def _():
        o_ref[...] = jnp.zeros_like(o_ref)

    # Cast in-kernel so sub-32-bit inputs don't need a wrapper-side cast pass.
    d = x_ref[...].astype(jnp.float32) - y_ref[...].astype(jnp.float32)
    d2 = d * d

    gblock = c * blocks_per_core + k
    # Only the boundary block and redundant (clamped) steps pay the mask cost.
    needs_mask = (gblock + 1) * block_rows > rows

    @pl.when(needs_mask)
    def _():
        row_ids = jax.lax.broadcasted_iota(jnp.int32, (block_rows, _LANES), 0)
        masked = jnp.where(gblock * block_rows + row_ids < rows, d2, 0.0)
        o_ref[...] += jnp.sum(
            masked.reshape(block_rows // _SUBLANES, _SUBLANES, _LANES), axis=0)

    @pl.when(jnp.logical_not(needs_mask))
    def _():
        # Interior blocks: pure VPU adds, no iota/compare/select overhead.
        o_ref[...] += jnp.sum(
            d2.reshape(block_rows // _SUBLANES, _SUBLANES, _LANES), axis=0)


def l2_loss(x, y, reduction="mean"):
    """Pallas equivalent of F.mse_loss(x, y, reduction=reduction)."""
    assert x.shape == y.shape, "input/target shapes must match"
    assert reduction in ("mean", "sum", "none")

    if reduction == "none":
        # Elementwise map; XLA already emits this at the HBM roofline.
        d = x - y
        return d * d

    n = x.size

    def _fallback():
        d = x.astype(jnp.float32).reshape(-1) - y.astype(jnp.float32).reshape(-1)
        total = jnp.sum(d * d)
        return total / n if reduction == "mean" else total

    # Kernel path needs a zero-copy (rows, 128) view (n % 128 == 0); tiny
    # inputs aren't worth the pallas_call fixed cost.
    # TODO(synk): handle n % 128 != 0 fully in-kernel (manual DMA + flat
    # element mask) instead of the plain-XLA fallback for that rare case.
    if n % _LANES != 0 or (n // _LANES) <= _SMALL_ROWS:
        return _fallback()

    rows = n // _LANES
    x2 = x.reshape(rows, _LANES)   # zero-copy: contiguous reshape
    y2 = y.reshape(rows, _LANES)

    # Block sizing by *bytes*, not rows: keep ~4 MiB of HBM traffic per input
    # per grid step regardless of dtype so the per-step overhead stays <5%.
    itemsize = max(jnp.dtype(x.dtype).itemsize, jnp.dtype(y.dtype).itemsize)
    cap_rows = max(_SUBLANES, (_TARGET_BLOCK_BYTES // (_LANES * itemsize))
                   // _SUBLANES * _SUBLANES)
    block_rows = min(cap_rows, (rows // _SUBLANES) * _SUBLANES)
    nblocks = pl.cdiv(rows, block_rows)

    # 2-way parallel axis only where it helps (v7x's two TensorCores) and only
    # when there is more than one block of work.
    num_cores = max(1, min(_num_tensorcores(), nblocks))
    blocks_per_core = pl.cdiv(nblocks, num_cores)

    def in_map(c, k):
        base = c * blocks_per_core
        # Steps beyond this core's share repeat the core's *own* last valid
        # block index, so the pipeline skips the re-DMA; the kernel masks
        # their contribution to exactly zero.
        valid = jnp.maximum(jnp.minimum(blocks_per_core, nblocks - base), 1)
        blk = base + jnp.minimum(k, valid - 1)
        return (jnp.minimum(blk, nblocks - 1), 0)

    out_bytes = num_cores * _SUBLANES * _LANES * 4
    cost = pl.CostEstimate(
        flops=3 * n,
        transcendentals=0,
        bytes_accessed=n * (jnp.dtype(x.dtype).itemsize
                            + jnp.dtype(y.dtype).itemsize) + out_bytes)

    partials = pl.pallas_call(
        functools.partial(_mse_kernel, rows=rows, block_rows=block_rows,
                          blocks_per_core=blocks_per_core),
        out_shape=jax.ShapeDtypeStruct((num_cores * _SUBLANES, _LANES),
                                       jnp.float32),
        grid=(num_cores, blocks_per_core),
        in_specs=[
            pl.BlockSpec((block_rows, _LANES), in_map),
            pl.BlockSpec((block_rows, _LANES), in_map),
        ],
        out_specs=pl.BlockSpec((_SUBLANES, _LANES), lambda c, k: (c, 0)),
        compiler_params=pltpu.CompilerParams(
            dimension_semantics=("parallel", "arbitrary"),
            vmem_limit_bytes=64 << 20),
        cost_estimate=cost,
    )(x2, y2)

    # Tiny (<=16, 128) final reduce + scale done by XLA (negligible).
    total = jnp.sum(partials)
    if reduction == "mean":
        total = total / n
    return total


if __name__ == "__main__":
    key = jax.random.PRNGKey(0)
    k1, k2, k3, k4, k5, k6 = jax.random.split(key, 6)

    # Primary module-shaped NCHW input (small -> XLA short-circuit path).
    x = jax.random.normal(k1, (2, 4, 16, 16), dtype=jnp.float32)
    t = jax.random.normal(k2, (2, 4, 16, 16), dtype=jnp.float32)
    loss = jax.block_until_ready(l2_loss(x, t, reduction="mean"))
    ref = jnp.mean((x - t) ** 2)
    assert jnp.allclose(loss, ref, rtol=1e-5, atol=1e-6), (loss, ref)

    # Large aligned input: exercises the Pallas streaming-reduction kernel.
    xb = jax.random.normal(k3, (8, 16, 64, 64), dtype=jnp.float32)
    tb = jax.random.normal(k4, (8, 16, 64, 64), dtype=jnp.float32)
    loss_b = jax.block_until_ready(l2_loss(xb, tb, reduction="mean"))
    ref_b = jnp.mean((xb - tb) ** 2)
    assert jnp.allclose(loss_b, ref_b, rtol=1e-5, atol=1e-6), (loss_b, ref_b)

    # rows not a multiple of block_rows (or 8): exercises the masked boundary
    # block and the per-core redundant-step clamp.
    xm = jax.random.normal(k5, (3, 5, 67, 128), dtype=jnp.float32)
    tm = jax.random.normal(k6, (3, 5, 67, 128), dtype=jnp.float32)
    loss_m = jax.block_until_ready(l2_loss(xm, tm, reduction="sum"))
    ref_m = jnp.sum((xm - tm) ** 2)
    assert jnp.allclose(loss_m, ref_m, rtol=1e-5, atol=1e-4), (loss_m, ref_m)

    # bf16 inputs: in-kernel f32 upcast + dtype-scaled block sizing.
    xh = jax.random.normal(k3, (8, 16, 64, 64), dtype=jnp.bfloat16)
    th = jax.random.normal(k4, (8, 16, 64, 64), dtype=jnp.bfloat16)
    loss_h = jax.block_until_ready(l2_loss(xh, th, reduction="mean"))
    ref_h = jnp.mean((xh.astype(jnp.float32) - th.astype(jnp.float32)) ** 2)
    assert jnp.allclose(loss_h, ref_h, rtol=1e-4, atol=1e-5), (loss_h, ref_h)

    # Unaligned element count (n % 128 != 0): rare path -> XLA fallback.
    xo = jax.random.normal(k1, (2, 3, 7, 9), dtype=jnp.float32)
    to = jax.random.normal(k2, (2, 3, 7, 9), dtype=jnp.float32)
    loss_o = jax.block_until_ready(l2_loss(xo, to, reduction="sum"))
    ref_o = jnp.sum((xo - to) ** 2)
    assert jnp.allclose(loss_o, ref_o, rtol=1e-5, atol=1e-5), (loss_o, ref_o)

    print("KERNEL_OK")
</pallas_src>

<mosaic_0001>
module attributes {stable_mosaic.version = 11 : i64} {
  func.func @_mse_kernel(%arg0: i32, %arg1: i32, %arg2: memref<4096x128xf32, #tpu.memory_space<vmem>>, %arg3: memref<4096x128xf32, #tpu.memory_space<vmem>>, %arg4: memref<8x128xf32, #tpu.memory_space<vmem>>) attributes {dimension_semantics = [#tpu.dimension_semantics<parallel>, #tpu.dimension_semantics<arbitrary>], iteration_bounds = array<i64: 1, 1>, scalar_prefetch = 0 : i64, scratch_operands = 0 : i64, tpu.core_type = #tpu.core_type<tc>, window_params = [{transform_indices = @transform_0, window_bounds = array<i64: 4096, 128>}, {transform_indices = @transform_1, window_bounds = array<i64: 4096, 128>}, {transform_indices = @transform_2, window_bounds = array<i64: 8, 128>}]} {
    %c0_i32 = arith.constant 0 : i32
    %0 = arith.cmpi eq, %arg1, %c0_i32 : i32
    %1 = arith.extui %0 : i1 to i32
    %c0_i32_0 = arith.constant 0 : i32
    %2 = arith.cmpi ne, %1, %c0_i32_0 : i32
    scf.if %2 {
      %cst = arith.constant 0.000000e+00 : f32
      %17 = vector.broadcast %cst : f32 to vector<8x128xf32>
      %c0_8 = arith.constant 0 : index
      %c0_9 = arith.constant 0 : index
      %18 = vector.load %arg4[%c0_8, %c0_9] : memref<8x128xf32, #tpu.memory_space<vmem>>, vector<8x128xf32>
      tpu.vector_store %arg4[%c0_8, %c0_9], %17 {strides = array<i32>} : memref<8x128xf32, #tpu.memory_space<vmem>>, vector<8x128xf32>,
    } else {
    }
    %c0 = arith.constant 0 : index
    %c0_1 = arith.constant 0 : index
    %3 = vector.load %arg2[%c0, %c0_1] : memref<4096x128xf32, #tpu.memory_space<vmem>>, vector<4096x128xf32>
    %c0_2 = arith.constant 0 : index
    %c0_3 = arith.constant 0 : index
    %4 = vector.load %arg3[%c0_2, %c0_3] : memref<4096x128xf32, #tpu.memory_space<vmem>>, vector<4096x128xf32>
    %5 = arith.subf %3, %4 : vector<4096x128xf32>
    %6 = arith.mulf %5, %5 : vector<4096x128xf32>
    %c1_i32 = arith.constant 1 : i32
    %7 = arith.muli %arg0, %c1_i32 : i32
    %8 = arith.addi %7, %arg1 : i32
    %c1_i32_4 = arith.constant 1 : i32
    %9 = arith.addi %8, %c1_i32_4 : i32
    %c4096_i32 = arith.constant 4096 : i32
    %10 = arith.muli %9, %c4096_i32 : i32
    %c4096_i32_5 = arith.constant 4096 : i32
    %11 = arith.cmpi sgt, %10, %c4096_i32_5 : i32
    %12 = arith.extui %11 : i1 to i32
    %c0_i32_6 = arith.constant 0 : i32
    %13 = arith.cmpi ne, %12, %c0_i32_6 : i32
    scf.if %13 {
      %17 = tpu.iota {dimensions = array<i32: 0>} : vector<4096x128xi32>
      %c4096_i32_8 = arith.constant 4096 : i32
      %18 = arith.muli %8, %c4096_i32_8 : i32
      %19 = vector.broadcast %18 : i32 to vector<4096x128xi32>
      %20 = arith.addi %19, %17 : vector<4096x128xi32>
      %c4096_i32_9 = arith.constant 4096 : i32
      %21 = vector.broadcast %c4096_i32_9 : i32 to vector<4096x128xi32>
      %22 = arith.cmpi slt, %20, %21 : vector<4096x128xi32>
      %cst = arith.constant 0.000000e+00 : f32
      %23 = vector.broadcast %cst : f32 to vector<4096x128xf32>
      %24 = arith.select %22, %6, %23 : vector<4096x128xi1>, vector<4096x128xf32>
      %c0_10 = arith.constant 0 : index
      %c0_11 = arith.constant 0 : index
      %25 = vector.load %arg4[%c0_10, %c0_11] : memref<8x128xf32, #tpu.memory_space<vmem>>, vector<8x128xf32>
      %26 = vector.shape_cast %24 : vector<4096x128xf32> to vector<512x8x128xf32>
      %cst_12 = arith.constant dense<0.000000e+00> : vector<8x128xf32>
      %27 = vector.multi_reduction <add>, %26, %cst_12 [0] : vector<512x8x128xf32> to vector<8x128xf32>
      %28 = arith.addf %25, %27 : vector<8x128xf32>
      %c0_13 = arith.constant 0 : index
      %c0_14 = arith.constant 0 : index
      %29 = vector.load %arg4[%c0_13, %c0_14] : memref<8x128xf32, #tpu.memory_space<vmem>>, vector<8x128xf32>
      tpu.vector_store %arg4[%c0_13, %c0_14], %28 {strides = array<i32>} : memref<8x128xf32, #tpu.memory_space<vmem>>, vector<8x128xf32>,
    } else {
    }
    %true = arith.constant true
    %14 = arith.xori %11, %true : i1
    %15 = arith.extui %14 : i1 to i32
    %c0_i32_7 = arith.constant 0 : i32
    %16 = arith.cmpi ne, %15, %c0_i32_7 : i32
    scf.if %16 {
      %c0_8 = arith.constant 0 : index
      %c0_9 = arith.constant 0 : index
      %17 = vector.load %arg4[%c0_8, %c0_9] : memref<8x128xf32, #tpu.memory_space<vmem>>, vector<8x128xf32>
      %18 = vector.shape_cast %6 : vector<4096x128xf32> to vector<512x8x128xf32>
      %cst = arith.constant dense<0.000000e+00> : vector<8x128xf32>
      %19 = vector.multi_reduction <add>, %18, %cst [0] : vector<512x8x128xf32> to vector<8x128xf32>
      %20 = arith.addf %17, %19 : vector<8x128xf32>
      %c0_10 = arith.constant 0 : index
      %c0_11 = arith.constant 0 : index
      %21 = vector.load %arg4[%c0_10, %c0_11] : memref<8x128xf32, #tpu.memory_space<vmem>>, vector<8x128xf32>
      tpu.vector_store %arg4[%c0_10, %c0_11], %20 {strides = array<i32>} : memref<8x128xf32, #tpu.memory_space<vmem>>, vector<8x128xf32>,
    } else {
    }
    return
  }
  func.func @transform_0(%arg0: i32, %arg1: i32) -> (i32, i32) {
    %c1_i32 = arith.constant 1 : i32
    %0 = arith.muli %arg0, %c1_i32 : i32
    %c1_i32_0 = arith.constant 1 : i32
    %1 = arith.subi %c1_i32_0, %0 : i32
    %c1_i32_1 = arith.constant 1 : i32
    %2 = arith.minsi %c1_i32_1, %1 : i32
    %c1_i32_2 = arith.constant 1 : i32
    %3 = arith.maxsi %2, %c1_i32_2 : i32
    %c1_i32_3 = arith.constant 1 : i32
    %4 = arith.subi %3, %c1_i32_3 : i32
    %5 = arith.minsi %arg1, %4 : i32
    %6 = arith.addi %0, %5 : i32
    %c0_i32 = arith.constant 0 : i32
    %7 = arith.minsi %6, %c0_i32 : i32
    %c0_i32_4 = arith.constant 0 : i32
    %c0_i32_5 = arith.constant 0 : i32
    return %7, %c0_i32_4 : i32, i32
  }
  func.func @transform_1(%arg0: i32, %arg1: i32) -> (i32, i32) {
    %c1_i32 = arith.constant 1 : i32
    %0 = arith.muli %arg0, %c1_i32 : i32
    %c1_i32_0 = arith.constant 1 : i32
    %1 = arith.subi %c1_i32_0, %0 : i32
    %c1_i32_1 = arith.constant 1 : i32
    %2 = arith.minsi %c1_i32_1, %1 : i32
    %c1_i32_2 = arith.constant 1 : i32
    %3 = arith.maxsi %2, %c1_i32_2 : i32
    %c1_i32_3 = arith.constant 1 : i32
    %4 = arith.subi %3, %c1_i32_3 : i32
    %5 = arith.minsi %arg1, %4 : i32
    %6 = arith.addi %0, %5 : i32
    %c0_i32 = arith.constant 0 : i32
    %7 = arith.minsi %6, %c0_i32 : i32
    %c0_i32_4 = arith.constant 0 : i32
    %c0_i32_5 = arith.constant 0 : i32
    return %7, %c0_i32_4 : i32, i32
  }
  func.func @transform_2(%arg0: i32, %arg1: i32) -> (i32, i32) {
    %c0_i32 = arith.constant 0 : i32
    %c0_i32_0 = arith.constant 0 : i32
    return %arg0, %c0_i32 : i32, i32
  }
}

</mosaic_0001>

<bundles_post_ra>
// kernel: tpu_custom_call.1
= control target key start
LH: loop header
LB: loop body
LE: loop exit
PB: predicated region body
PF: predicated region fallthrough
CT: control target
= control target key end

     0   :  { %7 = vsyncpa [#allocation3], 0  ;;  %s5389_s0 = inlined_call_operand.hbm [shape: f32[4096,128], index: 0, kind: input, shape index: {}]   ;;  %s5390_s1 = inlined_call_operand.hbm [shape: f32[4096,128], index: 1, kind: input, shape index: {}]   ;;  %s5391_s2 = inlined_call_operand.hbm [shape: f32[8,128], index: 2, kind: output, shape index: {}]  }
   0x1   :  { %8 = vsyncpa [#allocation6], 0 }
   0x2   :  { %9 = vsyncpa [#allocation4], 0  ;;  %s5333_s9 = smov [#allocation2]   ;;  %s5261_s13 = scalar_lea.hbm %s5389_s0, 65536 }
   0x3   :  { %s29_s10 = sshll.u32 %s5333_s9, 4  ;;  %p5262_p0 = scmp.ne.s32.totalorder %s5389_s0, %s5261_s13  ;;  %s30_s10 = int_to_ptr.vmem [resolvable:$true] %s29_s10 }
   0x4   :  { %p5265_p1 = scmp.lt.u32.totalorder %s5261_s13, %s5389_s0 }
   0x6   :  { %p5267_p2 = pnand %p5265_p1, %p5262_p0 }
   0x8   :  { %5270 = shalt.err (!%p5267_p2)
}
   0x9   :  { %s5271_s18 = scalar_lea.vmem %s30_s10, 65536  ;;  %p5276_p4 = scmp.lt.s32.totalorder %s30_s10, %s30_s10 }
   0xa   :  { %p5272_p3 = scmp.ne.s32.totalorder %s30_s10, %s5271_s18  ;;  %p5277_p5 = scmp.lt.s32.totalorder %s5271_s18, %s5271_s18 }
   0xc   :  { %p5278_p6 = por %p5277_p5, %p5276_p4 }
   0xe   :  { %p5279_p7 = pnand %p5278_p6, %p5272_p3 }
  0x10   :  { %5282 = shalt.err (!%p5279_p7)
}
  0x11   :  { %s5334_s19 = smov 128   ;;  %s5335_s20 = smov 8  }
  0x12   :  { %35 = dma.hbm_to_vmem [thread:$0]  %s5389_s0, 65536, %s30_s10, [#allocation3], %s5334_s19, %s5334_s19, %s5335_s20  }
  0x13   :  { %s5336_s23 = smov [#allocation5]   ;;  %s5283_s27 = scalar_lea.hbm %s5390_s1, 65536 }
  0x14   :  { %s55_s24 = sshll.u32 %s5336_s23, 4  ;;  %p5284_p8 = scmp.ne.s32.totalorder %s5390_s1, %s5283_s27  ;;  %s56_s24 = int_to_ptr.vmem [resolvable:$true] %s55_s24 }
  0x15   :  { %p5287_p9 = scmp.lt.u32.totalorder %s5283_s27, %s5390_s1 }
  0x17   :  { %p5289_p10 = pnand %p5287_p9, %p5284_p8 }
  0x19   :  { %5292 = shalt.err (!%p5289_p10)
}
  0x1a   :  { %s5293_s4 = scalar_lea.vmem %s56_s24, 65536  ;;  %p5298_p12 = scmp.lt.s32.totalorder %s56_s24, %s56_s24 }
  0x1b   :  { %p5294_p11 = scmp.ne.s32.totalorder %s56_s24, %s5293_s4  ;;  %p5299_p13 = scmp.lt.s32.totalorder %s5293_s4, %s5293_s4 }
  0x1d   :  { %p5300_p0 = por %p5299_p13, %p5298_p12 }
  0x1f   :  { %p5301_p1 = pnand %p5300_p0, %p5294_p11 }
  0x21   :  { %5304 = shalt.err (!%p5301_p1)
}
  0x22   :  { %61 = dma.hbm_to_vmem [thread:$0]  %s5390_s1, 65536, %s56_s24, [#allocation6], %s5334_s19, %s5334_s19, %s5335_s20  }
  0x23   :  { %5327 = dma.done.wait [#allocation3], 65536  }
  0x24   :  { %5328 = vsyncadd [#allocation3], 4294901760 }
  0x25   :  { %5329 = dma.done.wait [#allocation6], 65536  }
  0x26   :  { %5330 = vsyncadd [#allocation6], 4294901760  ;;  %v97_v0 = vld [vmem:[#allocation2] sm:$0xff]  ;;  %v98_v1 = vld [vmem:[#allocation2 + $0x8] sm:$0xff]  ;;  %s5337_s1 = smov [#allocation7]  }
  0x27   :  { %v609_v2 = vld [vmem:[#allocation5] sm:$0xff]  ;;  %v610_v3 = vld [vmem:[#allocation5 + $0x8] sm:$0xff]  ;;  %v99_v4 = vld [vmem:[#allocation2 + $0x10] sm:$0xff]  ;;  %s5241_s6 = sshll.u32 %s5337_s1, 4  ;;  %s5242_s6 = int_to_ptr.vmem [resolvable:$true] %s5241_s6 }
  0x28   :  { %v611_v5 = vld [vmem:[#allocation5 + $0x10] sm:$0xff]  ;;  %v1121_v6 = vsub.f32 %v97_v0, %v609_v2  ;;  %v1122_v7 = vsub.f32 %v98_v1, %v610_v3  ;;  %v100_v8 = vld [vmem:[#allocation2 + $0x18] sm:$0xff]  ;;  %v101_v11 = vld [vmem:[#allocation2 + $0x20] sm:$0xff]  ;;  %s5305_s7 = scalar_lea.vmem %s5242_s6, 128  ;;  %p5310_p3 = scmp.lt.s32.totalorder %s5242_s6, %s5242_s6 }
  0x29   :  { %v612_v9 = vld [vmem:[#allocation5 + $0x18] sm:$0xff]  ;;  %v1123_v10 = vsub.f32 %v99_v4, %v611_v5  ;;  %v613_v12 = vld [vmem:[#allocation5 + $0x20] sm:$0xff]  ;;  %v102_v16 = vld [vmem:[#allocation2 + $0x28] sm:$0xff]  ;;  %p5306_p2 = scmp.ne.s32.totalorder %s5242_s6, %s5305_s7  ;;  %p5311_p4 = scmp.lt.s32.totalorder %s5305_s7, %s5305_s7 }
  0x2a   :  { %v1124_v13 = vsub.f32 %v100_v8, %v612_v9  ;;  %v1633_v14 = vmul.f32 %v1121_v6, %v1121_v6  ;;  %v1634_v15 = vmul.f32 %v1122_v7, %v1122_v7  ;;  %v614_v17 = vld [vmem:[#allocation5 + $0x28] sm:$0xff]  ;;  %v1125_v18 = vsub.f32 %v101_v11, %v613_v12  ;;  %v103_v20 = vld [vmem:[#allocation2 + $0x30] sm:$0xff]  ;;  %v104_v25 = vld [vmem:[#allocation2 + $0x38] sm:$0xff] }
  0x2b   :  { %v1635_v19 = vmul.f32 %v1123_v10, %v1123_v10  ;;  %v615_v21 = vld [vmem:[#allocation5 + $0x30] sm:$0xff]  ;;  %v1126_v22 = vsub.f32 %v102_v16, %v614_v17  ;;  %v616_v26 = vld [vmem:[#allocation5 + $0x38] sm:$0xff]  ;;  %v105_v30 = vld [vmem:[#allocation2 + $0x40] sm:$0xff]  ;;  %p5312_p5 = por %p5311_p4, %p5310_p3 }
  0x2c   :  { %v1636_v23 = vmul.f32 %v1124_v13, %v1124_v13  ;;  %v4722_v24 = vadd.f32 %v1634_v15, %v1633_v14  ;;  %v1127_v27 = vsub.f32 %v103_v20, %v615_v21  ;;  %v1637_v28 = vmul.f32 %v1125_v18, %v1125_v18  ;;  %v617_v31 = vld [vmem:[#allocation5 + $0x40] sm:$0xff]  ;;  %v106_v35 = vld [vmem:[#allocation2 + $0x48] sm:$0xff]  ;;  %v107_v40 = vld [vmem:[#allocation2 + $0x50] sm:$0xff] }
  0x2d   :  { %v1128_v32 = vsub.f32 %v104_v25, %v616_v26  ;;  %v1638_v33 = vmul.f32 %v1126_v22, %v1126_v22  ;;  %v618_v36 = vld [vmem:[#allocation5 + $0x48] sm:$0xff]  ;;  %v1129_v37 = vsub.f32 %v105_v30, %v617_v31  ;;  %v619_v41 = vld [vmem:[#allocation5 + $0x50] sm:$0xff]  ;;  %v108_v45 = vld [vmem:[#allocation2 + $0x58] sm:$0xff]  ;;  %p5313_p6 = pnand %p5312_p5, %p5306_p2 }
  0x2e   :  { %v4723_v29 = vadd.f32 %v4722_v24, %v1635_v19  ;;  %v1639_v38 = vmul.f32 %v1127_v27, %v1127_v27  ;;  %v1130_v42 = vsub.f32 %v106_v35, %v618_v36  ;;  %v620_v46 = vld [vmem:[#allocation5 + $0x58] sm:$0xff]  ;;  %v1131_v47 = vsub.f32 %v107_v40, %v619_v41  ;;  %v109_v50 = vld [vmem:[#allocation2 + $0x60] sm:$0xff]  ;;  %v110_v55 = vld [vmem:[#allocation2 + $0x68] sm:$0xff] }
  0x2f   :  { %v1640_v43 = vmul.f32 %v1128_v32, %v1128_v32  ;;  %v1641_v48 = vmul.f32 %v1129_v37, %v1129_v37  ;;  %v621_v51 = vld [vmem:[#allocation5 + $0x60] sm:$0xff]  ;;  %v1132_v52 = vsub.f32 %v108_v45, %v620_v46  ;;  %v622_v56 = vld [vmem:[#allocation5 + $0x68] sm:$0xff]  ;;  %v111_v60 = vld [vmem:[#allocation2 + $0x70] sm:$0xff] }
  0x30   :  { %v4724_v34 = vadd.f32 %v4723_v29, %v1636_v23  ;;  %v1642_v53 = vmul.f32 %v1130_v42, %v1130_v42  ;;  %v1133_v57 = vsub.f32 %v109_v50, %v621_v51  ;;  %v1643_v58 = vmul.f32 %v1131_v47, %v1131_v47  ;;  %v623_v61 = vld [vmem:[#allocation5 + $0x70] sm:$0xff]  ;;  %v112_v1 = vld [vmem:[#allocation2 + $0x78] sm:$0xff]  ;;  %v113_v6 = vld [vmem:[#allocation2 + $0x80] sm:$0xff] }
  0x31   :  { %v1134_v62 = vsub.f32 %v110_v55, %v622_v56  ;;  %v1644_v63 = vmul.f32 %v1132_v52, %v1132_v52  ;;  %v624_v2 = vld [vmem:[#allocation5 + $0x78] sm:$0xff]  ;;  %v1135_v3 = vsub.f32 %v111_v60, %v623_v61  ;;  %v625_v7 = vld [vmem:[#allocation5 + $0x80] sm:$0xff]  ;;  %v114_v11 = vld [vmem:[#allocation2 + $0x88] sm:$0xff] }
  0x32   :  { %v4725_v39 = vadd.f32 %v4724_v34, %v1637_v28  ;;  %v1645_v4 = vmul.f32 %v1133_v57, %v1133_v57  ;;  %v1136_v8 = vsub.f32 %v112_v1, %v624_v2  ;;  %v626_v12 = vld [vmem:[#allocation5 + $0x88] sm:$0xff]  ;;  %v1137_v13 = vsub.f32 %v113_v6, %v625_v7  ;;  %v115_v16 = vld [vmem:[#allocation2 + $0x90] sm:$0xff]  ;;  %v116_v21 = vld [vmem:[#allocation2 + $0x98] sm:$0xff] }
  0x33   :  { %v1646_v9 = vmul.f32 %v1134_v62, %v1134_v62  ;;  %v1647_v14 = vmul.f32 %v1135_v3, %v1135_v3  ;;  %v627_v17 = vld [vmem:[#allocation5 + $0x90] sm:$0xff]  ;;  %v1138_v18 = vsub.f32 %v114_v11, %v626_v12  ;;  %v628_v22 = vld [vmem:[#allocation5 + $0x98] sm:$0xff]  ;;  %v117_v26 = vld [vmem:[#allocation2 + $0xa0] sm:$0xff] }
  0x34   :  { %v4726_v44 = vadd.f32 %v4725_v39, %v1638_v33  ;;  %v1648_v19 = vmul.f32 %v1136_v8, %v1136_v8  ;;  %v1139_v23 = vsub.f32 %v115_v16, %v627_v17  ;;  %v1649_v24 = vmul.f32 %v1137_v13, %v1137_v13  ;;  %v629_v27 = vld [vmem:[#allocation5 + $0xa0] sm:$0xff]  ;;  %v118_v31 = vld [vmem:[#allocation2 + $0xa8] sm:$0xff]  ;;  %v119_v36 = vld [vmem:[#allocation2 + $0xb0] sm:$0xff] }
  0x35   :  { %v1140_v28 = vsub.f32 %v116_v21, %v628_v22  ;;  %v1650_v29 = vmul.f32 %v1138_v18, %v1138_v18  ;;  %v630_v32 = vld [vmem:[#allocation5 + $0xa8] sm:$0xff]  ;;  %v1141_v33 = vsub.f32 %v117_v26, %v629_v27  ;;  %v631_v37 = vld [vmem:[#allocation5 + $0xb0] sm:$0xff]  ;;  %v120_v41 = vld [vmem:[#allocation2 + $0xb8] sm:$0xff] }
  0x36   :  { %v4727_v49 = vadd.f32 %v4726_v44, %v1639_v38  ;;  %v1651_v34 = vmul.f32 %v1139_v23, %v1139_v23  ;;  %v1142_v38 = vsub.f32 %v118_v31, %v630_v32  ;;  %v632_v42 = vld [vmem:[#allocation5 + $0xb8] sm:$0xff]  ;;  %v121_v46 = vld [vmem:[#allocation2 + $0xc0] sm:$0xff]  ;;  %v122_v51 = vld [vmem:[#allocation2 + $0xc8] sm:$0xff] }
  0x37   :  { %v1652_v39 = vmul.f32 %v1140_v28, %v1140_v28  ;;  %v1653_v44 = vmul.f32 %v1141_v33, %v1141_v33  ;;  %v633_v47 = vld [vmem:[#allocation5 + $0xc0] sm:$0xff]  ;;  %v634_v52 = vld [vmem:[#allocation5 + $0xc8] sm:$0xff]  ;;  %v123_v56 = vld [vmem:[#allocation2 + $0xd0] sm:$0xff] }
  0x38   :  { %v4728_v54 = vadd.f32 %v4727_v49, %v1640_v43  ;;  %v1143_v43 = vsub.f32 %v119_v36, %v631_v37  ;;  %v1654_v49 = vmul.f32 %v1142_v38, %v1142_v38  ;;  %v635_v57 = vld [vmem:[#allocation5 + $0xd0] sm:$0xff]  ;;  %v124_v61 = vld [vmem:[#allocation2 + $0xd8] sm:$0xff]  ;;  %v125_v2 = vld [vmem:[#allocation2 + $0xe0] sm:$0xff] }
  0x39   :  { %v636_v62 = vld [vmem:[#allocation5 + $0xd8] sm:$0xff]  ;;  %v637_v3 = vld [vmem:[#allocation5 + $0xe0] sm:$0xff]  ;;  %v126_v7 = vld [vmem:[#allocation2 + $0xe8] sm:$0xff] }
  0x3a   :  { %v4729_v59 = vadd.f32 %v4728_v54, %v1641_v48  ;;  %v1144_v48 = vsub.f32 %v120_v41, %v632_v42  ;;  %v1655_v54 = vmul.f32 %v1143_v43, %v1143_v43  ;;  %v638_v8 = vld [vmem:[#allocation5 + $0xe8] sm:$0xff]  ;;  %v127_v12 = vld [vmem:[#allocation2 + $0xf0] sm:$0xff]  ;;  %v128_v17 = vld [vmem:[#allocation2 + $0xf8] sm:$0xff] }
  0x3b   :  { %v639_v13 = vld [vmem:[#allocation5 + $0xf0] sm:$0xff]  ;;  %v640_v18 = vld [vmem:[#allocation5 + $0xf8] sm:$0xff]  ;;  %v129_v22 = vld [vmem:[#allocation2 + $0x100] sm:$0xff] }
  0x3c   :  { %v4730_v0 = vadd.f32 %v4729_v59, %v1642_v53  ;;  %v1145_v53 = vsub.f32 %v121_v46, %v633_v47  ;;  %v1656_v59 = vmul.f32 %v1144_v48, %v1144_v48  ;;  %v641_v23 = vld [vmem:[#allocation5 + $0x100] sm:$0xff]  ;;  %v130_v27 = vld [vmem:[#allocation2 + $0x108] sm:$0xff]  ;;  %v131_v32 = vld [vmem:[#allocation2 + $0x110] sm:$0xff] }
  0x3d   :  { %v642_v28 = vld [vmem:[#allocation5 + $0x108] sm:$0xff]  ;;  %v643_v33 = vld [vmem:[#allocation5 + $0x110] sm:$0xff]  ;;  %v132_v37 = vld [vmem:[#allocation2 + $0x118] sm:$0xff] }
  0x3e   :  { %v4731_v5 = vadd.f32 %v4730_v0, %v1643_v58  ;;  %v1146_v58 = vsub.f32 %v122_v51, %v634_v52  ;;  %v1657_v0 = vmul.f32 %v1145_v53, %v1145_v53  ;;  %v644_v38 = vld [vmem:[#allocation5 + $0x118] sm:$0xff]  ;;  %v133_v42 = vld [vmem:[#allocation2 + $0x120] sm:$0xff]  ;;  %v134_v47 = vld [vmem:[#allocation2 + $0x128] sm:$0xff] }
  0x3f   :  { %v645_v43 = vld [vmem:[#allocation5 + $0x120] sm:$0xff]  ;;  %v646_v48 = vld [vmem:[#allocation5 + $0x128] sm:$0xff]  ;;  %v135_v52 = vld [vmem:[#allocation2 + $0x130] sm:$0xff] }
  0x40   :  { %v4732_v10 = vadd.f32 %v4731_v5, %v1644_v63  ;;  %v1147_v63 = vsub.f32 %v123_v56, %v635_v57  ;;  %v1658_v5 = vmul.f32 %v1146_v58, %v1146_v58  ;;  %v647_v53 = vld [vmem:[#allocation5 + $0x130] sm:$0xff]  ;;  %v136_v57 = vld [vmem:[#allocation2 + $0x138] sm:$0xff] }
  0x41   :  { %v648_v58 = vld [vmem:[#allocation5 + $0x138] sm:$0xff] }
  0x42   :  { %v4733_v15 = vadd.f32 %v4732_v10, %v1645_v4  ;;  %v1148_v4 = vsub.f32 %v124_v61, %v636_v62  ;;  %v1659_v10 = vmul.f32 %v1147_v63, %v1147_v63  ;;  %v137_v62 = vld [vmem:[#allocation2 + $0x140] sm:$0xff] }
  0x43   :  { %v649_v63 = vld [vmem:[#allocation5 + $0x140] sm:$0xff] }
  0x44   :  { %v4734_v20 = vadd.f32 %v4733_v15, %v1646_v9  ;;  %v1149_v9 = vsub.f32 %v125_v2, %v637_v3  ;;  %v1660_v15 = vmul.f32 %v1148_v4, %v1148_v4  ;;  %v138_v3 = vld [vmem:[#allocation2 + $0x148] sm:$0xff] }
  0x45   :  { %v650_v4 = vld [vmem:[#allocation5 + $0x148] sm:$0xff] }
  0x46   :  { %v4735_v25 = vadd.f32 %v4734_v20, %v1647_v14  ;;  %v1150_v14 = vsub.f32 %v126_v7, %v638_v8  ;;  %v1661_v20 = vmul.f32 %v1149_v9, %v1149_v9  ;;  %v139_v8 = vld [vmem:[#allocation2 + $0x150] sm:$0xff] }
  0x47   :  { %v651_v9 = vld [vmem:[#allocation5 + $0x150] sm:$0xff] }
  0x48   :  { %v4736_v30 = vadd.f32 %v4735_v25, %v1648_v19  ;;  %v1151_v19 = vsub.f32 %v127_v12, %v639_v13  ;;  %v1662_v25 = vmul.f32 %v1150_v14, %v1150_v14  ;;  %v140_v13 = vld [vmem:[#allocation2 + $0x158] sm:$0xff] }
  0x49   :  { %v652_v14 = vld [vmem:[#allocation5 + $0x158] sm:$0xff] }
  0x4a   :  { %v4737_v35 = vadd.f32 %v4736_v30, %v1649_v24  ;;  %v1152_v24 = vsub.f32 %v128_v17, %v640_v18  ;;  %v1663_v30 = vmul.f32 %v1151_v19, %v1151_v19  ;;  %v141_v18 = vld [vmem:[#allocation2 + $0x160] sm:$0xff] }
  0x4b   :  { %v653_v19 = vld [vmem:[#allocation5 + $0x160] sm:$0xff] }
  0x4c   :  { %v4738_v40 = vadd.f32 %v4737_v35, %v1650_v29  ;;  %v1153_v29 = vsub.f32 %v129_v22, %v641_v23  ;;  %v1664_v35 = vmul.f32 %v1152_v24, %v1152_v24  ;;  %v142_v23 = vld [vmem:[#allocation2 + $0x168] sm:$0xff] }
  0x4d   :  { %v654_v24 = vld [vmem:[#allocation5 + $0x168] sm:$0xff] }
  0x4e   :  { %v4739_v45 = vadd.f32 %v4738_v40, %v1651_v34  ;;  %v1154_v34 = vsub.f32 %v130_v27, %v642_v28  ;;  %v1665_v40 = vmul.f32 %v1153_v29, %v1153_v29  ;;  %v143_v28 = vld [vmem:[#allocation2 + $0x170] sm:$0xff] }
  0x4f   :  { %v655_v29 = vld [vmem:[#allocation5 + $0x170] sm:$0xff] }
  0x50   :  { %v4740_v50 = vadd.f32 %v4739_v45, %v1652_v39  ;;  %v1155_v39 = vsub.f32 %v131_v32, %v643_v33  ;;  %v1666_v45 = vmul.f32 %v1154_v34, %v1154_v34  ;;  %v144_v33 = vld [vmem:[#allocation2 + $0x178] sm:$0xff] }
  0x51   :  { %v656_v34 = vld [vmem:[#allocation5 + $0x178] sm:$0xff] }
  0x52   :  { %v4741_v55 = vadd.f32 %v4740_v50, %v1653_v44  ;;  %v1156_v44 = vsub.f32 %v132_v37, %v644_v38  ;;  %v1667_v50 = vmul.f32 %v1155_v39, %v1155_v39  ;;  %v145_v38 = vld [vmem:[#allocation2 + $0x180] sm:$0xff] }
  0x53   :  { %v657_v39 = vld [vmem:[#allocation5 + $0x180] sm:$0xff] }
  0x54   :  { %v4742_v60 = vadd.f32 %v4741_v55, %v1654_v49  ;;  %v1157_v49 = vsub.f32 %v133_v42, %v645_v43  ;;  %v1668_v55 = vmul.f32 %v1156_v44, %v1156_v44  ;;  %v146_v43 = vld [vmem:[#allocation2 + $0x188] sm:$0xff] }
  0x55   :  { %v658_v44 = vld [vmem:[#allocation5 + $0x188] sm:$0xff] }
  0x56   :  { %v4743_v1 = vadd.f32 %v4742_v60, %v1655_v54  ;;  %v1158_v54 = vsub.f32 %v134_v47, %v646_v48  ;;  %v1669_v60 = vmul.f32 %v1157_v49, %v1157_v49  ;;  %v147_v48 = vld [vmem:[#allocation2 + $0x190] sm:$0xff] }
  0x57   :  { %v659_v49 = vld [vmem:[#allocation5 + $0x190] sm:$0xff] }
  0x58   :  { %v4744_v6 = vadd.f32 %v4743_v1, %v1656_v59  ;;  %v1159_v59 = vsub.f32 %v135_v52, %v647_v53  ;;  %v1670_v1 = vmul.f32 %v1158_v54, %v1158_v54  ;;  %v148_v53 = vld [vmem:[#allocation2 + $0x198] sm:$0xff] }
  0x59   :  { %v660_v54 = vld [vmem:[#allocation5 + $0x198] sm:$0xff] }
  0x5a   :  { %v4745_v11 = vadd.f32 %v4744_v6, %v1657_v0  ;;  %v1160_v0 = vsub.f32 %v136_v57, %v648_v58  ;;  %v1671_v6 = vmul.f32 %v1159_v59, %v1159_v59  ;;  %v149_v58 = vld [vmem:[#allocation2 + $0x1a0] sm:$0xff] }
  0x5b   :  { %v661_v59 = vld [vmem:[#allocation5 + $0x1a0] sm:$0xff] }
  0x5c   :  { %v4746_v16 = vadd.f32 %v4745_v11, %v1658_v5  ;;  %v1161_v5 = vsub.f32 %v137_v62, %v649_v63  ;;  %v1672_v11 = vmul.f32 %v1160_v0, %v1160_v0  ;;  %v150_v63 = vld [vmem:[#allocation2 + $0x1a8] sm:$0xff] }
  0x5d   :  { %v662_v0 = vld [vmem:[#allocation5 + $0x1a8] sm:$0xff] }
  0x5e   :  { %v4747_v21 = vadd.f32 %v4746_v16, %v1659_v10  ;;  %v1162_v10 = vsub.f32 %v138_v3, %v650_v4  ;;  %v1673_v16 = vmul.f32 %v1161_v5, %v1161_v5  ;;  %v151_v4 = vld [vmem:[#allocation2 + $0x1b0] sm:$0xff] }
  0x5f   :  { %v663_v5 = vld [vmem:[#allocation5 + $0x1b0] sm:$0xff] }
  0x60   :  { %v4748_v26 = vadd.f32 %v4747_v21, %v1660_v15  ;;  %v1163_v15 = vsub.f32 %v139_v8, %v651_v9  ;;  %v1674_v21 = vmul.f32 %v1162_v10, %v1162_v10  ;;  %v152_v9 = vld [vmem:[#allocation2 + $0x1b8] sm:$0xff] }
  0x61   :  { %v664_v10 = vld [vmem:[#allocation5 + $0x1b8] sm:$0xff] }
  0x62   :  { %v4749_v31 = vadd.f32 %v4748_v26, %v1661_v20  ;;  %v1164_v20 = vsub.f32 %v140_v13, %v652_v14  ;;  %v1675_v26 = vmul.f32 %v1163_v15, %v1163_v15  ;;  %v153_v14 = vld [vmem:[#allocation2 + $0x1c0] sm:$0xff] }
  0x63   :  { %v665_v15 = vld [vmem:[#allocation5 + $0x1c0] sm:$0xff] }
  0x64   :  { %v4750_v36 = vadd.f32 %v4749_v31, %v1662_v25  ;;  %v1165_v25 = vsub.f32 %v141_v18, %v653_v19  ;;  %v1676_v31 = vmul.f32 %v1164_v20, %v1164_v20  ;;  %v154_v19 = vld [vmem:[#allocation2 + $0x1c8] sm:$0xff] }
  0x65   :  { %v666_v20 = vld [vmem:[#allocation5 + $0x1c8] sm:$0xff] }
  0x66   :  { %v4751_v41 = vadd.f32 %v4750_v36, %v1663_v30  ;;  %v1166_v30 = vsub.f32 %v142_v23, %v654_v24  ;;  %v1677_v36 = vmul.f32 %v1165_v25, %v1165_v25  ;;  %v155_v24 = vld [vmem:[#allocation2 + $0x1d0] sm:$0xff] }
  0x67   :  { %v667_v25 = vld [vmem:[#allocation5 + $0x1d0] sm:$0xff] }
  0x68   :  { %v4752_v46 = vadd.f32 %v4751_v41, %v1664_v35  ;;  %v1167_v35 = vsub.f32 %v143_v28, %v655_v29  ;;  %v1678_v41 = vmul.f32 %v1166_v30, %v1166_v30  ;;  %v156_v29 = vld [vmem:[#allocation2 + $0x1d8] sm:$0xff] }
  0x69   :  { %v668_v30 = vld [vmem:[#allocation5 + $0x1d8] sm:$0xff] }
  0x6a   :  { %v4753_v51 = vadd.f32 %v4752_v46, %v1665_v40  ;;  %v1168_v40 = vsub.f32 %v144_v33, %v656_v34  ;;  %v1679_v46 = vmul.f32 %v1167_v35, %v1167_v35  ;;  %v157_v34 = vld [vmem:[#allocation2 + $0x1e0] sm:$0xff] }
  0x6b   :  { %v669_v35 = vld [vmem:[#allocation5 + $0x1e0] sm:$0xff] }
  0x6c   :  { %v4754_v56 = vadd.f32 %v4753_v51, %v1666_v45  ;;  %v1169_v45 = vsub.f32 %v145_v38, %v657_v39  ;;  %v1680_v51 = vmul.f32 %v1168_v40, %v1168_v40  ;;  %v158_v39 = vld [vmem:[#allocation2 + $0x1e8] sm:$0xff] }
  0x6d   :  { %v670_v40 = vld [vmem:[#allocation5 + $0x1e8] sm:$0xff] }
  0x6e   :  { %v4755_v61 = vadd.f32 %v4754_v56, %v1667_v50  ;;  %v1170_v50 = vsub.f32 %v146_v43, %v658_v44  ;;  %v1681_v56 = vmul.f32 %v1169_v45, %v1169_v45  ;;  %v159_v44 = vld [vmem:[#allocation2 + $0x1f0] sm:$0xff] }
  0x6f   :  { %v671_v45 = vld [vmem:[#allocation5 + $0x1f0] sm:$0xff] }
  0x70   :  { %v4756_v2 = vadd.f32 %v4755_v61, %v1668_v55  ;;  %v1171_v55 = vsub.f32 %v147_v48, %v659_v49  ;;  %v1682_v61 = vmul.f32 %v1170_v50, %v1170_v50  ;;  %v160_v49 = vld [vmem:[#allocation2 + $0x1f8] sm:$0xff] }
  0x71   :  { %v672_v50 = vld [vmem:[#allocation5 + $0x1f8] sm:$0xff] }
  0x72   :  { %v4757_v7 = vadd.f32 %v4756_v2, %v1669_v60  ;;  %v1172_v60 = vsub.f32 %v148_v53, %v660_v54  ;;  %v1683_v2 = vmul.f32 %v1171_v55, %v1171_v55  ;;  %v161_v54 = vld [vmem:[#allocation2 + $0x200] sm:$0xff] }
  0x73   :  { %v673_v55 = vld [vmem:[#allocation5 + $0x200] sm:$0xff] }
  0x74   :  { %v4758_v12 = vadd.f32 %v4757_v7, %v1670_v1  ;;  %v1173_v1 = vsub.f32 %v149_v58, %v661_v59  ;;  %v1684_v7 = vmul.f32 %v1172_v60, %v1172_v60  ;;  %v162_v59 = vld [vmem:[#allocation2 + $0x208] sm:$0xff] }
  0x75   :  { %v674_v60 = vld [vmem:[#allocation5 + $0x208] sm:$0xff] }
  0x76   :  { %v4759_v17 = vadd.f32 %v4758_v12, %v1671_v6  ;;  %v1174_v6 = vsub.f32 %v150_v63, %v662_v0  ;;  %v1685_v12 = vmul.f32 %v1173_v1, %v1173_v1  ;;  %v163_v0 = vld [vmem:[#allocation2 + $0x210] sm:$0xff] }
  0x77   :  { %v675_v1 = vld [vmem:[#allocation5 + $0x210] sm:$0xff] }
  0x78   :  { %v4760_v22 = vadd.f32 %v4759_v17, %v1672_v11  ;;  %v1175_v11 = vsub.f32 %v151_v4, %v663_v5  ;;  %v1686_v17 = vmul.f32 %v1174_v6, %v1174_v6  ;;  %v164_v5 = vld [vmem:[#allocation2 + $0x218] sm:$0xff] }
  0x79   :  { %v676_v6 = vld [vmem:[#allocation5 + $0x218] sm:$0xff] }
  0x7a   :  { %v4761_v27 = vadd.f32 %v4760_v22, %v1673_v16  ;;  %v1176_v16 = vsub.f32 %v152_v9, %v664_v10  ;;  %v1687_v22 = vmul.f32 %v1175_v11, %v1175_v11  ;;  %v165_v10 = vld [vmem:[#allocation2 + $0x220] sm:$0xff] }
  0x7b   :  { %v677_v11 = vld [vmem:[#allocation5 + $0x220] sm:$0xff] }
  0x7c   :  { %v4762_v32 = vadd.f32 %v4761_v27, %v1674_v21  ;;  %v1177_v21 = vsub.f32 %v153_v14, %v665_v15  ;;  %v1688_v27 = vmul.f32 %v1176_v16, %v1176_v16  ;;  %v166_v15 = vld [vmem:[#allocation2 + $0x228] sm:$0xff] }
  0x7d   :  { %v678_v16 = vld [vmem:[#allocation5 + $0x228] sm:$0xff] }
  0x7e   :  { %v4763_v37 = vadd.f32 %v4762_v32, %v1675_v26  ;;  %v1178_v26 = vsub.f32 %v154_v19, %v666_v20  ;;  %v1689_v32 = vmul.f32 %v1177_v21, %v1177_v21  ;;  %v167_v20 = vld [vmem:[#allocation2 + $0x230] sm:$0xff] }
  0x7f   :  { %v679_v21 = vld [vmem:[#allocation5 + $0x230] sm:$0xff] }
  0x80   :  { %v4764_v42 = vadd.f32 %v4763_v37, %v1676_v31  ;;  %v1179_v31 = vsub.f32 %v155_v24, %v667_v25  ;;  %v1690_v37 = vmul.f32 %v1178_v26, %v1178_v26  ;;  %v168_v25 = vld [vmem:[#allocation2 + $0x238] sm:$0xff] }
  0x81   :  { %v680_v26 = vld [vmem:[#allocation5 + $0x238] sm:$0xff] }
  0x82   :  { %v4765_v47 = vadd.f32 %v4764_v42, %v1677_v36  ;;  %v1180_v36 = vsub.f32 %v156_v29, %v668_v30  ;;  %v1691_v42 = vmul.f32 %v1179_v31, %v1179_v31  ;;  %v169_v30 = vld [vmem:[#allocation2 + $0x240] sm:$0xff] }
  0x83   :  { %v681_v31 = vld [vmem:[#allocation5 + $0x240] sm:$0xff] }
  0x84   :  { %v4766_v52 = vadd.f32 %v4765_v47, %v1678_v41  ;;  %v1181_v41 = vsub.f32 %v157_v34, %v669_v35  ;;  %v1692_v47 = vmul.f32 %v1180_v36, %v1180_v36  ;;  %v170_v35 = vld [vmem:[#allocation2 + $0x248] sm:$0xff] }
  0x85   :  { %v682_v36 = vld [vmem:[#allocation5 + $0x248] sm:$0xff] }
  0x86   :  { %v4767_v57 = vadd.f32 %v4766_v52, %v1679_v46  ;;  %v1182_v46 = vsub.f32 %v158_v39, %v670_v40  ;;  %v1693_v52 = vmul.f32 %v1181_v41, %v1181_v41  ;;  %v171_v40 = vld [vmem:[#allocation2 + $0x250] sm:$0xff] }
  0x87   :  { %v683_v41 = vld [vmem:[#allocation5 + $0x250] sm:$0xff] }
  0x88   :  { %v4768_v62 = vadd.f32 %v4767_v57, %v1680_v51  ;;  %v1183_v51 = vsub.f32 %v159_v44, %v671_v45  ;;  %v1694_v57 = vmul.f32 %v1182_v46, %v1182_v46  ;;  %v172_v45 = vld [vmem:[#allocation2 + $0x258] sm:$0xff] }
  0x89   :  { %v684_v46 = vld [vmem:[#allocation5 + $0x258] sm:$0xff] }
  0x8a   :  { %v4769_v3 = vadd.f32 %v4768_v62, %v1681_v56  ;;  %v1184_v56 = vsub.f32 %v160_v49, %v672_v50  ;;  %v1695_v62 = vmul.f32 %v1183_v51, %v1183_v51  ;;  %v173_v50 = vld [vmem:[#allocation2 + $0x260] sm:$0xff] }
  0x8b   :  { %v685_v51 = vld [vmem:[#allocation5 + $0x260] sm:$0xff] }
  0x8c   :  { %v4770_v8 = vadd.f32 %v4769_v3, %v1682_v61  ;;  %v1185_v61 = vsub.f32 %v161_v54, %v673_v55  ;;  %v1696_v3 = vmul.f32 %v1184_v56, %v1184_v56  ;;  %v174_v55 = vld [vmem:[#allocation2 + $0x268] sm:$0xff] }
  0x8d   :  { %v686_v56 = vld [vmem:[#allocation5 + $0x268] sm:$0xff] }
  0x8e   :  { %v4771_v13 = vadd.f32 %v4770_v8, %v1683_v2  ;;  %v1186_v2 = vsub.f32 %v162_v59, %v674_v60  ;;  %v1697_v8 = vmul.f32 %v1185_v61, %v1185_v61  ;;  %v175_v60 = vld [vmem:[#allocation2 + $0x270] sm:$0xff] }
  0x8f   :  { %v687_v61 = vld [vmem:[#allocation5 + $0x270] sm:$0xff] }
  0x90   :  { %v4772_v18 = vadd.f32 %v4771_v13, %v1684_v7  ;;  %v1187_v7 = vsub.f32 %v163_v0, %v675_v1  ;;  %v1698_v13 = vmul.f32 %v1186_v2, %v1186_v2  ;;  %v176_v1 = vld [vmem:[#allocation2 + $0x278] sm:$0xff] }
  0x91   :  { %v688_v2 = vld [vmem:[#allocation5 + $0x278] sm:$0xff] }
  0x92   :  { %v4773_v23 = vadd.f32 %v4772_v18, %v1685_v12  ;;  %v1188_v12 = vsub.f32 %v164_v5, %v676_v6  ;;  %v1699_v18 = vmul.f32 %v1187_v7, %v1187_v7  ;;  %v177_v6 = vld [vmem:[#allocation2 + $0x280] sm:$0xff] }
  0x93   :  { %v689_v7 = vld [vmem:[#allocation5 + $0x280] sm:$0xff] }
  0x94   :  { %v4774_v28 = vadd.f32 %v4773_v23, %v1686_v17  ;;  %v1189_v17 = vsub.f32 %v165_v10, %v677_v11  ;;  %v1700_v23 = vmul.f32 %v1188_v12, %v1188_v12  ;;  %v178_v11 = vld [vmem:[#allocation2 + $0x288] sm:$0xff] }
  0x95   :  { %v690_v12 = vld [vmem:[#allocation5 + $0x288] sm:$0xff] }
  0x96   :  { %v4775_v33 = vadd.f32 %v4774_v28, %v1687_v22  ;;  %v1190_v22 = vsub.f32 %v166_v15, %v678_v16  ;;  %v1701_v28 = vmul.f32 %v1189_v17, %v1189_v17  ;;  %v179_v16 = vld [vmem:[#allocation2 + $0x290] sm:$0xff] }
  0x97   :  { %v691_v17 = vld [vmem:[#allocation5 + $0x290] sm:$0xff] }
  0x98   :  { %v4776_v38 = vadd.f32 %v4775_v33, %v1688_v27  ;;  %v1191_v27 = vsub.f32 %v167_v20, %v679_v21  ;;  %v1702_v33 = vmul.f32 %v1190_v22, %v1190_v22  ;;  %v180_v21 = vld [vmem:[#allocation2 + $0x298] sm:$0xff] }
  0x99   :  { %v692_v22 = vld [vmem:[#allocation5 + $0x298] sm:$0xff] }
  0x9a   :  { %v4777_v43 = vadd.f32 %v4776_v38, %v1689_v32  ;;  %v1192_v32 = vsub.f32 %v168_v25, %v680_v26  ;;  %v1703_v38 = vmul.f32 %v1191_v27, %v1191_v27  ;;  %v181_v26 = vld [vmem:[#allocation2 + $0x2a0] sm:$0xff] }
  0x9b   :  { %v693_v27 = vld [vmem:[#allocation5 + $0x2a0] sm:$0xff] }
  0x9c   :  { %v4778_v48 = vadd.f32 %v4777_v43, %v1690_v37  ;;  %v1193_v37 = vsub.f32 %v169_v30, %v681_v31  ;;  %v1704_v43 = vmul.f32 %v1192_v32, %v1192_v32  ;;  %v182_v31 = vld [vmem:[#allocation2 + $0x2a8] sm:$0xff] }
  0x9d   :  { %v694_v32 = vld [vmem:[#allocation5 + $0x2a8] sm:$0xff] }
  0x9e   :  { %v4779_v53 = vadd.f32 %v4778_v48, %v1691_v42  ;;  %v1194_v42 = vsub.f32 %v170_v35, %v682_v36  ;;  %v1705_v48 = vmul.f32 %v1193_v37, %v1193_v37  ;;  %v183_v36 = vld [vmem:[#allocation2 + $0x2b0] sm:$0xff] }
  0x9f   :  { %v695_v37 = vld [vmem:[#allocation5 + $0x2b0] sm:$0xff] }
  0xa0   :  { %v4780_v58 = vadd.f32 %v4779_v53, %v1692_v47  ;;  %v1195_v47 = vsub.f32 %v171_v40, %v683_v41  ;;  %v1706_v53 = vmul.f32 %v1194_v42, %v1194_v42  ;;  %v184_v41 = vld [vmem:[#allocation2 + $0x2b8] sm:$0xff] }
  0xa1   :  { %v696_v42 = vld [vmem:[#allocation5 + $0x2b8] sm:$0xff] }
  0xa2   :  { %v4781_v63 = vadd.f32 %v4780_v58, %v1693_v52  ;;  %v1196_v52 = vsub.f32 %v172_v45, %v684_v46  ;;  %v1707_v58 = vmul.f32 %v1195_v47, %v1195_v47  ;;  %v185_v46 = vld [vmem:[#allocation2 + $0x2c0] sm:$0xff] }
  0xa3   :  { %v697_v47 = vld [vmem:[#allocation5 + $0x2c0] sm:$0xff] }
  0xa4   :  { %v4782_v4 = vadd.f32 %v4781_v63, %v1694_v57  ;;  %v1197_v57 = vsub.f32 %v173_v50, %v685_v51  ;;  %v1708_v63 = vmul.f32 %v1196_v52, %v1196_v52  ;;  %v186_v51 = vld [vmem:[#allocation2 + $0x2c8] sm:$0xff] }
  0xa5   :  { %v698_v52 = vld [vmem:[#allocation5 + $0x2c8] sm:$0xff] }
  0xa6   :  { %v4783_v9 = vadd.f32 %v4782_v4, %v1695_v62  ;;  %v1198_v62 = vsub.f32 %v174_v55, %v686_v56  ;;  %v1709_v4 = vmul.f32 %v1197_v57, %v1197_v57  ;;  %v187_v56 = vld [vmem:[#allocation2 + $0x2d0] sm:$0xff] }
  0xa7   :  { %v699_v57 = vld [vmem:[#allocation5 + $0x2d0] sm:$0xff] }
  0xa8   :  { %v4784_v14 = vadd.f32 %v4783_v9, %v1696_v3  ;;  %v1199_v3 = vsub.f32 %v175_v60, %v687_v61  ;;  %v1710_v9 = vmul.f32 %v1198_v62, %v1198_v62  ;;  %v188_v61 = vld [vmem:[#allocation2 + $0x2d8] sm:$0xff] }
  0xa9   :  { %v700_v62 = vld [vmem:[#allocation5 + $0x2d8] sm:$0xff] }
  0xaa   :  { %v4785_v19 = vadd.f32 %v4784_v14, %v1697_v8  ;;  %v1200_v8 = vsub.f32 %v176_v1, %v688_v2  ;;  %v1711_v14 = vmul.f32 %v1199_v3, %v1199_v3  ;;  %v189_v2 = vld [vmem:[#allocation2 + $0x2e0] sm:$0xff] }
  0xab   :  { %v701_v3 = vld [vmem:[#allocation5 + $0x2e0] sm:$0xff] }
  0xac   :  { %v4786_v24 = vadd.f32 %v4785_v19, %v1698_v13  ;;  %v1201_v13 = vsub.f32 %v177_v6, %v689_v7  ;;  %v1712_v19 = vmul.f32 %v1200_v8, %v1200_v8  ;;  %v190_v7 = vld [vmem:[#allocation2 + $0x2e8] sm:$0xff] }
  0xad   :  { %v702_v8 = vld [vmem:[#allocation5 + $0x2e8] sm:$0xff] }
  0xae   :  { %v4787_v29 = vadd.f32 %v4786_v24, %v1699_v18  ;;  %v1202_v18 = vsub.f32 %v178_v11, %v690_v12  ;;  %v1713_v24 = vmul.f32 %v1201_v13, %v1201_v13  ;;  %v191_v12 = vld [vmem:[#allocation2 + $0x2f0] sm:$0xff] }
  0xaf   :  { %v703_v13 = vld [vmem:[#allocation5 + $0x2f0] sm:$0xff] }
  0xb0   :  { %v4788_v34 = vadd.f32 %v4787_v29, %v1700_v23  ;;  %v1203_v23 = vsub.f32 %v179_v16, %v691_v17  ;;  %v1714_v29 = vmul.f32 %v1202_v18, %v1202_v18  ;;  %v192_v17 = vld [vmem:[#allocation2 + $0x2f8] sm:$0xff] }
  0xb1   :  { %v704_v18 = vld [vmem:[#allocation5 + $0x2f8] sm:$0xff] }
  0xb2   :  { %v4789_v39 = vadd.f32 %v4788_v34, %v1701_v28  ;;  %v1204_v28 = vsub.f32 %v180_v21, %v692_v22  ;;  %v1715_v34 = vmul.f32 %v1203_v23, %v1203_v23  ;;  %v193_v22 = vld [vmem:[#allocation2 + $0x300] sm:$0xff] }
  0xb3   :  { %v705_v23 = vld [vmem:[#allocation5 + $0x300] sm:$0xff] }
  0xb4   :  { %v4790_v44 = vadd.f32 %v4789_v39, %v1702_v33  ;;  %v1205_v33 = vsub.f32 %v181_v26, %v693_v27  ;;  %v1716_v39 = vmul.f32 %v1204_v28, %v1204_v28  ;;  %v194_v27 = vld [vmem:[#allocation2 + $0x308] sm:$0xff] }
  0xb5   :  { %v706_v28 = vld [vmem:[#allocation5 + $0x308] sm:$0xff] }
  0xb6   :  { %v4791_v49 = vadd.f32 %v4790_v44, %v1703_v38  ;;  %v1206_v38 = vsub.f32 %v182_v31, %v694_v32  ;;  %v1717_v44 = vmul.f32 %v1205_v33, %v1205_v33  ;;  %v195_v32 = vld [vmem:[#allocation2 + $0x310] sm:$0xff] }
  0xb7   :  { %v707_v33 = vld [vmem:[#allocation5 + $0x310] sm:$0xff] }
  0xb8   :  { %v4792_v54 = vadd.f32 %v4791_v49, %v1704_v43  ;;  %v1207_v43 = vsub.f32 %v183_v36, %v695_v37  ;;  %v1718_v49 = vmul.f32 %v1206_v38, %v1206_v38  ;;  %v196_v37 = vld [vmem:[#allocation2 + $0x318] sm:$0xff] }
  0xb9   :  { %v708_v38 = vld [vmem:[#allocation5 + $0x318] sm:$0xff] }
  0xba   :  { %v4793_v59 = vadd.f32 %v4792_v54, %v1705_v48  ;;  %v1208_v48 = vsub.f32 %v184_v41, %v696_v42  ;;  %v1719_v54 = vmul.f32 %v1207_v43, %v1207_v43  ;;  %v197_v42 = vld [vmem:[#allocation2 + $0x320] sm:$0xff] }
  0xbb   :  { %v709_v43 = vld [vmem:[#allocation5 + $0x320] sm:$0xff] }
  0xbc   :  { %v4794_v0 = vadd.f32 %v4793_v59, %v1706_v53  ;;  %v1209_v53 = vsub.f32 %v185_v46, %v697_v47  ;;  %v1720_v59 = vmul.f32 %v1208_v48, %v1208_v48  ;;  %v198_v47 = vld [vmem:[#allocation2 + $0x328] sm:$0xff] }
  0xbd   :  { %v710_v48 = vld [vmem:[#allocation5 + $0x328] sm:$0xff] }
  0xbe   :  { %v4795_v5 = vadd.f32 %v4794_v0, %v1707_v58  ;;  %v1210_v58 = vsub.f32 %v186_v51, %v698_v52  ;;  %v1721_v0 = vmul.f32 %v1209_v53, %v1209_v53  ;;  %v199_v52 = vld [vmem:[#allocation2 + $0x330] sm:$0xff] }
  0xbf   :  { %v711_v53 = vld [vmem:[#allocation5 + $0x330] sm:$0xff] }
  0xc0   :  { %v4796_v10 = vadd.f32 %v4795_v5, %v1708_v63  ;;  %v1211_v63 = vsub.f32 %v187_v56, %v699_v57  ;;  %v1722_v5 = vmul.f32 %v1210_v58, %v1210_v58  ;;  %v200_v57 = vld [vmem:[#allocation2 + $0x338] sm:$0xff] }
  0xc1   :  { %v712_v58 = vld [vmem:[#allocation5 + $0x338] sm:$0xff] }
  0xc2   :  { %v4797_v15 = vadd.f32 %v4796_v10, %v1709_v4  ;;  %v1212_v4 = vsub.f32 %v188_v61, %v700_v62  ;;  %v1723_v10 = vmul.f32 %v1211_v63, %v1211_v63  ;;  %v201_v62 = vld [vmem:[#allocation2 + $0x340] sm:$0xff] }
  0xc3   :  { %v713_v63 = vld [vmem:[#allocation5 + $0x340] sm:$0xff] }
  0xc4   :  { %v4798_v20 = vadd.f32 %v4797_v15, %v1710_v9  ;;  %v1213_v9 = vsub.f32 %v189_v2, %v701_v3  ;;  %v1724_v15 = vmul.f32 %v1212_v4, %v1212_v4  ;;  %v202_v3 = vld [vmem:[#allocation2 + $0x348] sm:$0xff] }
  0xc5   :  { %v714_v4 = vld [vmem:[#allocation5 + $0x348] sm:$0xff] }
  0xc6   :  { %v4799_v25 = vadd.f32 %v4798_v20, %v1711_v14  ;;  %v1214_v14 = vsub.f32 %v190_v7, %v702_v8  ;;  %v1725_v20 = vmul.f32 %v1213_v9, %v1213_v9  ;;  %v203_v8 = vld [vmem:[#allocation2 + $0x350] sm:$0xff] }
  0xc7   :  { %v715_v9 = vld [vmem:[#allocation5 + $0x350] sm:$0xff] }
  0xc8   :  { %v4800_v30 = vadd.f32 %v4799_v25, %v1712_v19  ;;  %v1215_v19 = vsub.f32 %v191_v12, %v703_v13  ;;  %v1726_v25 = vmul.f32 %v1214_v14, %v1214_v14  ;;  %v204_v13 = vld [vmem:[#allocation2 + $0x358] sm:$0xff] }
  0xc9   :  { %v716_v14 = vld [vmem:[#allocation5 + $0x358] sm:$0xff] }
  0xca   :  { %v4801_v35 = vadd.f32 %v4800_v30, %v1713_v24  ;;  %v1216_v24 = vsub.f32 %v192_v17, %v704_v18  ;;  %v1727_v30 = vmul.f32 %v1215_v19, %v1215_v19  ;;  %v205_v18 = vld [vmem:[#allocation2 + $0x360] sm:$0xff] }
  0xcb   :  { %v717_v19 = vld [vmem:[#allocation5 + $0x360] sm:$0xff] }
  0xcc   :  { %v4802_v40 = vadd.f32 %v4801_v35, %v1714_v29  ;;  %v1217_v29 = vsub.f32 %v193_v22, %v705_v23  ;;  %v1728_v35 = vmul.f32 %v1216_v24, %v1216_v24  ;;  %v206_v23 = vld [vmem:[#allocation2 + $0x368] sm:$0xff] }
  0xcd   :  { %v718_v24 = vld [vmem:[#allocation5 + $0x368] sm:$0xff] }
  0xce   :  { %v4803_v45 = vadd.f32 %v4802_v40, %v1715_v34  ;;  %v1218_v34 = vsub.f32 %v194_v27, %v706_v28  ;;  %v1729_v40 = vmul.f32 %v1217_v29, %v1217_v29  ;;  %v207_v28 = vld [vmem:[#allocation2 + $0x370] sm:$0xff] }
  0xcf   :  { %v719_v29 = vld [vmem:[#allocation5 + $0x370] sm:$0xff] }
  0xd0   :  { %v4804_v50 = vadd.f32 %v4803_v45, %v1716_v39  ;;  %v1219_v39 = vsub.f32 %v195_v32, %v707_v33  ;;  %v1730_v45 = vmul.f32 %v1218_v34, %v1218_v34  ;;  %v208_v33 = vld [vmem:[#allocation2 + $0x378] sm:$0xff] }
  0xd1   :  { %v720_v34 = vld [vmem:[#allocation5 + $0x378] sm:$0xff] }
  0xd2   :  { %v4805_v55 = vadd.f32 %v4804_v50, %v1717_v44  ;;  %v1220_v44 = vsub.f32 %v196_v37, %v708_v38  ;;  %v1731_v50 = vmul.f32 %v1219_v39, %v1219_v39  ;;  %v209_v38 = vld [vmem:[#allocation2 + $0x380] sm:$0xff] }
  0xd3   :  { %v721_v39 = vld [vmem:[#allocation5 + $0x380] sm:$0xff] }
  0xd4   :  { %v4806_v60 = vadd.f32 %v4805_v55, %v1718_v49  ;;  %v1221_v49 = vsub.f32 %v197_v42, %v709_v43  ;;  %v1732_v55 = vmul.f32 %v1220_v44, %v1220_v44  ;;  %v210_v43 = vld [vmem:[#allocation2 + $0x388] sm:$0xff] }
  0xd5   :  { %v722_v44 = vld [vmem:[#allocation5 + $0x388] sm:$0xff] }
  0xd6   :  { %v4807_v1 = vadd.f32 %v4806_v60, %v1719_v54  ;;  %v1222_v54 = vsub.f32 %v198_v47, %v710_v48  ;;  %v1733_v60 = vmul.f32 %v1221_v49, %v1221_v49  ;;  %v211_v48 = vld [vmem:[#allocation2 + $0x390] sm:$0xff] }
  0xd7   :  { %v723_v49 = vld [vmem:[#allocation5 + $0x390] sm:$0xff] }
  0xd8   :  { %v4808_v6 = vadd.f32 %v4807_v1, %v1720_v59  ;;  %v1223_v59 = vsub.f32 %v199_v52, %v711_v53  ;;  %v1734_v1 = vmul.f32 %v1222_v54, %v1222_v54  ;;  %v212_v53 = vld [vmem:[#allocation2 + $0x398] sm:$0xff] }
  0xd9   :  { %v724_v54 = vld [vmem:[#allocation5 + $0x398] sm:$0xff] }
  0xda   :  { %v4809_v11 = vadd.f32 %v4808_v6, %v1721_v0  ;;  %v1224_v0 = vsub.f32 %v200_v57, %v712_v58  ;;  %v1735_v6 = vmul.f32 %v1223_v59, %v1223_v59  ;;  %v213_v58 = vld [vmem:[#allocation2 + $0x3a0] sm:$0xff] }
  0xdb   :  { %v725_v59 = vld [vmem:[#allocation5 + $0x3a0] sm:$0xff] }
  0xdc   :  { %v4810_v16 = vadd.f32 %v4809_v11, %v1722_v5  ;;  %v1225_v5 = vsub.f32 %v201_v62, %v713_v63  ;;  %v1736_v11 = vmul.f32 %v1224_v0, %v1224_v0  ;;  %v214_v63 = vld [vmem:[#allocation2 + $0x3a8] sm:$0xff] }
  0xdd   :  { %v726_v0 = vld [vmem:[#allocation5 + $0x3a8] sm:$0xff] }
  0xde   :  { %v4811_v21 = vadd.f32 %v4810_v16, %v1723_v10  ;;  %v1226_v10 = vsub.f32 %v202_v3, %v714_v4  ;;  %v1737_v16 = vmul.f32 %v1225_v5, %v1225_v5  ;;  %v215_v4 = vld [vmem:[#allocation2 + $0x3b0] sm:$0xff] }
  0xdf   :  { %v727_v5 = vld [vmem:[#allocation5 + $0x3b0] sm:$0xff] }
  0xe0   :  { %v4812_v26 = vadd.f32 %v4811_v21, %v1724_v15  ;;  %v1227_v15 = vsub.f32 %v203_v8, %v715_v9  ;;  %v1738_v21 = vmul.f32 %v1226_v10, %v1226_v10  ;;  %v216_v9 = vld [vmem:[#allocation2 + $0x3b8] sm:$0xff] }
  0xe1   :  { %v728_v10 = vld [vmem:[#allocation5 + $0x3b8] sm:$0xff] }
  0xe2   :  { %v4813_v31 = vadd.f32 %v4812_v26, %v1725_v20  ;;  %v1228_v20 = vsub.f32 %v204_v13, %v716_v14  ;;  %v1739_v26 = vmul.f32 %v1227_v15, %v1227_v15  ;;  %v217_v14 = vld [vmem:[#allocation2 + $0x3c0] sm:$0xff] }
  0xe3   :  { %v729_v15 = vld [vmem:[#allocation5 + $0x3c0] sm:$0xff] }
  0xe4   :  { %v4814_v36 = vadd.f32 %v4813_v31, %v1726_v25  ;;  %v1229_v25 = vsub.f32 %v205_v18, %v717_v19  ;;  %v1740_v31 = vmul.f32 %v1228_v20, %v1228_v20  ;;  %v218_v19 = vld [vmem:[#allocation2 + $0x3c8] sm:$0xff] }
  0xe5   :  { %v730_v20 = vld [vmem:[#allocation5 + $0x3c8] sm:$0xff] }
  0xe6   :  { %v4815_v41 = vadd.f32 %v4814_v36, %v1727_v30  ;;  %v1230_v30 = vsub.f32 %v206_v23, %v718_v24  ;;  %v1741_v36 = vmul.f32 %v1229_v25, %v1229_v25  ;;  %v219_v24 = vld [vmem:[#allocation2 + $0x3d0] sm:$0xff] }
  0xe7   :  { %v731_v25 = vld [vmem:[#allocation5 + $0x3d0] sm:$0xff] }
  0xe8   :  { %v4816_v46 = vadd.f32 %v4815_v41, %v1728_v35  ;;  %v1231_v35 = vsub.f32 %v207_v28, %v719_v29  ;;  %v1742_v41 = vmul.f32 %v1230_v30, %v1230_v30  ;;  %v220_v29 = vld [vmem:[#allocation2 + $0x3d8] sm:$0xff] }
  0xe9   :  { %v732_v30 = vld [vmem:[#allocation5 + $0x3d8] sm:$0xff] }
  0xea   :  { %v4817_v51 = vadd.f32 %v4816_v46, %v1729_v40  ;;  %v1232_v40 = vsub.f32 %v208_v33, %v720_v34  ;;  %v1743_v46 = vmul.f32 %v1231_v35, %v1231_v35  ;;  %v221_v34 = vld [vmem:[#allocation2 + $0x3e0] sm:$0xff] }
  0xeb   :  { %v733_v35 = vld [vmem:[#allocation5 + $0x3e0] sm:$0xff] }
  0xec   :  { %v4818_v56 = vadd.f32 %v4817_v51, %v1730_v45  ;;  %v1233_v45 = vsub.f32 %v209_v38, %v721_v39  ;;  %v1744_v51 = vmul.f32 %v1232_v40, %v1232_v40  ;;  %v222_v39 = vld [vmem:[#allocation2 + $0x3e8] sm:$0xff] }
  0xed   :  { %v734_v40 = vld [vmem:[#allocation5 + $0x3e8] sm:$0xff] }
  0xee   :  { %v4819_v61 = vadd.f32 %v4818_v56, %v1731_v50  ;;  %v1234_v50 = vsub.f32 %v210_v43, %v722_v44  ;;  %v1745_v56 = vmul.f32 %v1233_v45, %v1233_v45  ;;  %v223_v44 = vld [vmem:[#allocation2 + $0x3f0] sm:$0xff] }
  0xef   :  { %v735_v45 = vld [vmem:[#allocation5 + $0x3f0] sm:$0xff] }
  0xf0   :  { %v4820_v2 = vadd.f32 %v4819_v61, %v1732_v55  ;;  %v1235_v55 = vsub.f32 %v211_v48, %v723_v49  ;;  %v1746_v61 = vmul.f32 %v1234_v50, %v1234_v50  ;;  %v224_v49 = vld [vmem:[#allocation2 + $0x3f8] sm:$0xff] }
  0xf1   :  { %v736_v50 = vld [vmem:[#allocation5 + $0x3f8] sm:$0xff] }
  0xf2   :  { %v4821_v7 = vadd.f32 %v4820_v2, %v1733_v60  ;;  %v1236_v60 = vsub.f32 %v212_v53, %v724_v54  ;;  %v1747_v2 = vmul.f32 %v1235_v55, %v1235_v55  ;;  %v225_v54 = vld [vmem:[#allocation2 + $0x400] sm:$0xff] }
  0xf3   :  { %v737_v55 = vld [vmem:[#allocation5 + $0x400] sm:$0xff] }
  0xf4   :  { %v4822_v12 = vadd.f32 %v4821_v7, %v1734_v1  ;;  %v1237_v1 = vsub.f32 %v213_v58, %v725_v59  ;;  %v1748_v7 = vmul.f32 %v1236_v60, %v1236_v60  ;;  %v226_v59 = vld [vmem:[#allocation2 + $0x408] sm:$0xff] }
  0xf5   :  { %v738_v60 = vld [vmem:[#allocation5 + $0x408] sm:$0xff] }
  0xf6   :  { %v4823_v17 = vadd.f32 %v4822_v12, %v1735_v6  ;;  %v1238_v6 = vsub.f32 %v214_v63, %v726_v0  ;;  %v1749_v12 = vmul.f32 %v1237_v1, %v1237_v1  ;;  %v227_v0 = vld [vmem:[#allocation2 + $0x410] sm:$0xff] }
  0xf7   :  { %v739_v1 = vld [vmem:[#allocation5 + $0x410] sm:$0xff] }
  0xf8   :  { %v4824_v22 = vadd.f32 %v4823_v17, %v1736_v11  ;;  %v1239_v11 = vsub.f32 %v215_v4, %v727_v5  ;;  %v1750_v17 = vmul.f32 %v1238_v6, %v1238_v6  ;;  %v228_v5 = vld [vmem:[#allocation2 + $0x418] sm:$0xff] }
  0xf9   :  { %v740_v6 = vld [vmem:[#allocation5 + $0x418] sm:$0xff] }
  0xfa   :  { %v4825_v27 = vadd.f32 %v4824_v22, %v1737_v16  ;;  %v1240_v16 = vsub.f32 %v216_v9, %v728_v10  ;;  %v1751_v22 = vmul.f32 %v1239_v11, %v1239_v11  ;;  %v229_v10 = vld [vmem:[#allocation2 + $0x420] sm:$0xff] }
  0xfb   :  { %v741_v11 = vld [vmem:[#allocation5 + $0x420] sm:$0xff] }
  0xfc   :  { %v4826_v32 = vadd.f32 %v4825_v27, %v1738_v21  ;;  %v1241_v21 = vsub.f32 %v217_v14, %v729_v15  ;;  %v1752_v27 = vmul.f32 %v1240_v16, %v1240_v16  ;;  %v230_v15 = vld [vmem:[#allocation2 + $0x428] sm:$0xff] }
  0xfd   :  { %v742_v16 = vld [vmem:[#allocation5 + $0x428] sm:$0xff] }
  0xfe   :  { %v4827_v37 = vadd.f32 %v4826_v32, %v1739_v26  ;;  %v1242_v26 = vsub.f32 %v218_v19, %v730_v20  ;;  %v1753_v32 = vmul.f32 %v1241_v21, %v1241_v21  ;;  %v231_v20 = vld [vmem:[#allocation2 + $0x430] sm:$0xff] }
  0xff   :  { %v743_v21 = vld [vmem:[#allocation5 + $0x430] sm:$0xff] }
 0x100   :  { %v4828_v42 = vadd.f32 %v4827_v37, %v1740_v31  ;;  %v1243_v31 = vsub.f32 %v219_v24, %v731_v25  ;;  %v1754_v37 = vmul.f32 %v1242_v26, %v1242_v26  ;;  %v232_v25 = vld [vmem:[#allocation2 + $0x438] sm:$0xff] }
 0x101   :  { %v744_v26 = vld [vmem:[#allocation5 + $0x438] sm:$0xff] }
 0x102   :  { %v4829_v47 = vadd.f32 %v4828_v42, %v1741_v36  ;;  %v1244_v36 = vsub.f32 %v220_v29, %v732_v30  ;;  %v1755_v42 = vmul.f32 %v1243_v31, %v1243_v31  ;;  %v233_v30 = vld [vmem:[#allocation2 + $0x440] sm:$0xff] }
 0x103   :  { %v745_v31 = vld [vmem:[#allocation5 + $0x440] sm:$0xff] }
 0x104   :  { %v4830_v52 = vadd.f32 %v4829_v47, %v1742_v41  ;;  %v1245_v41 = vsub.f32 %v221_v34, %v733_v35  ;;  %v1756_v47 = vmul.f32 %v1244_v36, %v1244_v36  ;;  %v234_v35 = vld [vmem:[#allocation2 + $0x448] sm:$0xff] }
 0x105   :  { %v746_v36 = vld [vmem:[#allocation5 + $0x448] sm:$0xff] }
 0x106   :  { %v4831_v57 = vadd.f32 %v4830_v52, %v1743_v46  ;;  %v1246_v46 = vsub.f32 %v222_v39, %v734_v40  ;;  %v1757_v52 = vmul.f32 %v1245_v41, %v1245_v41  ;;  %v235_v40 = vld [vmem:[#allocation2 + $0x450] sm:$0xff] }
 0x107   :  { %v747_v41 = vld [vmem:[#allocation5 + $0x450] sm:$0xff] }
 0x108   :  { %v4832_v62 = vadd.f32 %v4831_v57, %v1744_v51  ;;  %v1247_v51 = vsub.f32 %v223_v44, %v735_v45  ;;  %v1758_v57 = vmul.f32 %v1246_v46, %v1246_v46  ;;  %v236_v45 = vld [vmem:[#allocation2 + $0x458] sm:$0xff] }
 0x109   :  { %v748_v46 = vld [vmem:[#allocation5 + $0x458] sm:$0xff] }
 0x10a   :  { %v4833_v3 = vadd.f32 %v4832_v62, %v1745_v56  ;;  %v1248_v56 = vsub.f32 %v224_v49, %v736_v50  ;;  %v1759_v62 = vmul.f32 %v1247_v51, %v1247_v51  ;;  %v237_v50 = vld [vmem:[#allocation2 + $0x460] sm:$0xff] }
 0x10b   :  { %v749_v51 = vld [vmem:[#allocation5 + $0x460] sm:$0xff] }
 0x10c   :  { %v4834_v8 = vadd.f32 %v4833_v3, %v1746_v61  ;;  %v1249_v61 = vsub.f32 %v225_v54, %v737_v55  ;;  %v1760_v3 = vmul.f32 %v1248_v56, %v1248_v56  ;;  %v238_v55 = vld [vmem:[#allocation2 + $0x468] sm:$0xff] }
 0x10d   :  { %v750_v56 = vld [vmem:[#allocation5 + $0x468] sm:$0xff] }
 0x10e   :  { %v4835_v13 = vadd.f32 %v4834_v8, %v1747_v2  ;;  %v1250_v2 = vsub.f32 %v226_v59, %v738_v60  ;;  %v1761_v8 = vmul.f32 %v1249_v61, %v1249_v61  ;;  %v239_v60 = vld [vmem:[#allocation2 + $0x470] sm:$0xff] }
 0x10f   :  { %v751_v61 = vld [vmem:[#allocation5 + $0x470] sm:$0xff] }
 0x110   :  { %v4836_v18 = vadd.f32 %v4835_v13, %v1748_v7  ;;  %v1251_v7 = vsub.f32 %v227_v0, %v739_v1  ;;  %v1762_v13 = vmul.f32 %v1250_v2, %v1250_v2  ;;  %v240_v1 = vld [vmem:[#allocation2 + $0x478] sm:$0xff] }
 0x111   :  { %v752_v2 = vld [vmem:[#allocation5 + $0x478] sm:$0xff] }
 0x112   :  { %v4837_v23 = vadd.f32 %v4836_v18, %v1749_v12  ;;  %v1252_v12 = vsub.f32 %v228_v5, %v740_v6  ;;  %v1763_v18 = vmul.f32 %v1251_v7, %v1251_v7  ;;  %v241_v6 = vld [vmem:[#allocation2 + $0x480] sm:$0xff] }
 0x113   :  { %v753_v7 = vld [vmem:[#allocation5 + $0x480] sm:$0xff] }
 0x114   :  { %v4838_v28 = vadd.f32 %v4837_v23, %v1750_v17  ;;  %v1253_v17 = vsub.f32 %v229_v10, %v741_v11  ;;  %v1764_v23 = vmul.f32 %v1252_v12, %v1252_v12  ;;  %v242_v11 = vld [vmem:[#allocation2 + $0x488] sm:$0xff] }
 0x115   :  { %v754_v12 = vld [vmem:[#allocation5 + $0x488] sm:$0xff] }
 0x116   :  { %v4839_v33 = vadd.f32 %v4838_v28, %v1751_v22  ;;  %v1254_v22 = vsub.f32 %v230_v15, %v742_v16  ;;  %v1765_v28 = vmul.f32 %v1253_v17, %v1253_v17  ;;  %v243_v16 = vld [vmem:[#allocation2 + $0x490] sm:$0xff] }
 0x117   :  { %v755_v17 = vld [vmem:[#allocation5 + $0x490] sm:$0xff] }
 0x118   :  { %v4840_v38 = vadd.f32 %v4839_v33, %v1752_v27  ;;  %v1255_v27 = vsub.f32 %v231_v20, %v743_v21  ;;  %v1766_v33 = vmul.f32 %v1254_v22, %v1254_v22  ;;  %v244_v21 = vld [vmem:[#allocation2 + $0x498] sm:$0xff] }
 0x119   :  { %v756_v22 = vld [vmem:[#allocation5 + $0x498] sm:$0xff] }
 0x11a   :  { %v4841_v43 = vadd.f32 %v4840_v38, %v1753_v32  ;;  %v1256_v32 = vsub.f32 %v232_v25, %v744_v26  ;;  %v1767_v38 = vmul.f32 %v1255_v27, %v1255_v27  ;;  %v245_v26 = vld [vmem:[#allocation2 + $0x4a0] sm:$0xff] }
 0x11b   :  { %v757_v27 = vld [vmem:[#allocation5 + $0x4a0] sm:$0xff] }
 0x11c   :  { %v4842_v48 = vadd.f32 %v4841_v43, %v1754_v37  ;;  %v1257_v37 = vsub.f32 %v233_v30, %v745_v31  ;;  %v1768_v43 = vmul.f32 %v1256_v32, %v1256_v32  ;;  %v246_v31 = vld [vmem:[#allocation2 + $0x4a8] sm:$0xff] }
 0x11d   :  { %v758_v32 = vld [vmem:[#allocation5 + $0x4a8] sm:$0xff] }
 0x11e   :  { %v4843_v53 = vadd.f32 %v4842_v48, %v1755_v42  ;;  %v1258_v42 = vsub.f32 %v234_v35, %v746_v36  ;;  %v1769_v48 = vmul.f32 %v1257_v37, %v1257_v37  ;;  %v247_v36 = vld [vmem:[#allocation2 + $0x4b0] sm:$0xff] }
 0x11f   :  { %v759_v37 = vld [vmem:[#allocation5 + $0x4b0] sm:$0xff] }
 0x120   :  { %v4844_v58 = vadd.f32 %v4843_v53, %v1756_v47  ;;  %v1259_v47 = vsub.f32 %v235_v40, %v747_v41  ;;  %v1770_v53 = vmul.f32 %v1258_v42, %v1258_v42  ;;  %v248_v41 = vld [vmem:[#allocation2 + $0x4b8] sm:$0xff] }
 0x121   :  { %v760_v42 = vld [vmem:[#allocation5 + $0x4b8] sm:$0xff] }
 0x122   :  { %v4845_v63 = vadd.f32 %v4844_v58, %v1757_v52  ;;  %v1260_v52 = vsub.f32 %v236_v45, %v748_v46  ;;  %v1771_v58 = vmul.f32 %v1259_v47, %v1259_v47  ;;  %v249_v46 = vld [vmem:[#allocation2 + $0x4c0] sm:$0xff] }
 0x123   :  { %v761_v47 = vld [vmem:[#allocation5 + $0x4c0] sm:$0xff] }
 0x124   :  { %v4846_v4 = vadd.f32 %v4845_v63, %v1758_v57  ;;  %v1261_v57 = vsub.f32 %v237_v50, %v749_v51  ;;  %v1772_v63 = vmul.f32 %v1260_v52, %v1260_v52  ;;  %v250_v51 = vld [vmem:[#allocation2 + $0x4c8] sm:$0xff] }
 0x125   :  { %v762_v52 = vld [vmem:[#allocation5 + $0x4c8] sm:$0xff] }
 0x126   :  { %v4847_v9 = vadd.f32 %v4846_v4, %v1759_v62  ;;  %v1262_v62 = vsub.f32 %v238_v55, %v750_v56  ;;  %v1773_v4 = vmul.f32 %v1261_v57, %v1261_v57  ;;  %v251_v56 = vld [vmem:[#allocation2 + $0x4d0] sm:$0xff] }
 0x127   :  { %v763_v57 = vld [vmem:[#allocation5 + $0x4d0] sm:$0xff] }
 0x128   :  { %v4848_v14 = vadd.f32 %v4847_v9, %v1760_v3  ;;  %v1263_v3 = vsub.f32 %v239_v60, %v751_v61  ;;  %v1774_v9 = vmul.f32 %v1262_v62, %v1262_v62  ;;  %v252_v61 = vld [vmem:[#allocation2 + $0x4d8] sm:$0xff] }
 0x129   :  { %v764_v62 = vld [vmem:[#allocation5 + $0x4d8] sm:$0xff] }
 0x12a   :  { %v4849_v19 = vadd.f32 %v4848_v14, %v1761_v8  ;;  %v1264_v8 = vsub.f32 %v240_v1, %v752_v2  ;;  %v1775_v14 = vmul.f32 %v1263_v3, %v1263_v3  ;;  %v253_v2 = vld [vmem:[#allocation2 + $0x4e0] sm:$0xff] }
 0x12b   :  { %v765_v3 = vld [vmem:[#allocation5 + $0x4e0] sm:$0xff] }
 0x12c   :  { %v4850_v24 = vadd.f32 %v4849_v19, %v1762_v13  ;;  %v1265_v13 = vsub.f32 %v241_v6, %v753_v7  ;;  %v1776_v19 = vmul.f32 %v1264_v8, %v1264_v8  ;;  %v254_v7 = vld [vmem:[#allocation2 + $0x4e8] sm:$0xff] }
 0x12d   :  { %v766_v8 = vld [vmem:[#allocation5 + $0x4e8] sm:$0xff] }
 0x12e   :  { %v4851_v29 = vadd.f32 %v4850_v24, %v1763_v18  ;;  %v1266_v18 = vsub.f32 %v242_v11, %v754_v12  ;;  %v1777_v24 = vmul.f32 %v1265_v13, %v1265_v13  ;;  %v255_v12 = vld [vmem:[#allocation2 + $0x4f0] sm:$0xff] }
 0x12f   :  { %v767_v13 = vld [vmem:[#allocation5 + $0x4f0] sm:$0xff] }
 0x130   :  { %v4852_v34 = vadd.f32 %v4851_v29, %v1764_v23  ;;  %v1267_v23 = vsub.f32 %v243_v16, %v755_v17  ;;  %v1778_v29 = vmul.f32 %v1266_v18, %v1266_v18  ;;  %v256_v17 = vld [vmem:[#allocation2 + $0x4f8] sm:$0xff] }
 0x131   :  { %v768_v18 = vld [vmem:[#allocation5 + $0x4f8] sm:$0xff] }
 0x132   :  { %v4853_v39 = vadd.f32 %v4852_v34, %v1765_v28  ;;  %v1268_v28 = vsub.f32 %v244_v21, %v756_v22  ;;  %v1779_v34 = vmul.f32 %v1267_v23, %v1267_v23  ;;  %v257_v22 = vld [vmem:[#allocation2 + $0x500] sm:$0xff] }
 0x133   :  { %v769_v23 = vld [vmem:[#allocation5 + $0x500] sm:$0xff] }
 0x134   :  { %v4854_v44 = vadd.f32 %v4853_v39, %v1766_v33  ;;  %v1269_v33 = vsub.f32 %v245_v26, %v757_v27  ;;  %v1780_v39 = vmul.f32 %v1268_v28, %v1268_v28  ;;  %v258_v27 = vld [vmem:[#allocation2 + $0x508] sm:$0xff] }
 0x135   :  { %v770_v28 = vld [vmem:[#allocation5 + $0x508] sm:$0xff] }
 0x136   :  { %v4855_v49 = vadd.f32 %v4854_v44, %v1767_v38  ;;  %v1270_v38 = vsub.f32 %v246_v31, %v758_v32  ;;  %v1781_v44 = vmul.f32 %v1269_v33, %v1269_v33  ;;  %v259_v32 = vld [vmem:[#allocation2 + $0x510] sm:$0xff] }
 0x137   :  { %v771_v33 = vld [vmem:[#allocation5 + $0x510] sm:$0xff] }
 0x138   :  { %v4856_v54 = vadd.f32 %v4855_v49, %v1768_v43  ;;  %v1271_v43 = vsub.f32 %v247_v36, %v759_v37  ;;  %v1782_v49 = vmul.f32 %v1270_v38, %v1270_v38  ;;  %v260_v37 = vld [vmem:[#allocation2 + $0x518] sm:$0xff] }
 0x139   :  { %v772_v38 = vld [vmem:[#allocation5 + $0x518] sm:$0xff] }
 0x13a   :  { %v4857_v59 = vadd.f32 %v4856_v54, %v1769_v48  ;;  %v1272_v48 = vsub.f32 %v248_v41, %v760_v42  ;;  %v1783_v54 = vmul.f32 %v1271_v43, %v1271_v43  ;;  %v261_v42 = vld [vmem:[#allocation2 + $0x520] sm:$0xff] }
 0x13b   :  { %v773_v43 = vld [vmem:[#allocation5 + $0x520] sm:$0xff] }
 0x13c   :  { %v4858_v0 = vadd.f32 %v4857_v59, %v1770_v53  ;;  %v1273_v53 = vsub.f32 %v249_v46, %v761_v47  ;;  %v1784_v59 = vmul.f32 %v1272_v48, %v1272_v48  ;;  %v262_v47 = vld [vmem:[#allocation2 + $0x528] sm:$0xff] }
 0x13d   :  { %v774_v48 = vld [vmem:[#allocation5 + $0x528] sm:$0xff] }
 0x13e   :  { %v4859_v5 = vadd.f32 %v4858_v0, %v1771_v58  ;;  %v1274_v58 = vsub.f32 %v250_v51, %v762_v52  ;;  %v1785_v0 = vmul.f32 %v1273_v53, %v1273_v53  ;;  %v263_v52 = vld [vmem:[#allocation2 + $0x530] sm:$0xff] }
 0x13f   :  { %v775_v53 = vld [vmem:[#allocation5 + $0x530] sm:$0xff] }
 0x140   :  { %v4860_v10 = vadd.f32 %v4859_v5, %v1772_v63  ;;  %v1275_v63 = vsub.f32 %v251_v56, %v763_v57  ;;  %v1786_v5 = vmul.f32 %v1274_v58, %v1274_v58  ;;  %v264_v57 = vld [vmem:[#allocation2 + $0x538] sm:$0xff] }
 0x141   :  { %v776_v58 = vld [vmem:[#allocation5 + $0x538] sm:$0xff] }
 0x142   :  { %v4861_v15 = vadd.f32 %v4860_v10, %v1773_v4  ;;  %v1276_v4 = vsub.f32 %v252_v61, %v764_v62  ;;  %v1787_v10 = vmul.f32 %v1275_v63, %v1275_v63  ;;  %v265_v62 = vld [vmem:[#allocation2 + $0x540] sm:$0xff] }
 0x143   :  { %v777_v63 = vld [vmem:[#allocation5 + $0x540] sm:$0xff] }
 0x144   :  { %v4862_v20 = vadd.f32 %v4861_v15, %v1774_v9  ;;  %v1277_v9 = vsub.f32 %v253_v2, %v765_v3  ;;  %v1788_v15 = vmul.f32 %v1276_v4, %v1276_v4  ;;  %v266_v3 = vld [vmem:[#allocation2 + $0x548] sm:$0xff] }
 0x145   :  { %v778_v4 = vld [vmem:[#allocation5 + $0x548] sm:$0xff] }
 0x146   :  { %v4863_v25 = vadd.f32 %v4862_v20, %v1775_v14  ;;  %v1278_v14 = vsub.f32 %v254_v7, %v766_v8  ;;  %v1789_v20 = vmul.f32 %v1277_v9, %v1277_v9  ;;  %v267_v8 = vld [vmem:[#allocation2 + $0x550] sm:$0xff] }
 0x147   :  { %v779_v9 = vld [vmem:[#allocation5 + $0x550] sm:$0xff] }
 0x148   :  { %v4864_v30 = vadd.f32 %v4863_v25, %v1776_v19  ;;  %v1279_v19 = vsub.f32 %v255_v12, %v767_v13  ;;  %v1790_v25 = vmul.f32 %v1278_v14, %v1278_v14  ;;  %v268_v13 = vld [vmem:[#allocation2 + $0x558] sm:$0xff] }
 0x149   :  { %v780_v14 = vld [vmem:[#allocation5 + $0x558] sm:$0xff] }
 0x14a   :  { %v4865_v35 = vadd.f32 %v4864_v30, %v1777_v24  ;;  %v1280_v24 = vsub.f32 %v256_v17, %v768_v18  ;;  %v1791_v30 = vmul.f32 %v1279_v19, %v1279_v19  ;;  %v269_v18 = vld [vmem:[#allocation2 + $0x560] sm:$0xff] }
 0x14b   :  { %v781_v19 = vld [vmem:[#allocation5 + $0x560] sm:$0xff] }
 0x14c   :  { %v4866_v40 = vadd.f32 %v4865_v35, %v1778_v29  ;;  %v1281_v29 = vsub.f32 %v257_v22, %v769_v23  ;;  %v1792_v35 = vmul.f32 %v1280_v24, %v1280_v24  ;;  %v270_v23 = vld [vmem:[#allocation2 + $0x568] sm:$0xff] }
 0x14d   :  { %v782_v24 = vld [vmem:[#allocation5 + $0x568] sm:$0xff] }
 0x14e   :  { %v4867_v45 = vadd.f32 %v4866_v40, %v1779_v34  ;;  %v1282_v34 = vsub.f32 %v258_v27, %v770_v28  ;;  %v1793_v40 = vmul.f32 %v1281_v29, %v1281_v29  ;;  %v271_v28 = vld [vmem:[#allocation2 + $0x570] sm:$0xff] }
 0x14f   :  { %v783_v29 = vld [vmem:[#allocation5 + $0x570] sm:$0xff] }
 0x150   :  { %v4868_v50 = vadd.f32 %v4867_v45, %v1780_v39  ;;  %v1283_v39 = vsub.f32 %v259_v32, %v771_v33  ;;  %v1794_v45 = vmul.f32 %v1282_v34, %v1282_v34  ;;  %v272_v33 = vld [vmem:[#allocation2 + $0x578] sm:$0xff] }
 0x151   :  { %v784_v34 = vld [vmem:[#allocation5 + $0x578] sm:$0xff] }
 0x152   :  { %v4869_v55 = vadd.f32 %v4868_v50, %v1781_v44  ;;  %v1284_v44 = vsub.f32 %v260_v37, %v772_v38  ;;  %v1795_v50 = vmul.f32 %v1283_v39, %v1283_v39  ;;  %v273_v38 = vld [vmem:[#allocation2 + $0x580] sm:$0xff] }
 0x153   :  { %v785_v39 = vld [vmem:[#allocation5 + $0x580] sm:$0xff] }
 0x154   :  { %v4870_v60 = vadd.f32 %v4869_v55, %v1782_v49  ;;  %v1285_v49 = vsub.f32 %v261_v42, %v773_v43  ;;  %v1796_v55 = vmul.f32 %v1284_v44, %v1284_v44  ;;  %v274_v43 = vld [vmem:[#allocation2 + $0x588] sm:$0xff] }
 0x155   :  { %v786_v44 = vld [vmem:[#allocation5 + $0x588] sm:$0xff] }
 0x156   :  { %v4871_v1 = vadd.f32 %v4870_v60, %v1783_v54  ;;  %v1286_v54 = vsub.f32 %v262_v47, %v774_v48  ;;  %v1797_v60 = vmul.f32 %v1285_v49, %v1285_v49  ;;  %v275_v48 = vld [vmem:[#allocation2 + $0x590] sm:$0xff] }
 0x157   :  { %v787_v49 = vld [vmem:[#allocation5 + $0x590] sm:$0xff] }
 0x158   :  { %v4872_v6 = vadd.f32 %v4871_v1, %v1784_v59  ;;  %v1287_v59 = vsub.f32 %v263_v52, %v775_v53  ;;  %v1798_v1 = vmul.f32 %v1286_v54, %v1286_v54  ;;  %v276_v53 = vld [vmem:[#allocation2 + $0x598] sm:$0xff] }
 0x159   :  { %v788_v54 = vld [vmem:[#allocation5 + $0x598] sm:$0xff] }
 0x15a   :  { %v4873_v11 = vadd.f32 %v4872_v6, %v1785_v0  ;;  %v1288_v0 = vsub.f32 %v264_v57, %v776_v58  ;;  %v1799_v6 = vmul.f32 %v1287_v59, %v1287_v59  ;;  %v277_v58 = vld [vmem:[#allocation2 + $0x5a0] sm:$0xff] }
 0x15b   :  { %v789_v59 = vld [vmem:[#allocation5 + $0x5a0] sm:$0xff] }
 0x15c   :  { %v4874_v16 = vadd.f32 %v4873_v11, %v1786_v5  ;;  %v1289_v5 = vsub.f32 %v265_v62, %v777_v63  ;;  %v1800_v11 = vmul.f32 %v1288_v0, %v1288_v0  ;;  %v278_v63 = vld [vmem:[#allocation2 + $0x5a8] sm:$0xff] }
 0x15d   :  { %v790_v0 = vld [vmem:[#allocation5 + $0x5a8] sm:$0xff] }
 0x15e   :  { %v4875_v21 = vadd.f32 %v4874_v16, %v1787_v10  ;;  %v1290_v10 = vsub.f32 %v266_v3, %v778_v4  ;;  %v1801_v16 = vmul.f32 %v1289_v5, %v1289_v5  ;;  %v279_v4 = vld [vmem:[#allocation2 + $0x5b0] sm:$0xff] }
 0x15f   :  { %v791_v5 = vld [vmem:[#allocation5 + $0x5b0] sm:$0xff] }
 0x160   :  { %v4876_v26 = vadd.f32 %v4875_v21, %v1788_v15  ;;  %v1291_v15 = vsub.f32 %v267_v8, %v779_v9  ;;  %v1802_v21 = vmul.f32 %v1290_v10, %v1290_v10  ;;  %v280_v9 = vld [vmem:[#allocation2 + $0x5b8] sm:$0xff] }
 0x161   :  { %v792_v10 = vld [vmem:[#allocation5 + $0x5b8] sm:$0xff] }
 0x162   :  { %v4877_v31 = vadd.f32 %v4876_v26, %v1789_v20  ;;  %v1292_v20 = vsub.f32 %v268_v13, %v780_v14  ;;  %v1803_v26 = vmul.f32 %v1291_v15, %v1291_v15  ;;  %v281_v14 = vld [vmem:[#allocation2 + $0x5c0] sm:$0xff] }
 0x163   :  { %v793_v15 = vld [vmem:[#allocation5 + $0x5c0] sm:$0xff] }
 0x164   :  { %v4878_v36 = vadd.f32 %v4877_v31, %v1790_v25  ;;  %v1293_v25 = vsub.f32 %v269_v18, %v781_v19  ;;  %v1804_v31 = vmul.f32 %v1292_v20, %v1292_v20  ;;  %v282_v19 = vld [vmem:[#allocation2 + $0x5c8] sm:$0xff] }
 0x165   :  { %v794_v20 = vld [vmem:[#allocation5 + $0x5c8] sm:$0xff] }
 0x166   :  { %v4879_v41 = vadd.f32 %v4878_v36, %v1791_v30  ;;  %v1294_v30 = vsub.f32 %v270_v23, %v782_v24  ;;  %v1805_v36 = vmul.f32 %v1293_v25, %v1293_v25  ;;  %v283_v24 = vld [vmem:[#allocation2 + $0x5d0] sm:$0xff] }
 0x167   :  { %v795_v25 = vld [vmem:[#allocation5 + $0x5d0] sm:$0xff] }
 0x168   :  { %v4880_v46 = vadd.f32 %v4879_v41, %v1792_v35  ;;  %v1295_v35 = vsub.f32 %v271_v28, %v783_v29  ;;  %v1806_v41 = vmul.f32 %v1294_v30, %v1294_v30  ;;  %v284_v29 = vld [vmem:[#allocation2 + $0x5d8] sm:$0xff] }
 0x169   :  { %v796_v30 = vld [vmem:[#allocation5 + $0x5d8] sm:$0xff] }
 0x16a   :  { %v4881_v51 = vadd.f32 %v4880_v46, %v1793_v40  ;;  %v1296_v40 = vsub.f32 %v272_v33, %v784_v34  ;;  %v1807_v46 = vmul.f32 %v1295_v35, %v1295_v35  ;;  %v285_v34 = vld [vmem:[#allocation2 + $0x5e0] sm:$0xff] }
 0x16b   :  { %v797_v35 = vld [vmem:[#allocation5 + $0x5e0] sm:$0xff] }
 0x16c   :  { %v4882_v56 = vadd.f32 %v4881_v51, %v1794_v45  ;;  %v1297_v45 = vsub.f32 %v273_v38, %v785_v39  ;;  %v1808_v51 = vmul.f32 %v1296_v40, %v1296_v40  ;;  %v286_v39 = vld [vmem:[#allocation2 + $0x5e8] sm:$0xff] }
 0x16d   :  { %v798_v40 = vld [vmem:[#allocation5 + $0x5e8] sm:$0xff] }
 0x16e   :  { %v4883_v61 = vadd.f32 %v4882_v56, %v1795_v50  ;;  %v1298_v50 = vsub.f32 %v274_v43, %v786_v44  ;;  %v1809_v56 = vmul.f32 %v1297_v45, %v1297_v45  ;;  %v287_v44 = vld [vmem:[#allocation2 + $0x5f0] sm:$0xff] }
 0x16f   :  { %v799_v45 = vld [vmem:[#allocation5 + $0x5f0] sm:$0xff] }
 0x170   :  { %v4884_v2 = vadd.f32 %v4883_v61, %v1796_v55  ;;  %v1299_v55 = vsub.f32 %v275_v48, %v787_v49  ;;  %v1810_v61 = vmul.f32 %v1298_v50, %v1298_v50  ;;  %v288_v49 = vld [vmem:[#allocation2 + $0x5f8] sm:$0xff] }
 0x171   :  { %v800_v50 = vld [vmem:[#allocation5 + $0x5f8] sm:$0xff] }
 0x172   :  { %v4885_v7 = vadd.f32 %v4884_v2, %v1797_v60  ;;  %v1300_v60 = vsub.f32 %v276_v53, %v788_v54  ;;  %v1811_v2 = vmul.f32 %v1299_v55, %v1299_v55  ;;  %v289_v54 = vld [vmem:[#allocation2 + $0x600] sm:$0xff] }
 0x173   :  { %v801_v55 = vld [vmem:[#allocation5 + $0x600] sm:$0xff] }
 0x174   :  { %v4886_v12 = vadd.f32 %v4885_v7, %v1798_v1  ;;  %v1301_v1 = vsub.f32 %v277_v58, %v789_v59  ;;  %v1812_v7 = vmul.f32 %v1300_v60, %v1300_v60  ;;  %v290_v59 = vld [vmem:[#allocation2 + $0x608] sm:$0xff] }
 0x175   :  { %v802_v60 = vld [vmem:[#allocation5 + $0x608] sm:$0xff] }
 0x176   :  { %v4887_v17 = vadd.f32 %v4886_v12, %v1799_v6  ;;  %v1302_v6 = vsub.f32 %v278_v63, %v790_v0  ;;  %v1813_v12 = vmul.f32 %v1301_v1, %v1301_v1  ;;  %v291_v0 = vld [vmem:[#allocation2 + $0x610] sm:$0xff] }
 0x177   :  { %v803_v1 = vld [vmem:[#allocation5 + $0x610] sm:$0xff] }
 0x178   :  { %v4888_v22 = vadd.f32 %v4887_v17, %v1800_v11  ;;  %v1303_v11 = vsub.f32 %v279_v4, %v791_v5  ;;  %v1814_v17 = vmul.f32 %v1302_v6, %v1302_v6  ;;  %v292_v5 = vld [vmem:[#allocation2 + $0x618] sm:$0xff] }
 0x179   :  { %v804_v6 = vld [vmem:[#allocation5 + $0x618] sm:$0xff] }
 0x17a   :  { %v4889_v27 = vadd.f32 %v4888_v22, %v1801_v16  ;;  %v1304_v16 = vsub.f32 %v280_v9, %v792_v10  ;;  %v1815_v22 = vmul.f32 %v1303_v11, %v1303_v11  ;;  %v293_v10 = vld [vmem:[#allocation2 + $0x620] sm:$0xff] }
 0x17b   :  { %v805_v11 = vld [vmem:[#allocation5 + $0x620] sm:$0xff] }
 0x17c   :  { %v4890_v32 = vadd.f32 %v4889_v27, %v1802_v21  ;;  %v1305_v21 = vsub.f32 %v281_v14, %v793_v15  ;;  %v1816_v27 = vmul.f32 %v1304_v16, %v1304_v16  ;;  %v294_v15 = vld [vmem:[#allocation2 + $0x628] sm:$0xff] }
 0x17d   :  { %v806_v16 = vld [vmem:[#allocation5 + $0x628] sm:$0xff] }
 0x17e   :  { %v4891_v37 = vadd.f32 %v4890_v32, %v1803_v26  ;;  %v1306_v26 = vsub.f32 %v282_v19, %v794_v20  ;;  %v1817_v32 = vmul.f32 %v1305_v21, %v1305_v21  ;;  %v295_v20 = vld [vmem:[#allocation2 + $0x630] sm:$0xff] }
 0x17f   :  { %v807_v21 = vld [vmem:[#allocation5 + $0x630] sm:$0xff] }
 0x180   :  { %v4892_v42 = vadd.f32 %v4891_v37, %v1804_v31  ;;  %v1307_v31 = vsub.f32 %v283_v24, %v795_v25  ;;  %v1818_v37 = vmul.f32 %v1306_v26, %v1306_v26  ;;  %v296_v25 = vld [vmem:[#allocation2 + $0x638] sm:$0xff] }
 0x181   :  { %v808_v26 = vld [vmem:[#allocation5 + $0x638] sm:$0xff] }
 0x182   :  { %v4893_v47 = vadd.f32 %v4892_v42, %v1805_v36  ;;  %v1308_v36 = vsub.f32 %v284_v29, %v796_v30  ;;  %v1819_v42 = vmul.f32 %v1307_v31, %v1307_v31  ;;  %v297_v30 = vld [vmem:[#allocation2 + $0x640] sm:$0xff] }
 0x183   :  { %v809_v31 = vld [vmem:[#allocation5 + $0x640] sm:$0xff] }
 0x184   :  { %v4894_v52 = vadd.f32 %v4893_v47, %v1806_v41  ;;  %v1309_v41 = vsub.f32 %v285_v34, %v797_v35  ;;  %v1820_v47 = vmul.f32 %v1308_v36, %v1308_v36  ;;  %v298_v35 = vld [vmem:[#allocation2 + $0x648] sm:$0xff] }
 0x185   :  { %v810_v36 = vld [vmem:[#allocation5 + $0x648] sm:$0xff] }
 0x186   :  { %v4895_v57 = vadd.f32 %v4894_v52, %v1807_v46  ;;  %v1310_v46 = vsub.f32 %v286_v39, %v798_v40  ;;  %v1821_v52 = vmul.f32 %v1309_v41, %v1309_v41  ;;  %v299_v40 = vld [vmem:[#allocation2 + $0x650] sm:$0xff] }
 0x187   :  { %v811_v41 = vld [vmem:[#allocation5 + $0x650] sm:$0xff] }
 0x188   :  { %v4896_v62 = vadd.f32 %v4895_v57, %v1808_v51  ;;  %v1311_v51 = vsub.f32 %v287_v44, %v799_v45  ;;  %v1822_v57 = vmul.f32 %v1310_v46, %v1310_v46  ;;  %v300_v45 = vld [vmem:[#allocation2 + $0x658] sm:$0xff] }
 0x189   :  { %v812_v46 = vld [vmem:[#allocation5 + $0x658] sm:$0xff] }
 0x18a   :  { %v4897_v3 = vadd.f32 %v4896_v62, %v1809_v56  ;;  %v1312_v56 = vsub.f32 %v288_v49, %v800_v50  ;;  %v1823_v62 = vmul.f32 %v1311_v51, %v1311_v51  ;;  %v301_v50 = vld [vmem:[#allocation2 + $0x660] sm:$0xff] }
 0x18b   :  { %v813_v51 = vld [vmem:[#allocation5 + $0x660] sm:$0xff] }
 0x18c   :  { %v4898_v8 = vadd.f32 %v4897_v3, %v1810_v61  ;;  %v1313_v61 = vsub.f32 %v289_v54, %v801_v55  ;;  %v1824_v3 = vmul.f32 %v1312_v56, %v1312_v56  ;;  %v302_v55 = vld [vmem:[#allocation2 + $0x668] sm:$0xff] }
 0x18d   :  { %v814_v56 = vld [vmem:[#allocation5 + $0x668] sm:$0xff] }
 0x18e   :  { %v4899_v13 = vadd.f32 %v4898_v8, %v1811_v2  ;;  %v1314_v2 = vsub.f32 %v290_v59, %v802_v60  ;;  %v1825_v8 = vmul.f32 %v1313_v61, %v1313_v61  ;;  %v303_v60 = vld [vmem:[#allocation2 + $0x670] sm:$0xff] }
 0x18f   :  { %v815_v61 = vld [vmem:[#allocation5 + $0x670] sm:$0xff] }
 0x190   :  { %v4900_v18 = vadd.f32 %v4899_v13, %v1812_v7  ;;  %v1315_v7 = vsub.f32 %v291_v0, %v803_v1  ;;  %v1826_v13 = vmul.f32 %v1314_v2, %v1314_v2  ;;  %v304_v1 = vld [vmem:[#allocation2 + $0x678] sm:$0xff] }
 0x191   :  { %v816_v2 = vld [vmem:[#allocation5 + $0x678] sm:$0xff] }
 0x192   :  { %v4901_v23 = vadd.f32 %v4900_v18, %v1813_v12  ;;  %v1316_v12 = vsub.f32 %v292_v5, %v804_v6  ;;  %v1827_v18 = vmul.f32 %v1315_v7, %v1315_v7  ;;  %v305_v6 = vld [vmem:[#allocation2 + $0x680] sm:$0xff] }
 0x193   :  { %v817_v7 = vld [vmem:[#allocation5 + $0x680] sm:$0xff] }
 0x194   :  { %v4902_v28 = vadd.f32 %v4901_v23, %v1814_v17  ;;  %v1317_v17 = vsub.f32 %v293_v10, %v805_v11  ;;  %v1828_v23 = vmul.f32 %v1316_v12, %v1316_v12  ;;  %v306_v11 = vld [vmem:[#allocation2 + $0x688] sm:$0xff] }
 0x195   :  { %v818_v12 = vld [vmem:[#allocation5 + $0x688] sm:$0xff] }
 0x196   :  { %v4903_v33 = vadd.f32 %v4902_v28, %v1815_v22  ;;  %v1318_v22 = vsub.f32 %v294_v15, %v806_v16  ;;  %v1829_v28 = vmul.f32 %v1317_v17, %v1317_v17  ;;  %v307_v16 = vld [vmem:[#allocation2 + $0x690] sm:$0xff] }
 0x197   :  { %v819_v17 = vld [vmem:[#allocation5 + $0x690] sm:$0xff] }
 0x198   :  { %v4904_v38 = vadd.f32 %v4903_v33, %v1816_v27  ;;  %v1319_v27 = vsub.f32 %v295_v20, %v807_v21  ;;  %v1830_v33 = vmul.f32 %v1318_v22, %v1318_v22  ;;  %v308_v21 = vld [vmem:[#allocation2 + $0x698] sm:$0xff] }
 0x199   :  { %v820_v22 = vld [vmem:[#allocation5 + $0x698] sm:$0xff] }
 0x19a   :  { %v4905_v43 = vadd.f32 %v4904_v38, %v1817_v32  ;;  %v1320_v32 = vsub.f32 %v296_v25, %v808_v26  ;;  %v1831_v38 = vmul.f32 %v1319_v27, %v1319_v27  ;;  %v309_v26 = vld [vmem:[#allocation2 + $0x6a0] sm:$0xff] }
 0x19b   :  { %v821_v27 = vld [vmem:[#allocation5 + $0x6a0] sm:$0xff] }
 0x19c   :  { %v4906_v48 = vadd.f32 %v4905_v43, %v1818_v37  ;;  %v1321_v37 = vsub.f32 %v297_v30, %v809_v31  ;;  %v1832_v43 = vmul.f32 %v1320_v32, %v1320_v32  ;;  %v310_v31 = vld [vmem:[#allocation2 + $0x6a8] sm:$0xff] }
 0x19d   :  { %v822_v32 = vld [vmem:[#allocation5 + $0x6a8] sm:$0xff] }
 0x19e   :  { %v4907_v53 = vadd.f32 %v4906_v48, %v1819_v42  ;;  %v1322_v42 = vsub.f32 %v298_v35, %v810_v36  ;;  %v1833_v48 = vmul.f32 %v1321_v37, %v1321_v37  ;;  %v311_v36 = vld [vmem:[#allocation2 + $0x6b0] sm:$0xff] }
 0x19f   :  { %v823_v37 = vld [vmem:[#allocation5 + $0x6b0] sm:$0xff] }
 0x1a0   :  { %v4908_v58 = vadd.f32 %v4907_v53, %v1820_v47  ;;  %v1323_v47 = vsub.f32 %v299_v40, %v811_v41  ;;  %v1834_v53 = vmul.f32 %v1322_v42, %v1322_v42  ;;  %v312_v41 = vld [vmem:[#allocation2 + $0x6b8] sm:$0xff] }
 0x1a1   :  { %v824_v42 = vld [vmem:[#allocation5 + $0x6b8] sm:$0xff] }
 0x1a2   :  { %v4909_v63 = vadd.f32 %v4908_v58, %v1821_v52  ;;  %v1324_v52 = vsub.f32 %v300_v45, %v812_v46  ;;  %v1835_v58 = vmul.f32 %v1323_v47, %v1323_v47  ;;  %v313_v46 = vld [vmem:[#allocation2 + $0x6c0] sm:$0xff] }
 0x1a3   :  { %v825_v47 = vld [vmem:[#allocation5 + $0x6c0] sm:$0xff] }
 0x1a4   :  { %v4910_v4 = vadd.f32 %v4909_v63, %v1822_v57  ;;  %v1325_v57 = vsub.f32 %v301_v50, %v813_v51  ;;  %v1836_v63 = vmul.f32 %v1324_v52, %v1324_v52  ;;  %v314_v51 = vld [vmem:[#allocation2 + $0x6c8] sm:$0xff] }
 0x1a5   :  { %v826_v52 = vld [vmem:[#allocation5 + $0x6c8] sm:$0xff] }
 0x1a6   :  { %v4911_v9 = vadd.f32 %v4910_v4, %v1823_v62  ;;  %v1326_v62 = vsub.f32 %v302_v55, %v814_v56  ;;  %v1837_v4 = vmul.f32 %v1325_v57, %v1325_v57  ;;  %v315_v56 = vld [vmem:[#allocation2 + $0x6d0] sm:$0xff] }
 0x1a7   :  { %v827_v57 = vld [vmem:[#allocation5 + $0x6d0] sm:$0xff] }
 0x1a8   :  { %v4912_v14 = vadd.f32 %v4911_v9, %v1824_v3  ;;  %v1327_v3 = vsub.f32 %v303_v60, %v815_v61  ;;  %v1838_v9 = vmul.f32 %v1326_v62, %v1326_v62  ;;  %v316_v61 = vld [vmem:[#allocation2 + $0x6d8] sm:$0xff] }
 0x1a9   :  { %v828_v62 = vld [vmem:[#allocation5 + $0x6d8] sm:$0xff] }
 0x1aa   :  { %v4913_v19 = vadd.f32 %v4912_v14, %v1825_v8  ;;  %v1328_v8 = vsub.f32 %v304_v1, %v816_v2  ;;  %v1839_v14 = vmul.f32 %v1327_v3, %v1327_v3  ;;  %v317_v2 = vld [vmem:[#allocation2 + $0x6e0] sm:$0xff] }
 0x1ab   :  { %v829_v3 = vld [vmem:[#allocation5 + $0x6e0] sm:$0xff] }
 0x1ac   :  { %v4914_v24 = vadd.f32 %v4913_v19, %v1826_v13  ;;  %v1329_v13 = vsub.f32 %v305_v6, %v817_v7  ;;  %v1840_v19 = vmul.f32 %v1328_v8, %v1328_v8  ;;  %v318_v7 = vld [vmem:[#allocation2 + $0x6e8] sm:$0xff] }
 0x1ad   :  { %v830_v8 = vld [vmem:[#allocation5 + $0x6e8] sm:$0xff] }
 0x1ae   :  { %v4915_v29 = vadd.f32 %v4914_v24, %v1827_v18  ;;  %v1330_v18 = vsub.f32 %v306_v11, %v818_v12  ;;  %v1841_v24 = vmul.f32 %v1329_v13, %v1329_v13  ;;  %v319_v12 = vld [vmem:[#allocation2 + $0x6f0] sm:$0xff] }
 0x1af   :  { %v831_v13 = vld [vmem:[#allocation5 + $0x6f0] sm:$0xff] }
 0x1b0   :  { %v4916_v34 = vadd.f32 %v4915_v29, %v1828_v23  ;;  %v1331_v23 = vsub.f32 %v307_v16, %v819_v17  ;;  %v1842_v29 = vmul.f32 %v1330_v18, %v1330_v18  ;;  %v320_v17 = vld [vmem:[#allocation2 + $0x6f8] sm:$0xff] }
 0x1b1   :  { %v832_v18 = vld [vmem:[#allocation5 + $0x6f8] sm:$0xff] }
 0x1b2   :  { %v4917_v39 = vadd.f32 %v4916_v34, %v1829_v28  ;;  %v1332_v28 = vsub.f32 %v308_v21, %v820_v22  ;;  %v1843_v34 = vmul.f32 %v1331_v23, %v1331_v23  ;;  %v321_v22 = vld [vmem:[#allocation2 + $0x700] sm:$0xff] }
 0x1b3   :  { %v833_v23 = vld [vmem:[#allocation5 + $0x700] sm:$0xff] }
 0x1b4   :  { %v4918_v44 = vadd.f32 %v4917_v39, %v1830_v33  ;;  %v1333_v33 = vsub.f32 %v309_v26, %v821_v27  ;;  %v1844_v39 = vmul.f32 %v1332_v28, %v1332_v28  ;;  %v322_v27 = vld [vmem:[#allocation2 + $0x708] sm:$0xff] }
 0x1b5   :  { %v834_v28 = vld [vmem:[#allocation5 + $0x708] sm:$0xff] }
 0x1b6   :  { %v4919_v49 = vadd.f32 %v4918_v44, %v1831_v38  ;;  %v1334_v38 = vsub.f32 %v310_v31, %v822_v32  ;;  %v1845_v44 = vmul.f32 %v1333_v33, %v1333_v33  ;;  %v323_v32 = vld [vmem:[#allocation2 + $0x710] sm:$0xff] }
 0x1b7   :  { %v835_v33 = vld [vmem:[#allocation5 + $0x710] sm:$0xff] }
 0x1b8   :  { %v4920_v54 = vadd.f32 %v4919_v49, %v1832_v43  ;;  %v1335_v43 = vsub.f32 %v311_v36, %v823_v37  ;;  %v1846_v49 = vmul.f32 %v1334_v38, %v1334_v38  ;;  %v324_v37 = vld [vmem:[#allocation2 + $0x718] sm:$0xff] }
 0x1b9   :  { %v836_v38 = vld [vmem:[#allocation5 + $0x718] sm:$0xff] }
 0x1ba   :  { %v4921_v59 = vadd.f32 %v4920_v54, %v1833_v48  ;;  %v1336_v48 = vsub.f32 %v312_v41, %v824_v42  ;;  %v1847_v54 = vmul.f32 %v1335_v43, %v1335_v43  ;;  %v325_v42 = vld [vmem:[#allocation2 + $0x720] sm:$0xff] }
 0x1bb   :  { %v837_v43 = vld [vmem:[#allocation5 + $0x720] sm:$0xff] }
 0x1bc   :  { %v4922_v0 = vadd.f32 %v4921_v59, %v1834_v53  ;;  %v1337_v53 = vsub.f32 %v313_v46, %v825_v47  ;;  %v1848_v59 = vmul.f32 %v1336_v48, %v1336_v48  ;;  %v326_v47 = vld [vmem:[#allocation2 + $0x728] sm:$0xff] }
 0x1bd   :  { %v838_v48 = vld [vmem:[#allocation5 + $0x728] sm:$0xff] }
 0x1be   :  { %v4923_v5 = vadd.f32 %v4922_v0, %v1835_v58  ;;  %v1338_v58 = vsub.f32 %v314_v51, %v826_v52  ;;  %v1849_v0 = vmul.f32 %v1337_v53, %v1337_v53  ;;  %v327_v52 = vld [vmem:[#allocation2 + $0x730] sm:$0xff] }
 0x1bf   :  { %v839_v53 = vld [vmem:[#allocation5 + $0x730] sm:$0xff] }
 0x1c0   :  { %v4924_v10 = vadd.f32 %v4923_v5, %v1836_v63  ;;  %v1339_v63 = vsub.f32 %v315_v56, %v827_v57  ;;  %v1850_v5 = vmul.f32 %v1338_v58, %v1338_v58  ;;  %v328_v57 = vld [vmem:[#allocation2 + $0x738] sm:$0xff] }
 0x1c1   :  { %v840_v58 = vld [vmem:[#allocation5 + $0x738] sm:$0xff] }
 0x1c2   :  { %v4925_v15 = vadd.f32 %v4924_v10, %v1837_v4  ;;  %v1340_v4 = vsub.f32 %v316_v61, %v828_v62  ;;  %v1851_v10 = vmul.f32 %v1339_v63, %v1339_v63  ;;  %v329_v62 = vld [vmem:[#allocation2 + $0x740] sm:$0xff] }
 0x1c3   :  { %v841_v63 = vld [vmem:[#allocation5 + $0x740] sm:$0xff] }
 0x1c4   :  { %v4926_v20 = vadd.f32 %v4925_v15, %v1838_v9  ;;  %v1341_v9 = vsub.f32 %v317_v2, %v829_v3  ;;  %v1852_v15 = vmul.f32 %v1340_v4, %v1340_v4  ;;  %v330_v3 = vld [vmem:[#allocation2 + $0x748] sm:$0xff] }
 0x1c5   :  { %v842_v4 = vld [vmem:[#allocation5 + $0x748] sm:$0xff] }
 0x1c6   :  { %v4927_v25 = vadd.f32 %v4926_v20, %v1839_v14  ;;  %v1342_v14 = vsub.f32 %v318_v7, %v830_v8  ;;  %v1853_v20 = vmul.f32 %v1341_v9, %v1341_v9  ;;  %v331_v8 = vld [vmem:[#allocation2 + $0x750] sm:$0xff] }
 0x1c7   :  { %v843_v9 = vld [vmem:[#allocation5 + $0x750] sm:$0xff] }
 0x1c8   :  { %v4928_v30 = vadd.f32 %v4927_v25, %v1840_v19  ;;  %v1343_v19 = vsub.f32 %v319_v12, %v831_v13  ;;  %v1854_v25 = vmul.f32 %v1342_v14, %v1342_v14  ;;  %v332_v13 = vld [vmem:[#allocation2 + $0x758] sm:$0xff] }
 0x1c9   :  { %v844_v14 = vld [vmem:[#allocation5 + $0x758] sm:$0xff] }
 0x1ca   :  { %v4929_v35 = vadd.f32 %v4928_v30, %v1841_v24  ;;  %v1344_v24 = vsub.f32 %v320_v17, %v832_v18  ;;  %v1855_v30 = vmul.f32 %v1343_v19, %v1343_v19  ;;  %v333_v18 = vld [vmem:[#allocation2 + $0x760] sm:$0xff] }
 0x1cb   :  { %v845_v19 = vld [vmem:[#allocation5 + $0x760] sm:$0xff] }
 0x1cc   :  { %v4930_v40 = vadd.f32 %v4929_v35, %v1842_v29  ;;  %v1345_v29 = vsub.f32 %v321_v22, %v833_v23  ;;  %v1856_v35 = vmul.f32 %v1344_v24, %v1344_v24  ;;  %v334_v23 = vld [vmem:[#allocation2 + $0x768] sm:$0xff] }
 0x1cd   :  { %v846_v24 = vld [vmem:[#allocation5 + $0x768] sm:$0xff] }
 0x1ce   :  { %v4931_v45 = vadd.f32 %v4930_v40, %v1843_v34  ;;  %v1346_v34 = vsub.f32 %v322_v27, %v834_v28  ;;  %v1857_v40 = vmul.f32 %v1345_v29, %v1345_v29  ;;  %v335_v28 = vld [vmem:[#allocation2 + $0x770] sm:$0xff] }
 0x1cf   :  { %v847_v29 = vld [vmem:[#allocation5 + $0x770] sm:$0xff] }
 0x1d0   :  { %v4932_v50 = vadd.f32 %v4931_v45, %v1844_v39  ;;  %v1347_v39 = vsub.f32 %v323_v32, %v835_v33  ;;  %v1858_v45 = vmul.f32 %v1346_v34, %v1346_v34  ;;  %v336_v33 = vld [vmem:[#allocation2 + $0x778] sm:$0xff] }
 0x1d1   :  { %v848_v34 = vld [vmem:[#allocation5 + $0x778] sm:$0xff] }
 0x1d2   :  { %v4933_v55 = vadd.f32 %v4932_v50, %v1845_v44  ;;  %v1348_v44 = vsub.f32 %v324_v37, %v836_v38  ;;  %v1859_v50 = vmul.f32 %v1347_v39, %v1347_v39  ;;  %v337_v38 = vld [vmem:[#allocation2 + $0x780] sm:$0xff] }
 0x1d3   :  { %v849_v39 = vld [vmem:[#allocation5 + $0x780] sm:$0xff] }
 0x1d4   :  { %v4934_v60 = vadd.f32 %v4933_v55, %v1846_v49  ;;  %v1349_v49 = vsub.f32 %v325_v42, %v837_v43  ;;  %v1860_v55 = vmul.f32 %v1348_v44, %v1348_v44  ;;  %v338_v43 = vld [vmem:[#allocation2 + $0x788] sm:$0xff] }
 0x1d5   :  { %v850_v44 = vld [vmem:[#allocation5 + $0x788] sm:$0xff] }
 0x1d6   :  { %v4935_v1 = vadd.f32 %v4934_v60, %v1847_v54  ;;  %v1350_v54 = vsub.f32 %v326_v47, %v838_v48  ;;  %v1861_v60 = vmul.f32 %v1349_v49, %v1349_v49  ;;  %v339_v48 = vld [vmem:[#allocation2 + $0x790] sm:$0xff] }
 0x1d7   :  { %v851_v49 = vld [vmem:[#allocation5 + $0x790] sm:$0xff] }
 0x1d8   :  { %v4936_v6 = vadd.f32 %v4935_v1, %v1848_v59  ;;  %v1351_v59 = vsub.f32 %v327_v52, %v839_v53  ;;  %v1862_v1 = vmul.f32 %v1350_v54, %v1350_v54  ;;  %v340_v53 = vld [vmem:[#allocation2 + $0x798] sm:$0xff] }
 0x1d9   :  { %v852_v54 = vld [vmem:[#allocation5 + $0x798] sm:$0xff] }
 0x1da   :  { %v4937_v11 = vadd.f32 %v4936_v6, %v1849_v0  ;;  %v1352_v0 = vsub.f32 %v328_v57, %v840_v58  ;;  %v1863_v6 = vmul.f32 %v1351_v59, %v1351_v59  ;;  %v341_v58 = vld [vmem:[#allocation2 + $0x7a0] sm:$0xff] }
 0x1db   :  { %v853_v59 = vld [vmem:[#allocation5 + $0x7a0] sm:$0xff] }
 0x1dc   :  { %v4938_v16 = vadd.f32 %v4937_v11, %v1850_v5  ;;  %v1353_v5 = vsub.f32 %v329_v62, %v841_v63  ;;  %v1864_v11 = vmul.f32 %v1352_v0, %v1352_v0  ;;  %v342_v63 = vld [vmem:[#allocation2 + $0x7a8] sm:$0xff] }
 0x1dd   :  { %v854_v0 = vld [vmem:[#allocation5 + $0x7a8] sm:$0xff] }
 0x1de   :  { %v4939_v21 = vadd.f32 %v4938_v16, %v1851_v10  ;;  %v1354_v10 = vsub.f32 %v330_v3, %v842_v4  ;;  %v1865_v16 = vmul.f32 %v1353_v5, %v1353_v5  ;;  %v343_v4 = vld [vmem:[#allocation2 + $0x7b0] sm:$0xff] }
 0x1df   :  { %v855_v5 = vld [vmem:[#allocation5 + $0x7b0] sm:$0xff] }
 0x1e0   :  { %v4940_v26 = vadd.f32 %v4939_v21, %v1852_v15  ;;  %v1355_v15 = vsub.f32 %v331_v8, %v843_v9  ;;  %v1866_v21 = vmul.f32 %v1354_v10, %v1354_v10  ;;  %v344_v9 = vld [vmem:[#allocation2 + $0x7b8] sm:$0xff] }
 0x1e1   :  { %v856_v10 = vld [vmem:[#allocation5 + $0x7b8] sm:$0xff] }
 0x1e2   :  { %v4941_v31 = vadd.f32 %v4940_v26, %v1853_v20  ;;  %v1356_v20 = vsub.f32 %v332_v13, %v844_v14  ;;  %v1867_v26 = vmul.f32 %v1355_v15, %v1355_v15  ;;  %v345_v14 = vld [vmem:[#allocation2 + $0x7c0] sm:$0xff] }
 0x1e3   :  { %v857_v15 = vld [vmem:[#allocation5 + $0x7c0] sm:$0xff] }
 0x1e4   :  { %v4942_v36 = vadd.f32 %v4941_v31, %v1854_v25  ;;  %v1357_v25 = vsub.f32 %v333_v18, %v845_v19  ;;  %v1868_v31 = vmul.f32 %v1356_v20, %v1356_v20  ;;  %v346_v19 = vld [vmem:[#allocation2 + $0x7c8] sm:$0xff] }
 0x1e5   :  { %v858_v20 = vld [vmem:[#allocation5 + $0x7c8] sm:$0xff] }
 0x1e6   :  { %v4943_v41 = vadd.f32 %v4942_v36, %v1855_v30  ;;  %v1358_v30 = vsub.f32 %v334_v23, %v846_v24  ;;  %v1869_v36 = vmul.f32 %v1357_v25, %v1357_v25  ;;  %v347_v24 = vld [vmem:[#allocation2 + $0x7d0] sm:$0xff] }
 0x1e7   :  { %v859_v25 = vld [vmem:[#allocation5 + $0x7d0] sm:$0xff] }
 0x1e8   :  { %v4944_v46 = vadd.f32 %v4943_v41, %v1856_v35  ;;  %v1359_v35 = vsub.f32 %v335_v28, %v847_v29  ;;  %v1870_v41 = vmul.f32 %v1358_v30, %v1358_v30  ;;  %v348_v29 = vld [vmem:[#allocation2 + $0x7d8] sm:$0xff] }
 0x1e9   :  { %v860_v30 = vld [vmem:[#allocation5 + $0x7d8] sm:$0xff] }
 0x1ea   :  { %v4945_v51 = vadd.f32 %v4944_v46, %v1857_v40  ;;  %v1360_v40 = vsub.f32 %v336_v33, %v848_v34  ;;  %v1871_v46 = vmul.f32 %v1359_v35, %v1359_v35  ;;  %v349_v34 = vld [vmem:[#allocation2 + $0x7e0] sm:$0xff] }
 0x1eb   :  { %v861_v35 = vld [vmem:[#allocation5 + $0x7e0] sm:$0xff] }
 0x1ec   :  { %v4946_v56 = vadd.f32 %v4945_v51, %v1858_v45  ;;  %v1361_v45 = vsub.f32 %v337_v38, %v849_v39  ;;  %v1872_v51 = vmul.f32 %v1360_v40, %v1360_v40  ;;  %v350_v39 = vld [vmem:[#allocation2 + $0x7e8] sm:$0xff] }
 0x1ed   :  { %v862_v40 = vld [vmem:[#allocation5 + $0x7e8] sm:$0xff] }
 0x1ee   :  { %v4947_v61 = vadd.f32 %v4946_v56, %v1859_v50  ;;  %v1362_v50 = vsub.f32 %v338_v43, %v850_v44  ;;  %v1873_v56 = vmul.f32 %v1361_v45, %v1361_v45  ;;  %v351_v44 = vld [vmem:[#allocation2 + $0x7f0] sm:$0xff] }
 0x1ef   :  { %v863_v45 = vld [vmem:[#allocation5 + $0x7f0] sm:$0xff] }
 0x1f0   :  { %v4948_v2 = vadd.f32 %v4947_v61, %v1860_v55  ;;  %v1363_v55 = vsub.f32 %v339_v48, %v851_v49  ;;  %v1874_v61 = vmul.f32 %v1362_v50, %v1362_v50  ;;  %v352_v49 = vld [vmem:[#allocation2 + $0x7f8] sm:$0xff] }
 0x1f1   :  { %v864_v50 = vld [vmem:[#allocation5 + $0x7f8] sm:$0xff] }
 0x1f2   :  { %v4949_v7 = vadd.f32 %v4948_v2, %v1861_v60  ;;  %v1364_v60 = vsub.f32 %v340_v53, %v852_v54  ;;  %v1875_v2 = vmul.f32 %v1363_v55, %v1363_v55  ;;  %v353_v54 = vld [vmem:[#allocation2 + $0x800] sm:$0xff] }
 0x1f3   :  { %v865_v55 = vld [vmem:[#allocation5 + $0x800] sm:$0xff] }
 0x1f4   :  { %v4950_v12 = vadd.f32 %v4949_v7, %v1862_v1  ;;  %v1365_v1 = vsub.f32 %v341_v58, %v853_v59  ;;  %v1876_v7 = vmul.f32 %v1364_v60, %v1364_v60  ;;  %v354_v59 = vld [vmem:[#allocation2 + $0x808] sm:$0xff] }
 0x1f5   :  { %v866_v60 = vld [vmem:[#allocation5 + $0x808] sm:$0xff] }
 0x1f6   :  { %v4951_v17 = vadd.f32 %v4950_v12, %v1863_v6  ;;  %v1366_v6 = vsub.f32 %v342_v63, %v854_v0  ;;  %v1877_v12 = vmul.f32 %v1365_v1, %v1365_v1  ;;  %v355_v0 = vld [vmem:[#allocation2 + $0x810] sm:$0xff] }
 0x1f7   :  { %v867_v1 = vld [vmem:[#allocation5 + $0x810] sm:$0xff] }
 0x1f8   :  { %v4952_v22 = vadd.f32 %v4951_v17, %v1864_v11  ;;  %v1367_v11 = vsub.f32 %v343_v4, %v855_v5  ;;  %v1878_v17 = vmul.f32 %v1366_v6, %v1366_v6  ;;  %v356_v5 = vld [vmem:[#allocation2 + $0x818] sm:$0xff] }
 0x1f9   :  { %v868_v6 = vld [vmem:[#allocation5 + $0x818] sm:$0xff] }
 0x1fa   :  { %v4953_v27 = vadd.f32 %v4952_v22, %v1865_v16  ;;  %v1368_v16 = vsub.f32 %v344_v9, %v856_v10  ;;  %v1879_v22 = vmul.f32 %v1367_v11, %v1367_v11  ;;  %v357_v10 = vld [vmem:[#allocation2 + $0x820] sm:$0xff] }
 0x1fb   :  { %v869_v11 = vld [vmem:[#allocation5 + $0x820] sm:$0xff] }
 0x1fc   :  { %v4954_v32 = vadd.f32 %v4953_v27, %v1866_v21  ;;  %v1369_v21 = vsub.f32 %v345_v14, %v857_v15  ;;  %v1880_v27 = vmul.f32 %v1368_v16, %v1368_v16  ;;  %v358_v15 = vld [vmem:[#allocation2 + $0x828] sm:$0xff] }
 0x1fd   :  { %v870_v16 = vld [vmem:[#allocation5 + $0x828] sm:$0xff] }
 0x1fe   :  { %v4955_v37 = vadd.f32 %v4954_v32, %v1867_v26  ;;  %v1370_v26 = vsub.f32 %v346_v19, %v858_v20  ;;  %v1881_v32 = vmul.f32 %v1369_v21, %v1369_v21  ;;  %v359_v20 = vld [vmem:[#allocation2 + $0x830] sm:$0xff] }
 0x1ff   :  { %v871_v21 = vld [vmem:[#allocation5 + $0x830] sm:$0xff] }
 0x200   :  { %v4956_v42 = vadd.f32 %v4955_v37, %v1868_v31  ;;  %v1371_v31 = vsub.f32 %v347_v24, %v859_v25  ;;  %v1882_v37 = vmul.f32 %v1370_v26, %v1370_v26  ;;  %v360_v25 = vld [vmem:[#allocation2 + $0x838] sm:$0xff] }
 0x201   :  { %v872_v26 = vld [vmem:[#allocation5 + $0x838] sm:$0xff] }
 0x202   :  { %v4957_v47 = vadd.f32 %v4956_v42, %v1869_v36  ;;  %v1372_v36 = vsub.f32 %v348_v29, %v860_v30  ;;  %v1883_v42 = vmul.f32 %v1371_v31, %v1371_v31  ;;  %v361_v30 = vld [vmem:[#allocation2 + $0x840] sm:$0xff] }
 0x203   :  { %v873_v31 = vld [vmem:[#allocation5 + $0x840] sm:$0xff] }
 0x204   :  { %v4958_v52 = vadd.f32 %v4957_v47, %v1870_v41  ;;  %v1373_v41 = vsub.f32 %v349_v34, %v861_v35  ;;  %v1884_v47 = vmul.f32 %v1372_v36, %v1372_v36  ;;  %v362_v35 = vld [vmem:[#allocation2 + $0x848] sm:$0xff] }
 0x205   :  { %v874_v36 = vld [vmem:[#allocation5 + $0x848] sm:$0xff] }
 0x206   :  { %v4959_v57 = vadd.f32 %v4958_v52, %v1871_v46  ;;  %v1374_v46 = vsub.f32 %v350_v39, %v862_v40  ;;  %v1885_v52 = vmul.f32 %v1373_v41, %v1373_v41  ;;  %v363_v40 = vld [vmem:[#allocation2 + $0x850] sm:$0xff] }
 0x207   :  { %v875_v41 = vld [vmem:[#allocation5 + $0x850] sm:$0xff] }
 0x208   :  { %v4960_v62 = vadd.f32 %v4959_v57, %v1872_v51  ;;  %v1375_v51 = vsub.f32 %v351_v44, %v863_v45  ;;  %v1886_v57 = vmul.f32 %v1374_v46, %v1374_v46  ;;  %v364_v45 = vld [vmem:[#allocation2 + $0x858] sm:$0xff] }
 0x209   :  { %v876_v46 = vld [vmem:[#allocation5 + $0x858] sm:$0xff] }
 0x20a   :  { %v4961_v3 = vadd.f32 %v4960_v62, %v1873_v56  ;;  %v1376_v56 = vsub.f32 %v352_v49, %v864_v50  ;;  %v1887_v62 = vmul.f32 %v1375_v51, %v1375_v51  ;;  %v365_v50 = vld [vmem:[#allocation2 + $0x860] sm:$0xff] }
 0x20b   :  { %v877_v51 = vld [vmem:[#allocation5 + $0x860] sm:$0xff] }
 0x20c   :  { %v4962_v8 = vadd.f32 %v4961_v3, %v1874_v61  ;;  %v1377_v61 = vsub.f32 %v353_v54, %v865_v55  ;;  %v1888_v3 = vmul.f32 %v1376_v56, %v1376_v56  ;;  %v366_v55 = vld [vmem:[#allocation2 + $0x868] sm:$0xff] }
 0x20d   :  { %v878_v56 = vld [vmem:[#allocation5 + $0x868] sm:$0xff] }
 0x20e   :  { %v4963_v13 = vadd.f32 %v4962_v8, %v1875_v2  ;;  %v1378_v2 = vsub.f32 %v354_v59, %v866_v60  ;;  %v1889_v8 = vmul.f32 %v1377_v61, %v1377_v61  ;;  %v367_v60 = vld [vmem:[#allocation2 + $0x870] sm:$0xff] }
 0x20f   :  { %v879_v61 = vld [vmem:[#allocation5 + $0x870] sm:$0xff] }
 0x210   :  { %v4964_v18 = vadd.f32 %v4963_v13, %v1876_v7  ;;  %v1379_v7 = vsub.f32 %v355_v0, %v867_v1  ;;  %v1890_v13 = vmul.f32 %v1378_v2, %v1378_v2  ;;  %v368_v1 = vld [vmem:[#allocation2 + $0x878] sm:$0xff] }
 0x211   :  { %v880_v2 = vld [vmem:[#allocation5 + $0x878] sm:$0xff] }
 0x212   :  { %v4965_v23 = vadd.f32 %v4964_v18, %v1877_v12  ;;  %v1380_v12 = vsub.f32 %v356_v5, %v868_v6  ;;  %v1891_v18 = vmul.f32 %v1379_v7, %v1379_v7  ;;  %v369_v6 = vld [vmem:[#allocation2 + $0x880] sm:$0xff] }
 0x213   :  { %v881_v7 = vld [vmem:[#allocation5 + $0x880] sm:$0xff] }
 0x214   :  { %v4966_v28 = vadd.f32 %v4965_v23, %v1878_v17  ;;  %v1381_v17 = vsub.f32 %v357_v10, %v869_v11  ;;  %v1892_v23 = vmul.f32 %v1380_v12, %v1380_v12  ;;  %v370_v11 = vld [vmem:[#allocation2 + $0x888] sm:$0xff] }
 0x215   :  { %v882_v12 = vld [vmem:[#allocation5 + $0x888] sm:$0xff] }
 0x216   :  { %v4967_v33 = vadd.f32 %v4966_v28, %v1879_v22  ;;  %v1382_v22 = vsub.f32 %v358_v15, %v870_v16  ;;  %v1893_v28 = vmul.f32 %v1381_v17, %v1381_v17  ;;  %v371_v16 = vld [vmem:[#allocation2 + $0x890] sm:$0xff] }
 0x217   :  { %v883_v17 = vld [vmem:[#allocation5 + $0x890] sm:$0xff] }
 0x218   :  { %v4968_v38 = vadd.f32 %v4967_v33, %v1880_v27  ;;  %v1383_v27 = vsub.f32 %v359_v20, %v871_v21  ;;  %v1894_v33 = vmul.f32 %v1382_v22, %v1382_v22  ;;  %v372_v21 = vld [vmem:[#allocation2 + $0x898] sm:$0xff] }
 0x219   :  { %v884_v22 = vld [vmem:[#allocation5 + $0x898] sm:$0xff] }
 0x21a   :  { %v4969_v43 = vadd.f32 %v4968_v38, %v1881_v32  ;;  %v1384_v32 = vsub.f32 %v360_v25, %v872_v26  ;;  %v1895_v38 = vmul.f32 %v1383_v27, %v1383_v27  ;;  %v373_v26 = vld [vmem:[#allocation2 + $0x8a0] sm:$0xff] }
 0x21b   :  { %v885_v27 = vld [vmem:[#allocation5 + $0x8a0] sm:$0xff] }
 0x21c   :  { %v4970_v48 = vadd.f32 %v4969_v43, %v1882_v37  ;;  %v1385_v37 = vsub.f32 %v361_v30, %v873_v31  ;;  %v1896_v43 = vmul.f32 %v1384_v32, %v1384_v32  ;;  %v374_v31 = vld [vmem:[#allocation2 + $0x8a8] sm:$0xff] }
 0x21d   :  { %v886_v32 = vld [vmem:[#allocation5 + $0x8a8] sm:$0xff] }
 0x21e   :  { %v4971_v53 = vadd.f32 %v4970_v48, %v1883_v42  ;;  %v1386_v42 = vsub.f32 %v362_v35, %v874_v36  ;;  %v1897_v48 = vmul.f32 %v1385_v37, %v1385_v37  ;;  %v375_v36 = vld [vmem:[#allocation2 + $0x8b0] sm:$0xff] }
 0x21f   :  { %v887_v37 = vld [vmem:[#allocation5 + $0x8b0] sm:$0xff] }
 0x220   :  { %v4972_v58 = vadd.f32 %v4971_v53, %v1884_v47  ;;  %v1387_v47 = vsub.f32 %v363_v40, %v875_v41  ;;  %v1898_v53 = vmul.f32 %v1386_v42, %v1386_v42  ;;  %v376_v41 = vld [vmem:[#allocation2 + $0x8b8] sm:$0xff] }
 0x221   :  { %v888_v42 = vld [vmem:[#allocation5 + $0x8b8] sm:$0xff] }
 0x222   :  { %v4973_v63 = vadd.f32 %v4972_v58, %v1885_v52  ;;  %v1388_v52 = vsub.f32 %v364_v45, %v876_v46  ;;  %v1899_v58 = vmul.f32 %v1387_v47, %v1387_v47  ;;  %v377_v46 = vld [vmem:[#allocation2 + $0x8c0] sm:$0xff] }
 0x223   :  { %v889_v47 = vld [vmem:[#allocation5 + $0x8c0] sm:$0xff] }
 0x224   :  { %v4974_v4 = vadd.f32 %v4973_v63, %v1886_v57  ;;  %v1389_v57 = vsub.f32 %v365_v50, %v877_v51  ;;  %v1900_v63 = vmul.f32 %v1388_v52, %v1388_v52  ;;  %v378_v51 = vld [vmem:[#allocation2 + $0x8c8] sm:$0xff] }
 0x225   :  { %v890_v52 = vld [vmem:[#allocation5 + $0x8c8] sm:$0xff] }
 0x226   :  { %v4975_v9 = vadd.f32 %v4974_v4, %v1887_v62  ;;  %v1390_v62 = vsub.f32 %v366_v55, %v878_v56  ;;  %v1901_v4 = vmul.f32 %v1389_v57, %v1389_v57  ;;  %v379_v56 = vld [vmem:[#allocation2 + $0x8d0] sm:$0xff] }
 0x227   :  { %v891_v57 = vld [vmem:[#allocation5 + $0x8d0] sm:$0xff] }
 0x228   :  { %v4976_v14 = vadd.f32 %v4975_v9, %v1888_v3  ;;  %v1391_v3 = vsub.f32 %v367_v60, %v879_v61  ;;  %v1902_v9 = vmul.f32 %v1390_v62, %v1390_v62  ;;  %v380_v61 = vld [vmem:[#allocation2 + $0x8d8] sm:$0xff] }
 0x229   :  { %v892_v62 = vld [vmem:[#allocation5 + $0x8d8] sm:$0xff] }
 0x22a   :  { %v4977_v19 = vadd.f32 %v4976_v14, %v1889_v8  ;;  %v1392_v8 = vsub.f32 %v368_v1, %v880_v2  ;;  %v1903_v14 = vmul.f32 %v1391_v3, %v1391_v3  ;;  %v381_v2 = vld [vmem:[#allocation2 + $0x8e0] sm:$0xff] }
 0x22b   :  { %v893_v3 = vld [vmem:[#allocation5 + $0x8e0] sm:$0xff] }
 0x22c   :  { %v4978_v24 = vadd.f32 %v4977_v19, %v1890_v13  ;;  %v1393_v13 = vsub.f32 %v369_v6, %v881_v7  ;;  %v1904_v19 = vmul.f32 %v1392_v8, %v1392_v8  ;;  %v382_v7 = vld [vmem:[#allocation2 + $0x8e8] sm:$0xff] }
 0x22d   :  { %v894_v8 = vld [vmem:[#allocation5 + $0x8e8] sm:$0xff] }
 0x22e   :  { %v4979_v29 = vadd.f32 %v4978_v24, %v1891_v18  ;;  %v1394_v18 = vsub.f32 %v370_v11, %v882_v12  ;;  %v1905_v24 = vmul.f32 %v1393_v13, %v1393_v13  ;;  %v383_v12 = vld [vmem:[#allocation2 + $0x8f0] sm:$0xff] }
 0x22f   :  { %v895_v13 = vld [vmem:[#allocation5 + $0x8f0] sm:$0xff] }
 0x230   :  { %v4980_v34 = vadd.f32 %v4979_v29, %v1892_v23  ;;  %v1395_v23 = vsub.f32 %v371_v16, %v883_v17  ;;  %v1906_v29 = vmul.f32 %v1394_v18, %v1394_v18  ;;  %v384_v17 = vld [vmem:[#allocation2 + $0x8f8] sm:$0xff] }
 0x231   :  { %v896_v18 = vld [vmem:[#allocation5 + $0x8f8] sm:$0xff] }
 0x232   :  { %v4981_v39 = vadd.f32 %v4980_v34, %v1893_v28  ;;  %v1396_v28 = vsub.f32 %v372_v21, %v884_v22  ;;  %v1907_v34 = vmul.f32 %v1395_v23, %v1395_v23  ;;  %v385_v22 = vld [vmem:[#allocation2 + $0x900] sm:$0xff] }
 0x233   :  { %v897_v23 = vld [vmem:[#allocation5 + $0x900] sm:$0xff] }
 0x234   :  { %v4982_v44 = vadd.f32 %v4981_v39, %v1894_v33  ;;  %v1397_v33 = vsub.f32 %v373_v26, %v885_v27  ;;  %v1908_v39 = vmul.f32 %v1396_v28, %v1396_v28  ;;  %v386_v27 = vld [vmem:[#allocation2 + $0x908] sm:$0xff] }
 0x235   :  { %v898_v28 = vld [vmem:[#allocation5 + $0x908] sm:$0xff] }
 0x236   :  { %v4983_v49 = vadd.f32 %v4982_v44, %v1895_v38  ;;  %v1398_v38 = vsub.f32 %v374_v31, %v886_v32  ;;  %v1909_v44 = vmul.f32 %v1397_v33, %v1397_v33  ;;  %v387_v32 = vld [vmem:[#allocation2 + $0x910] sm:$0xff] }
 0x237   :  { %v899_v33 = vld [vmem:[#allocation5 + $0x910] sm:$0xff] }
 0x238   :  { %v4984_v54 = vadd.f32 %v4983_v49, %v1896_v43  ;;  %v1399_v43 = vsub.f32 %v375_v36, %v887_v37  ;;  %v1910_v49 = vmul.f32 %v1398_v38, %v1398_v38  ;;  %v388_v37 = vld [vmem:[#allocation2 + $0x918] sm:$0xff] }
 0x239   :  { %v900_v38 = vld [vmem:[#allocation5 + $0x918] sm:$0xff] }
 0x23a   :  { %v4985_v59 = vadd.f32 %v4984_v54, %v1897_v48  ;;  %v1400_v48 = vsub.f32 %v376_v41, %v888_v42  ;;  %v1911_v54 = vmul.f32 %v1399_v43, %v1399_v43  ;;  %v389_v42 = vld [vmem:[#allocation2 + $0x920] sm:$0xff] }
 0x23b   :  { %v901_v43 = vld [vmem:[#allocation5 + $0x920] sm:$0xff] }
 0x23c   :  { %v4986_v0 = vadd.f32 %v4985_v59, %v1898_v53  ;;  %v1401_v53 = vsub.f32 %v377_v46, %v889_v47  ;;  %v1912_v59 = vmul.f32 %v1400_v48, %v1400_v48  ;;  %v390_v47 = vld [vmem:[#allocation2 + $0x928] sm:$0xff] }
 0x23d   :  { %v902_v48 = vld [vmem:[#allocation5 + $0x928] sm:$0xff] }
 0x23e   :  { %v4987_v5 = vadd.f32 %v4986_v0, %v1899_v58  ;;  %v1402_v58 = vsub.f32 %v378_v51, %v890_v52  ;;  %v1913_v0 = vmul.f32 %v1401_v53, %v1401_v53  ;;  %v391_v52 = vld [vmem:[#allocation2 + $0x930] sm:$0xff] }
 0x23f   :  { %v903_v53 = vld [vmem:[#allocation5 + $0x930] sm:$0xff] }
 0x240   :  { %v4988_v10 = vadd.f32 %v4987_v5, %v1900_v63  ;;  %v1403_v63 = vsub.f32 %v379_v56, %v891_v57  ;;  %v1914_v5 = vmul.f32 %v1402_v58, %v1402_v58  ;;  %v392_v57 = vld [vmem:[#allocation2 + $0x938] sm:$0xff] }
 0x241   :  { %v904_v58 = vld [vmem:[#allocation5 + $0x938] sm:$0xff] }
 0x242   :  { %v4989_v15 = vadd.f32 %v4988_v10, %v1901_v4  ;;  %v1404_v4 = vsub.f32 %v380_v61, %v892_v62  ;;  %v1915_v10 = vmul.f32 %v1403_v63, %v1403_v63  ;;  %v393_v62 = vld [vmem:[#allocation2 + $0x940] sm:$0xff] }
 0x243   :  { %v905_v63 = vld [vmem:[#allocation5 + $0x940] sm:$0xff] }
 0x244   :  { %v4990_v20 = vadd.f32 %v4989_v15, %v1902_v9  ;;  %v1405_v9 = vsub.f32 %v381_v2, %v893_v3  ;;  %v1916_v15 = vmul.f32 %v1404_v4, %v1404_v4  ;;  %v394_v3 = vld [vmem:[#allocation2 + $0x948] sm:$0xff] }
 0x245   :  { %v906_v4 = vld [vmem:[#allocation5 + $0x948] sm:$0xff] }
 0x246   :  { %v4991_v25 = vadd.f32 %v4990_v20, %v1903_v14  ;;  %v1406_v14 = vsub.f32 %v382_v7, %v894_v8  ;;  %v1917_v20 = vmul.f32 %v1405_v9, %v1405_v9  ;;  %v395_v8 = vld [vmem:[#allocation2 + $0x950] sm:$0xff] }
 0x247   :  { %v907_v9 = vld [vmem:[#allocation5 + $0x950] sm:$0xff] }
 0x248   :  { %v4992_v30 = vadd.f32 %v4991_v25, %v1904_v19  ;;  %v1407_v19 = vsub.f32 %v383_v12, %v895_v13  ;;  %v1918_v25 = vmul.f32 %v1406_v14, %v1406_v14  ;;  %v396_v13 = vld [vmem:[#allocation2 + $0x958] sm:$0xff] }
 0x249   :  { %v908_v14 = vld [vmem:[#allocation5 + $0x958] sm:$0xff] }
 0x24a   :  { %v4993_v35 = vadd.f32 %v4992_v30, %v1905_v24  ;;  %v1408_v24 = vsub.f32 %v384_v17, %v896_v18  ;;  %v1919_v30 = vmul.f32 %v1407_v19, %v1407_v19  ;;  %v397_v18 = vld [vmem:[#allocation2 + $0x960] sm:$0xff] }
 0x24b   :  { %v909_v19 = vld [vmem:[#allocation5 + $0x960] sm:$0xff] }
 0x24c   :  { %v4994_v40 = vadd.f32 %v4993_v35, %v1906_v29  ;;  %v1409_v29 = vsub.f32 %v385_v22, %v897_v23  ;;  %v1920_v35 = vmul.f32 %v1408_v24, %v1408_v24  ;;  %v398_v23 = vld [vmem:[#allocation2 + $0x968] sm:$0xff] }
 0x24d   :  { %v910_v24 = vld [vmem:[#allocation5 + $0x968] sm:$0xff] }
 0x24e   :  { %v4995_v45 = vadd.f32 %v4994_v40, %v1907_v34  ;;  %v1410_v34 = vsub.f32 %v386_v27, %v898_v28  ;;  %v1921_v40 = vmul.f32 %v1409_v29, %v1409_v29  ;;  %v399_v28 = vld [vmem:[#allocation2 + $0x970] sm:$0xff] }
 0x24f   :  { %v911_v29 = vld [vmem:[#allocation5 + $0x970] sm:$0xff] }
 0x250   :  { %v4996_v50 = vadd.f32 %v4995_v45, %v1908_v39  ;;  %v1411_v39 = vsub.f32 %v387_v32, %v899_v33  ;;  %v1922_v45 = vmul.f32 %v1410_v34, %v1410_v34  ;;  %v400_v33 = vld [vmem:[#allocation2 + $0x978] sm:$0xff] }
 0x251   :  { %v912_v34 = vld [vmem:[#allocation5 + $0x978] sm:$0xff] }
 0x252   :  { %v4997_v55 = vadd.f32 %v4996_v50, %v1909_v44  ;;  %v1412_v44 = vsub.f32 %v388_v37, %v900_v38  ;;  %v1923_v50 = vmul.f32 %v1411_v39, %v1411_v39  ;;  %v401_v38 = vld [vmem:[#allocation2 + $0x980] sm:$0xff] }
 0x253   :  { %v913_v39 = vld [vmem:[#allocation5 + $0x980] sm:$0xff] }
 0x254   :  { %v4998_v60 = vadd.f32 %v4997_v55, %v1910_v49  ;;  %v1413_v49 = vsub.f32 %v389_v42, %v901_v43  ;;  %v1924_v55 = vmul.f32 %v1412_v44, %v1412_v44  ;;  %v402_v43 = vld [vmem:[#allocation2 + $0x988] sm:$0xff] }
 0x255   :  { %v914_v44 = vld [vmem:[#allocation5 + $0x988] sm:$0xff] }
 0x256   :  { %v4999_v1 = vadd.f32 %v4998_v60, %v1911_v54  ;;  %v1414_v54 = vsub.f32 %v390_v47, %v902_v48  ;;  %v1925_v60 = vmul.f32 %v1413_v49, %v1413_v49  ;;  %v403_v48 = vld [vmem:[#allocation2 + $0x990] sm:$0xff] }
 0x257   :  { %v915_v49 = vld [vmem:[#allocation5 + $0x990] sm:$0xff] }
 0x258   :  { %v5000_v6 = vadd.f32 %v4999_v1, %v1912_v59  ;;  %v1415_v59 = vsub.f32 %v391_v52, %v903_v53  ;;  %v1926_v1 = vmul.f32 %v1414_v54, %v1414_v54  ;;  %v404_v53 = vld [vmem:[#allocation2 + $0x998] sm:$0xff] }
 0x259   :  { %v916_v54 = vld [vmem:[#allocation5 + $0x998] sm:$0xff] }
 0x25a   :  { %v5001_v11 = vadd.f32 %v5000_v6, %v1913_v0  ;;  %v1416_v0 = vsub.f32 %v392_v57, %v904_v58  ;;  %v1927_v6 = vmul.f32 %v1415_v59, %v1415_v59  ;;  %v405_v58 = vld [vmem:[#allocation2 + $0x9a0] sm:$0xff] }
 0x25b   :  { %v917_v59 = vld [vmem:[#allocation5 + $0x9a0] sm:$0xff] }
 0x25c   :  { %v5002_v16 = vadd.f32 %v5001_v11, %v1914_v5  ;;  %v1417_v5 = vsub.f32 %v393_v62, %v905_v63  ;;  %v1928_v11 = vmul.f32 %v1416_v0, %v1416_v0  ;;  %v406_v63 = vld [vmem:[#allocation2 + $0x9a8] sm:$0xff] }
 0x25d   :  { %v918_v0 = vld [vmem:[#allocation5 + $0x9a8] sm:$0xff] }
 0x25e   :  { %v5003_v21 = vadd.f32 %v5002_v16, %v1915_v10  ;;  %v1418_v10 = vsub.f32 %v394_v3, %v906_v4  ;;  %v1929_v16 = vmul.f32 %v1417_v5, %v1417_v5  ;;  %v407_v4 = vld [vmem:[#allocation2 + $0x9b0] sm:$0xff] }
 0x25f   :  { %v919_v5 = vld [vmem:[#allocation5 + $0x9b0] sm:$0xff] }
 0x260   :  { %v5004_v26 = vadd.f32 %v5003_v21, %v1916_v15  ;;  %v1419_v15 = vsub.f32 %v395_v8, %v907_v9  ;;  %v1930_v21 = vmul.f32 %v1418_v10, %v1418_v10  ;;  %v408_v9 = vld [vmem:[#allocation2 + $0x9b8] sm:$0xff] }
 0x261   :  { %v920_v10 = vld [vmem:[#allocation5 + $0x9b8] sm:$0xff] }
 0x262   :  { %v5005_v31 = vadd.f32 %v5004_v26, %v1917_v20  ;;  %v1420_v20 = vsub.f32 %v396_v13, %v908_v14  ;;  %v1931_v26 = vmul.f32 %v1419_v15, %v1419_v15  ;;  %v409_v14 = vld [vmem:[#allocation2 + $0x9c0] sm:$0xff] }
 0x263   :  { %v921_v15 = vld [vmem:[#allocation5 + $0x9c0] sm:$0xff] }
 0x264   :  { %v5006_v36 = vadd.f32 %v5005_v31, %v1918_v25  ;;  %v1421_v25 = vsub.f32 %v397_v18, %v909_v19  ;;  %v1932_v31 = vmul.f32 %v1420_v20, %v1420_v20  ;;  %v410_v19 = vld [vmem:[#allocation2 + $0x9c8] sm:$0xff] }
 0x265   :  { %v922_v20 = vld [vmem:[#allocation5 + $0x9c8] sm:$0xff] }
 0x266   :  { %v5007_v41 = vadd.f32 %v5006_v36, %v1919_v30  ;;  %v1422_v30 = vsub.f32 %v398_v23, %v910_v24  ;;  %v1933_v36 = vmul.f32 %v1421_v25, %v1421_v25  ;;  %v411_v24 = vld [vmem:[#allocation2 + $0x9d0] sm:$0xff] }
 0x267   :  { %v923_v25 = vld [vmem:[#allocation5 + $0x9d0] sm:$0xff] }
 0x268   :  { %v5008_v46 = vadd.f32 %v5007_v41, %v1920_v35  ;;  %v1423_v35 = vsub.f32 %v399_v28, %v911_v29  ;;  %v1934_v41 = vmul.f32 %v1422_v30, %v1422_v30  ;;  %v412_v29 = vld [vmem:[#allocation2 + $0x9d8] sm:$0xff] }
 0x269   :  { %v924_v30 = vld [vmem:[#allocation5 + $0x9d8] sm:$0xff] }
 0x26a   :  { %v5009_v51 = vadd.f32 %v5008_v46, %v1921_v40  ;;  %v1424_v40 = vsub.f32 %v400_v33, %v912_v34  ;;  %v1935_v46 = vmul.f32 %v1423_v35, %v1423_v35  ;;  %v413_v34 = vld [vmem:[#allocation2 + $0x9e0] sm:$0xff] }
 0x26b   :  { %v925_v35 = vld [vmem:[#allocation5 + $0x9e0] sm:$0xff] }
 0x26c   :  { %v5010_v56 = vadd.f32 %v5009_v51, %v1922_v45  ;;  %v1425_v45 = vsub.f32 %v401_v38, %v913_v39  ;;  %v1936_v51 = vmul.f32 %v1424_v40, %v1424_v40  ;;  %v414_v39 = vld [vmem:[#allocation2 + $0x9e8] sm:$0xff] }
 0x26d   :  { %v926_v40 = vld [vmem:[#allocation5 + $0x9e8] sm:$0xff] }
 0x26e   :  { %v5011_v61 = vadd.f32 %v5010_v56, %v1923_v50  ;;  %v1426_v50 = vsub.f32 %v402_v43, %v914_v44  ;;  %v1937_v56 = vmul.f32 %v1425_v45, %v1425_v45  ;;  %v415_v44 = vld [vmem:[#allocation2 + $0x9f0] sm:$0xff] }
 0x26f   :  { %v927_v45 = vld [vmem:[#allocation5 + $0x9f0] sm:$0xff] }
 0x270   :  { %v5012_v2 = vadd.f32 %v5011_v61, %v1924_v55  ;;  %v1427_v55 = vsub.f32 %v403_v48, %v915_v49  ;;  %v1938_v61 = vmul.f32 %v1426_v50, %v1426_v50  ;;  %v416_v49 = vld [vmem:[#allocation2 + $0x9f8] sm:$0xff] }
 0x271   :  { %v928_v50 = vld [vmem:[#allocation5 + $0x9f8] sm:$0xff] }
 0x272   :  { %v5013_v7 = vadd.f32 %v5012_v2, %v1925_v60  ;;  %v1428_v60 = vsub.f32 %v404_v53, %v916_v54  ;;  %v1939_v2 = vmul.f32 %v1427_v55, %v1427_v55  ;;  %v417_v54 = vld [vmem:[#allocation2 + $0xa00] sm:$0xff] }
 0x273   :  { %v929_v55 = vld [vmem:[#allocation5 + $0xa00] sm:$0xff] }
 0x274   :  { %v5014_v12 = vadd.f32 %v5013_v7, %v1926_v1  ;;  %v1429_v1 = vsub.f32 %v405_v58, %v917_v59  ;;  %v1940_v7 = vmul.f32 %v1428_v60, %v1428_v60  ;;  %v418_v59 = vld [vmem:[#allocation2 + $0xa08] sm:$0xff] }
 0x275   :  { %v930_v60 = vld [vmem:[#allocation5 + $0xa08] sm:$0xff] }
 0x276   :  { %v5015_v17 = vadd.f32 %v5014_v12, %v1927_v6  ;;  %v1430_v6 = vsub.f32 %v406_v63, %v918_v0  ;;  %v1941_v12 = vmul.f32 %v1429_v1, %v1429_v1  ;;  %v419_v0 = vld [vmem:[#allocation2 + $0xa10] sm:$0xff] }
 0x277   :  { %v931_v1 = vld [vmem:[#allocation5 + $0xa10] sm:$0xff] }
 0x278   :  { %v5016_v22 = vadd.f32 %v5015_v17, %v1928_v11  ;;  %v1431_v11 = vsub.f32 %v407_v4, %v919_v5  ;;  %v1942_v17 = vmul.f32 %v1430_v6, %v1430_v6  ;;  %v420_v5 = vld [vmem:[#allocation2 + $0xa18] sm:$0xff] }
 0x279   :  { %v932_v6 = vld [vmem:[#allocation5 + $0xa18] sm:$0xff] }
 0x27a   :  { %v5017_v27 = vadd.f32 %v5016_v22, %v1929_v16  ;;  %v1432_v16 = vsub.f32 %v408_v9, %v920_v10  ;;  %v1943_v22 = vmul.f32 %v1431_v11, %v1431_v11  ;;  %v421_v10 = vld [vmem:[#allocation2 + $0xa20] sm:$0xff] }
 0x27b   :  { %v933_v11 = vld [vmem:[#allocation5 + $0xa20] sm:$0xff] }
 0x27c   :  { %v5018_v32 = vadd.f32 %v5017_v27, %v1930_v21  ;;  %v1433_v21 = vsub.f32 %v409_v14, %v921_v15  ;;  %v1944_v27 = vmul.f32 %v1432_v16, %v1432_v16  ;;  %v422_v15 = vld [vmem:[#allocation2 + $0xa28] sm:$0xff] }
 0x27d   :  { %v934_v16 = vld [vmem:[#allocation5 + $0xa28] sm:$0xff] }
 0x27e   :  { %v5019_v37 = vadd.f32 %v5018_v32, %v1931_v26  ;;  %v1434_v26 = vsub.f32 %v410_v19, %v922_v20  ;;  %v1945_v32 = vmul.f32 %v1433_v21, %v1433_v21  ;;  %v423_v20 = vld [vmem:[#allocation2 + $0xa30] sm:$0xff] }
 0x27f   :  { %v935_v21 = vld [vmem:[#allocation5 + $0xa30] sm:$0xff] }
 0x280   :  { %v5020_v42 = vadd.f32 %v5019_v37, %v1932_v31  ;;  %v1435_v31 = vsub.f32 %v411_v24, %v923_v25  ;;  %v1946_v37 = vmul.f32 %v1434_v26, %v1434_v26  ;;  %v424_v25 = vld [vmem:[#allocation2 + $0xa38] sm:$0xff] }
 0x281   :  { %v936_v26 = vld [vmem:[#allocation5 + $0xa38] sm:$0xff] }
 0x282   :  { %v5021_v47 = vadd.f32 %v5020_v42, %v1933_v36  ;;  %v1436_v36 = vsub.f32 %v412_v29, %v924_v30  ;;  %v1947_v42 = vmul.f32 %v1435_v31, %v1435_v31  ;;  %v425_v30 = vld [vmem:[#allocation2 + $0xa40] sm:$0xff] }
 0x283   :  { %v937_v31 = vld [vmem:[#allocation5 + $0xa40] sm:$0xff] }
 0x284   :  { %v5022_v52 = vadd.f32 %v5021_v47, %v1934_v41  ;;  %v1437_v41 = vsub.f32 %v413_v34, %v925_v35  ;;  %v1948_v47 = vmul.f32 %v1436_v36, %v1436_v36  ;;  %v426_v35 = vld [vmem:[#allocation2 + $0xa48] sm:$0xff] }
 0x285   :  { %v938_v36 = vld [vmem:[#allocation5 + $0xa48] sm:$0xff] }
 0x286   :  { %v5023_v57 = vadd.f32 %v5022_v52, %v1935_v46  ;;  %v1438_v46 = vsub.f32 %v414_v39, %v926_v40  ;;  %v1949_v52 = vmul.f32 %v1437_v41, %v1437_v41  ;;  %v427_v40 = vld [vmem:[#allocation2 + $0xa50] sm:$0xff] }
 0x287   :  { %v939_v41 = vld [vmem:[#allocation5 + $0xa50] sm:$0xff] }
 0x288   :  { %v5024_v62 = vadd.f32 %v5023_v57, %v1936_v51  ;;  %v1439_v51 = vsub.f32 %v415_v44, %v927_v45  ;;  %v1950_v57 = vmul.f32 %v1438_v46, %v1438_v46  ;;  %v428_v45 = vld [vmem:[#allocation2 + $0xa58] sm:$0xff] }
 0x289   :  { %v940_v46 = vld [vmem:[#allocation5 + $0xa58] sm:$0xff] }
 0x28a   :  { %v5025_v3 = vadd.f32 %v5024_v62, %v1937_v56  ;;  %v1440_v56 = vsub.f32 %v416_v49, %v928_v50  ;;  %v1951_v62 = vmul.f32 %v1439_v51, %v1439_v51  ;;  %v429_v50 = vld [vmem:[#allocation2 + $0xa60] sm:$0xff] }
 0x28b   :  { %v941_v51 = vld [vmem:[#allocation5 + $0xa60] sm:$0xff] }
 0x28c   :  { %v5026_v8 = vadd.f32 %v5025_v3, %v1938_v61  ;;  %v1441_v61 = vsub.f32 %v417_v54, %v929_v55  ;;  %v1952_v3 = vmul.f32 %v1440_v56, %v1440_v56  ;;  %v430_v55 = vld [vmem:[#allocation2 + $0xa68] sm:$0xff] }
 0x28d   :  { %v942_v56 = vld [vmem:[#allocation5 + $0xa68] sm:$0xff] }
 0x28e   :  { %v5027_v13 = vadd.f32 %v5026_v8, %v1939_v2  ;;  %v1442_v2 = vsub.f32 %v418_v59, %v930_v60  ;;  %v1953_v8 = vmul.f32 %v1441_v61, %v1441_v61  ;;  %v431_v60 = vld [vmem:[#allocation2 + $0xa70] sm:$0xff] }
 0x28f   :  { %v943_v61 = vld [vmem:[#allocation5 + $0xa70] sm:$0xff] }
 0x290   :  { %v5028_v18 = vadd.f32 %v5027_v13, %v1940_v7  ;;  %v1443_v7 = vsub.f32 %v419_v0, %v931_v1  ;;  %v1954_v13 = vmul.f32 %v1442_v2, %v1442_v2  ;;  %v432_v1 = vld [vmem:[#allocation2 + $0xa78] sm:$0xff] }
 0x291   :  { %v944_v2 = vld [vmem:[#allocation5 + $0xa78] sm:$0xff] }
 0x292   :  { %v5029_v23 = vadd.f32 %v5028_v18, %v1941_v12  ;;  %v1444_v12 = vsub.f32 %v420_v5, %v932_v6  ;;  %v1955_v18 = vmul.f32 %v1443_v7, %v1443_v7  ;;  %v433_v6 = vld [vmem:[#allocation2 + $0xa80] sm:$0xff] }
 0x293   :  { %v945_v7 = vld [vmem:[#allocation5 + $0xa80] sm:$0xff] }
 0x294   :  { %v5030_v28 = vadd.f32 %v5029_v23, %v1942_v17  ;;  %v1445_v17 = vsub.f32 %v421_v10, %v933_v11  ;;  %v1956_v23 = vmul.f32 %v1444_v12, %v1444_v12  ;;  %v434_v11 = vld [vmem:[#allocation2 + $0xa88] sm:$0xff] }
 0x295   :  { %v946_v12 = vld [vmem:[#allocation5 + $0xa88] sm:$0xff] }
 0x296   :  { %v5031_v33 = vadd.f32 %v5030_v28, %v1943_v22  ;;  %v1446_v22 = vsub.f32 %v422_v15, %v934_v16  ;;  %v1957_v28 = vmul.f32 %v1445_v17, %v1445_v17  ;;  %v435_v16 = vld [vmem:[#allocation2 + $0xa90] sm:$0xff] }
 0x297   :  { %v947_v17 = vld [vmem:[#allocation5 + $0xa90] sm:$0xff] }
 0x298   :  { %v5032_v38 = vadd.f32 %v5031_v33, %v1944_v27  ;;  %v1447_v27 = vsub.f32 %v423_v20, %v935_v21  ;;  %v1958_v33 = vmul.f32 %v1446_v22, %v1446_v22  ;;  %v436_v21 = vld [vmem:[#allocation2 + $0xa98] sm:$0xff] }
 0x299   :  { %v948_v22 = vld [vmem:[#allocation5 + $0xa98] sm:$0xff] }
 0x29a   :  { %v5033_v43 = vadd.f32 %v5032_v38, %v1945_v32  ;;  %v1448_v32 = vsub.f32 %v424_v25, %v936_v26  ;;  %v1959_v38 = vmul.f32 %v1447_v27, %v1447_v27  ;;  %v437_v26 = vld [vmem:[#allocation2 + $0xaa0] sm:$0xff] }
 0x29b   :  { %v949_v27 = vld [vmem:[#allocation5 + $0xaa0] sm:$0xff] }
 0x29c   :  { %v5034_v48 = vadd.f32 %v5033_v43, %v1946_v37  ;;  %v1449_v37 = vsub.f32 %v425_v30, %v937_v31  ;;  %v1960_v43 = vmul.f32 %v1448_v32, %v1448_v32  ;;  %v438_v31 = vld [vmem:[#allocation2 + $0xaa8] sm:$0xff] }
 0x29d   :  { %v950_v32 = vld [vmem:[#allocation5 + $0xaa8] sm:$0xff] }
 0x29e   :  { %v5035_v53 = vadd.f32 %v5034_v48, %v1947_v42  ;;  %v1450_v42 = vsub.f32 %v426_v35, %v938_v36  ;;  %v1961_v48 = vmul.f32 %v1449_v37, %v1449_v37  ;;  %v439_v36 = vld [vmem:[#allocation2 + $0xab0] sm:$0xff] }
 0x29f   :  { %v951_v37 = vld [vmem:[#allocation5 + $0xab0] sm:$0xff] }
 0x2a0   :  { %v5036_v58 = vadd.f32 %v5035_v53, %v1948_v47  ;;  %v1451_v47 = vsub.f32 %v427_v40, %v939_v41  ;;  %v1962_v53 = vmul.f32 %v1450_v42, %v1450_v42  ;;  %v440_v41 = vld [vmem:[#allocation2 + $0xab8] sm:$0xff] }
 0x2a1   :  { %v952_v42 = vld [vmem:[#allocation5 + $0xab8] sm:$0xff] }
 0x2a2   :  { %v5037_v63 = vadd.f32 %v5036_v58, %v1949_v52  ;;  %v1452_v52 = vsub.f32 %v428_v45, %v940_v46  ;;  %v1963_v58 = vmul.f32 %v1451_v47, %v1451_v47  ;;  %v441_v46 = vld [vmem:[#allocation2 + $0xac0] sm:$0xff] }
 0x2a3   :  { %v953_v47 = vld [vmem:[#allocation5 + $0xac0] sm:$0xff] }
 0x2a4   :  { %v5038_v4 = vadd.f32 %v5037_v63, %v1950_v57  ;;  %v1453_v57 = vsub.f32 %v429_v50, %v941_v51  ;;  %v1964_v63 = vmul.f32 %v1452_v52, %v1452_v52  ;;  %v442_v51 = vld [vmem:[#allocation2 + $0xac8] sm:$0xff] }
 0x2a5   :  { %v954_v52 = vld [vmem:[#allocation5 + $0xac8] sm:$0xff] }
 0x2a6   :  { %v5039_v9 = vadd.f32 %v5038_v4, %v1951_v62  ;;  %v1454_v62 = vsub.f32 %v430_v55, %v942_v56  ;;  %v1965_v4 = vmul.f32 %v1453_v57, %v1453_v57  ;;  %v443_v56 = vld [vmem:[#allocation2 + $0xad0] sm:$0xff] }
 0x2a7   :  { %v955_v57 = vld [vmem:[#allocation5 + $0xad0] sm:$0xff] }
 0x2a8   :  { %v5040_v14 = vadd.f32 %v5039_v9, %v1952_v3  ;;  %v1455_v3 = vsub.f32 %v431_v60, %v943_v61  ;;  %v1966_v9 = vmul.f32 %v1454_v62, %v1454_v62  ;;  %v444_v61 = vld [vmem:[#allocation2 + $0xad8] sm:$0xff] }
 0x2a9   :  { %v956_v62 = vld [vmem:[#allocation5 + $0xad8] sm:$0xff] }
 0x2aa   :  { %v5041_v19 = vadd.f32 %v5040_v14, %v1953_v8  ;;  %v1456_v8 = vsub.f32 %v432_v1, %v944_v2  ;;  %v1967_v14 = vmul.f32 %v1455_v3, %v1455_v3  ;;  %v445_v2 = vld [vmem:[#allocation2 + $0xae0] sm:$0xff] }
 0x2ab   :  { %v957_v3 = vld [vmem:[#allocation5 + $0xae0] sm:$0xff] }
 0x2ac   :  { %v5042_v24 = vadd.f32 %v5041_v19, %v1954_v13  ;;  %v1457_v13 = vsub.f32 %v433_v6, %v945_v7  ;;  %v1968_v19 = vmul.f32 %v1456_v8, %v1456_v8  ;;  %v446_v7 = vld [vmem:[#allocation2 + $0xae8] sm:$0xff] }
 0x2ad   :  { %v958_v8 = vld [vmem:[#allocation5 + $0xae8] sm:$0xff] }
 0x2ae   :  { %v5043_v29 = vadd.f32 %v5042_v24, %v1955_v18  ;;  %v1458_v18 = vsub.f32 %v434_v11, %v946_v12  ;;  %v1969_v24 = vmul.f32 %v1457_v13, %v1457_v13  ;;  %v447_v12 = vld [vmem:[#allocation2 + $0xaf0] sm:$0xff] }
 0x2af   :  { %v959_v13 = vld [vmem:[#allocation5 + $0xaf0] sm:$0xff] }
 0x2b0   :  { %v5044_v34 = vadd.f32 %v5043_v29, %v1956_v23  ;;  %v1459_v23 = vsub.f32 %v435_v16, %v947_v17  ;;  %v1970_v29 = vmul.f32 %v1458_v18, %v1458_v18  ;;  %v448_v17 = vld [vmem:[#allocation2 + $0xaf8] sm:$0xff] }
 0x2b1   :  { %v960_v18 = vld [vmem:[#allocation5 + $0xaf8] sm:$0xff] }
 0x2b2   :  { %v5045_v39 = vadd.f32 %v5044_v34, %v1957_v28  ;;  %v1460_v28 = vsub.f32 %v436_v21, %v948_v22  ;;  %v1971_v34 = vmul.f32 %v1459_v23, %v1459_v23  ;;  %v449_v22 = vld [vmem:[#allocation2 + $0xb00] sm:$0xff] }
 0x2b3   :  { %v961_v23 = vld [vmem:[#allocation5 + $0xb00] sm:$0xff] }
 0x2b4   :  { %v5046_v44 = vadd.f32 %v5045_v39, %v1958_v33  ;;  %v1461_v33 = vsub.f32 %v437_v26, %v949_v27  ;;  %v1972_v39 = vmul.f32 %v1460_v28, %v1460_v28  ;;  %v450_v27 = vld [vmem:[#allocation2 + $0xb08] sm:$0xff] }
 0x2b5   :  { %v962_v28 = vld [vmem:[#allocation5 + $0xb08] sm:$0xff] }
 0x2b6   :  { %v5047_v49 = vadd.f32 %v5046_v44, %v1959_v38  ;;  %v1462_v38 = vsub.f32 %v438_v31, %v950_v32  ;;  %v1973_v44 = vmul.f32 %v1461_v33, %v1461_v33  ;;  %v451_v32 = vld [vmem:[#allocation2 + $0xb10] sm:$0xff] }
 0x2b7   :  { %v963_v33 = vld [vmem:[#allocation5 + $0xb10] sm:$0xff] }
 0x2b8   :  { %v5048_v54 = vadd.f32 %v5047_v49, %v1960_v43  ;;  %v1463_v43 = vsub.f32 %v439_v36, %v951_v37  ;;  %v1974_v49 = vmul.f32 %v1462_v38, %v1462_v38  ;;  %v452_v37 = vld [vmem:[#allocation2 + $0xb18] sm:$0xff] }
 0x2b9   :  { %v964_v38 = vld [vmem:[#allocation5 + $0xb18] sm:$0xff] }
 0x2ba   :  { %v5049_v59 = vadd.f32 %v5048_v54, %v1961_v48  ;;  %v1464_v48 = vsub.f32 %v440_v41, %v952_v42  ;;  %v1975_v54 = vmul.f32 %v1463_v43, %v1463_v43  ;;  %v453_v42 = vld [vmem:[#allocation2 + $0xb20] sm:$0xff] }
 0x2bb   :  { %v965_v43 = vld [vmem:[#allocation5 + $0xb20] sm:$0xff] }
 0x2bc   :  { %v5050_v0 = vadd.f32 %v5049_v59, %v1962_v53  ;;  %v1465_v53 = vsub.f32 %v441_v46, %v953_v47  ;;  %v1976_v59 = vmul.f32 %v1464_v48, %v1464_v48  ;;  %v454_v47 = vld [vmem:[#allocation2 + $0xb28] sm:$0xff] }
 0x2bd   :  { %v966_v48 = vld [vmem:[#allocation5 + $0xb28] sm:$0xff] }
 0x2be   :  { %v5051_v5 = vadd.f32 %v5050_v0, %v1963_v58  ;;  %v1466_v58 = vsub.f32 %v442_v51, %v954_v52  ;;  %v1977_v0 = vmul.f32 %v1465_v53, %v1465_v53  ;;  %v455_v52 = vld [vmem:[#allocation2 + $0xb30] sm:$0xff] }
 0x2bf   :  { %v967_v53 = vld [vmem:[#allocation5 + $0xb30] sm:$0xff] }
 0x2c0   :  { %v5052_v10 = vadd.f32 %v5051_v5, %v1964_v63  ;;  %v1467_v63 = vsub.f32 %v443_v56, %v955_v57  ;;  %v1978_v5 = vmul.f32 %v1466_v58, %v1466_v58  ;;  %v456_v57 = vld [vmem:[#allocation2 + $0xb38] sm:$0xff] }
 0x2c1   :  { %v968_v58 = vld [vmem:[#allocation5 + $0xb38] sm:$0xff] }
 0x2c2   :  { %v5053_v15 = vadd.f32 %v5052_v10, %v1965_v4  ;;  %v1468_v4 = vsub.f32 %v444_v61, %v956_v62  ;;  %v1979_v10 = vmul.f32 %v1467_v63, %v1467_v63  ;;  %v457_v62 = vld [vmem:[#allocation2 + $0xb40] sm:$0xff] }
 0x2c3   :  { %v969_v63 = vld [vmem:[#allocation5 + $0xb40] sm:$0xff] }
 0x2c4   :  { %v5054_v20 = vadd.f32 %v5053_v15, %v1966_v9  ;;  %v1469_v9 = vsub.f32 %v445_v2, %v957_v3  ;;  %v1980_v15 = vmul.f32 %v1468_v4, %v1468_v4  ;;  %v458_v3 = vld [vmem:[#allocation2 + $0xb48] sm:$0xff] }
 0x2c5   :  { %v970_v4 = vld [vmem:[#allocation5 + $0xb48] sm:$0xff] }
 0x2c6   :  { %v5055_v25 = vadd.f32 %v5054_v20, %v1967_v14  ;;  %v1470_v14 = vsub.f32 %v446_v7, %v958_v8  ;;  %v1981_v20 = vmul.f32 %v1469_v9, %v1469_v9  ;;  %v459_v8 = vld [vmem:[#allocation2 + $0xb50] sm:$0xff] }
 0x2c7   :  { %v971_v9 = vld [vmem:[#allocation5 + $0xb50] sm:$0xff] }
 0x2c8   :  { %v5056_v30 = vadd.f32 %v5055_v25, %v1968_v19  ;;  %v1471_v19 = vsub.f32 %v447_v12, %v959_v13  ;;  %v1982_v25 = vmul.f32 %v1470_v14, %v1470_v14  ;;  %v460_v13 = vld [vmem:[#allocation2 + $0xb58] sm:$0xff] }
 0x2c9   :  { %v972_v14 = vld [vmem:[#allocation5 + $0xb58] sm:$0xff] }
 0x2ca   :  { %v5057_v35 = vadd.f32 %v5056_v30, %v1969_v24  ;;  %v1472_v24 = vsub.f32 %v448_v17, %v960_v18  ;;  %v1983_v30 = vmul.f32 %v1471_v19, %v1471_v19  ;;  %v461_v18 = vld [vmem:[#allocation2 + $0xb60] sm:$0xff] }
 0x2cb   :  { %v973_v19 = vld [vmem:[#allocation5 + $0xb60] sm:$0xff] }
 0x2cc   :  { %v5058_v40 = vadd.f32 %v5057_v35, %v1970_v29  ;;  %v1473_v29 = vsub.f32 %v449_v22, %v961_v23  ;;  %v1984_v35 = vmul.f32 %v1472_v24, %v1472_v24  ;;  %v462_v23 = vld [vmem:[#allocation2 + $0xb68] sm:$0xff] }
 0x2cd   :  { %v974_v24 = vld [vmem:[#allocation5 + $0xb68] sm:$0xff] }
 0x2ce   :  { %v5059_v45 = vadd.f32 %v5058_v40, %v1971_v34  ;;  %v1474_v34 = vsub.f32 %v450_v27, %v962_v28  ;;  %v1985_v40 = vmul.f32 %v1473_v29, %v1473_v29  ;;  %v463_v28 = vld [vmem:[#allocation2 + $0xb70] sm:$0xff] }
 0x2cf   :  { %v975_v29 = vld [vmem:[#allocation5 + $0xb70] sm:$0xff] }
 0x2d0   :  { %v5060_v50 = vadd.f32 %v5059_v45, %v1972_v39  ;;  %v1475_v39 = vsub.f32 %v451_v32, %v963_v33  ;;  %v1986_v45 = vmul.f32 %v1474_v34, %v1474_v34  ;;  %v464_v33 = vld [vmem:[#allocation2 + $0xb78] sm:$0xff] }
 0x2d1   :  { %v976_v34 = vld [vmem:[#allocation5 + $0xb78] sm:$0xff] }
 0x2d2   :  { %v5061_v55 = vadd.f32 %v5060_v50, %v1973_v44  ;;  %v1476_v44 = vsub.f32 %v452_v37, %v964_v38  ;;  %v1987_v50 = vmul.f32 %v1475_v39, %v1475_v39  ;;  %v465_v38 = vld [vmem:[#allocation2 + $0xb80] sm:$0xff] }
 0x2d3   :  { %v977_v39 = vld [vmem:[#allocation5 + $0xb80] sm:$0xff] }
 0x2d4   :  { %v5062_v60 = vadd.f32 %v5061_v55, %v1974_v49  ;;  %v1477_v49 = vsub.f32 %v453_v42, %v965_v43  ;;  %v1988_v55 = vmul.f32 %v1476_v44, %v1476_v44  ;;  %v466_v43 = vld [vmem:[#allocation2 + $0xb88] sm:$0xff] }
 0x2d5   :  { %v978_v44 = vld [vmem:[#allocation5 + $0xb88] sm:$0xff] }
 0x2d6   :  { %v5063_v1 = vadd.f32 %v5062_v60, %v1975_v54  ;;  %v1478_v54 = vsub.f32 %v454_v47, %v966_v48  ;;  %v1989_v60 = vmul.f32 %v1477_v49, %v1477_v49  ;;  %v467_v48 = vld [vmem:[#allocation2 + $0xb90] sm:$0xff] }
 0x2d7   :  { %v979_v49 = vld [vmem:[#allocation5 + $0xb90] sm:$0xff] }
 0x2d8   :  { %v5064_v6 = vadd.f32 %v5063_v1, %v1976_v59  ;;  %v1479_v59 = vsub.f32 %v455_v52, %v967_v53  ;;  %v1990_v1 = vmul.f32 %v1478_v54, %v1478_v54  ;;  %v468_v53 = vld [vmem:[#allocation2 + $0xb98] sm:$0xff] }
 0x2d9   :  { %v980_v54 = vld [vmem:[#allocation5 + $0xb98] sm:$0xff] }
 0x2da   :  { %v5065_v11 = vadd.f32 %v5064_v6, %v1977_v0  ;;  %v1480_v0 = vsub.f32 %v456_v57, %v968_v58  ;;  %v1991_v6 = vmul.f32 %v1479_v59, %v1479_v59  ;;  %v469_v58 = vld [vmem:[#allocation2 + $0xba0] sm:$0xff] }
 0x2db   :  { %v981_v59 = vld [vmem:[#allocation5 + $0xba0] sm:$0xff] }
 0x2dc   :  { %v5066_v16 = vadd.f32 %v5065_v11, %v1978_v5  ;;  %v1481_v5 = vsub.f32 %v457_v62, %v969_v63  ;;  %v1992_v11 = vmul.f32 %v1480_v0, %v1480_v0  ;;  %v470_v63 = vld [vmem:[#allocation2 + $0xba8] sm:$0xff] }
 0x2dd   :  { %v982_v0 = vld [vmem:[#allocation5 + $0xba8] sm:$0xff] }
 0x2de   :  { %v5067_v21 = vadd.f32 %v5066_v16, %v1979_v10  ;;  %v1482_v10 = vsub.f32 %v458_v3, %v970_v4  ;;  %v1993_v16 = vmul.f32 %v1481_v5, %v1481_v5  ;;  %v471_v4 = vld [vmem:[#allocation2 + $0xbb0] sm:$0xff] }
 0x2df   :  { %v983_v5 = vld [vmem:[#allocation5 + $0xbb0] sm:$0xff] }
 0x2e0   :  { %v5068_v26 = vadd.f32 %v5067_v21, %v1980_v15  ;;  %v1483_v15 = vsub.f32 %v459_v8, %v971_v9  ;;  %v1994_v21 = vmul.f32 %v1482_v10, %v1482_v10  ;;  %v472_v9 = vld [vmem:[#allocation2 + $0xbb8] sm:$0xff] }
 0x2e1   :  { %v984_v10 = vld [vmem:[#allocation5 + $0xbb8] sm:$0xff] }
 0x2e2   :  { %v5069_v31 = vadd.f32 %v5068_v26, %v1981_v20  ;;  %v1484_v20 = vsub.f32 %v460_v13, %v972_v14  ;;  %v1995_v26 = vmul.f32 %v1483_v15, %v1483_v15  ;;  %v473_v14 = vld [vmem:[#allocation2 + $0xbc0] sm:$0xff] }
 0x2e3   :  { %v985_v15 = vld [vmem:[#allocation5 + $0xbc0] sm:$0xff] }
 0x2e4   :  { %v5070_v36 = vadd.f32 %v5069_v31, %v1982_v25  ;;  %v1485_v25 = vsub.f32 %v461_v18, %v973_v19  ;;  %v1996_v31 = vmul.f32 %v1484_v20, %v1484_v20  ;;  %v474_v19 = vld [vmem:[#allocation2 + $0xbc8] sm:$0xff] }
 0x2e5   :  { %v986_v20 = vld [vmem:[#allocation5 + $0xbc8] sm:$0xff] }
 0x2e6   :  { %v5071_v41 = vadd.f32 %v5070_v36, %v1983_v30  ;;  %v1486_v30 = vsub.f32 %v462_v23, %v974_v24  ;;  %v1997_v36 = vmul.f32 %v1485_v25, %v1485_v25  ;;  %v475_v24 = vld [vmem:[#allocation2 + $0xbd0] sm:$0xff] }
 0x2e7   :  { %v987_v25 = vld [vmem:[#allocation5 + $0xbd0] sm:$0xff] }
 0x2e8   :  { %v5072_v46 = vadd.f32 %v5071_v41, %v1984_v35  ;;  %v1487_v35 = vsub.f32 %v463_v28, %v975_v29  ;;  %v1998_v41 = vmul.f32 %v1486_v30, %v1486_v30  ;;  %v476_v29 = vld [vmem:[#allocation2 + $0xbd8] sm:$0xff] }
 0x2e9   :  { %v988_v30 = vld [vmem:[#allocation5 + $0xbd8] sm:$0xff] }
 0x2ea   :  { %v5073_v51 = vadd.f32 %v5072_v46, %v1985_v40  ;;  %v1488_v40 = vsub.f32 %v464_v33, %v976_v34  ;;  %v1999_v46 = vmul.f32 %v1487_v35, %v1487_v35  ;;  %v477_v34 = vld [vmem:[#allocation2 + $0xbe0] sm:$0xff] }
 0x2eb   :  { %v989_v35 = vld [vmem:[#allocation5 + $0xbe0] sm:$0xff] }
 0x2ec   :  { %v5074_v56 = vadd.f32 %v5073_v51, %v1986_v45  ;;  %v1489_v45 = vsub.f32 %v465_v38, %v977_v39  ;;  %v2000_v51 = vmul.f32 %v1488_v40, %v1488_v40  ;;  %v478_v39 = vld [vmem:[#allocation2 + $0xbe8] sm:$0xff] }
 0x2ed   :  { %v990_v40 = vld [vmem:[#allocation5 + $0xbe8] sm:$0xff] }
 0x2ee   :  { %v5075_v61 = vadd.f32 %v5074_v56, %v1987_v50  ;;  %v1490_v50 = vsub.f32 %v466_v43, %v978_v44  ;;  %v2001_v56 = vmul.f32 %v1489_v45, %v1489_v45  ;;  %v479_v44 = vld [vmem:[#allocation2 + $0xbf0] sm:$0xff] }
 0x2ef   :  { %v991_v45 = vld [vmem:[#allocation5 + $0xbf0] sm:$0xff] }
 0x2f0   :  { %v5076_v2 = vadd.f32 %v5075_v61, %v1988_v55  ;;  %v1491_v55 = vsub.f32 %v467_v48, %v979_v49  ;;  %v2002_v61 = vmul.f32 %v1490_v50, %v1490_v50  ;;  %v480_v49 = vld [vmem:[#allocation2 + $0xbf8] sm:$0xff] }
 0x2f1   :  { %v992_v50 = vld [vmem:[#allocation5 + $0xbf8] sm:$0xff] }
 0x2f2   :  { %v5077_v7 = vadd.f32 %v5076_v2, %v1989_v60  ;;  %v1492_v60 = vsub.f32 %v468_v53, %v980_v54  ;;  %v2003_v2 = vmul.f32 %v1491_v55, %v1491_v55  ;;  %v481_v54 = vld [vmem:[#allocation2 + $0xc00] sm:$0xff] }
 0x2f3   :  { %v993_v55 = vld [vmem:[#allocation5 + $0xc00] sm:$0xff] }
 0x2f4   :  { %v5078_v12 = vadd.f32 %v5077_v7, %v1990_v1  ;;  %v1493_v1 = vsub.f32 %v469_v58, %v981_v59  ;;  %v2004_v7 = vmul.f32 %v1492_v60, %v1492_v60  ;;  %v482_v59 = vld [vmem:[#allocation2 + $0xc08] sm:$0xff] }
 0x2f5   :  { %v994_v60 = vld [vmem:[#allocation5 + $0xc08] sm:$0xff] }
 0x2f6   :  { %v5079_v17 = vadd.f32 %v5078_v12, %v1991_v6  ;;  %v1494_v6 = vsub.f32 %v470_v63, %v982_v0  ;;  %v2005_v12 = vmul.f32 %v1493_v1, %v1493_v1  ;;  %v483_v0 = vld [vmem:[#allocation2 + $0xc10] sm:$0xff] }
 0x2f7   :  { %v995_v1 = vld [vmem:[#allocation5 + $0xc10] sm:$0xff] }
 0x2f8   :  { %v5080_v22 = vadd.f32 %v5079_v17, %v1992_v11  ;;  %v1495_v11 = vsub.f32 %v471_v4, %v983_v5  ;;  %v2006_v17 = vmul.f32 %v1494_v6, %v1494_v6  ;;  %v484_v5 = vld [vmem:[#allocation2 + $0xc18] sm:$0xff] }
 0x2f9   :  { %v996_v6 = vld [vmem:[#allocation5 + $0xc18] sm:$0xff] }
 0x2fa   :  { %v5081_v27 = vadd.f32 %v5080_v22, %v1993_v16  ;;  %v1496_v16 = vsub.f32 %v472_v9, %v984_v10  ;;  %v2007_v22 = vmul.f32 %v1495_v11, %v1495_v11  ;;  %v485_v10 = vld [vmem:[#allocation2 + $0xc20] sm:$0xff] }
 0x2fb   :  { %v997_v11 = vld [vmem:[#allocation5 + $0xc20] sm:$0xff] }
 0x2fc   :  { %v5082_v32 = vadd.f32 %v5081_v27, %v1994_v21  ;;  %v1497_v21 = vsub.f32 %v473_v14, %v985_v15  ;;  %v2008_v27 = vmul.f32 %v1496_v16, %v1496_v16  ;;  %v486_v15 = vld [vmem:[#allocation2 + $0xc28] sm:$0xff] }
 0x2fd   :  { %v998_v16 = vld [vmem:[#allocation5 + $0xc28] sm:$0xff] }
 0x2fe   :  { %v5083_v37 = vadd.f32 %v5082_v32, %v1995_v26  ;;  %v1498_v26 = vsub.f32 %v474_v19, %v986_v20  ;;  %v2009_v32 = vmul.f32 %v1497_v21, %v1497_v21  ;;  %v487_v20 = vld [vmem:[#allocation2 + $0xc30] sm:$0xff] }
 0x2ff   :  { %v999_v21 = vld [vmem:[#allocation5 + $0xc30] sm:$0xff] }
 0x300   :  { %v5084_v42 = vadd.f32 %v5083_v37, %v1996_v31  ;;  %v1499_v31 = vsub.f32 %v475_v24, %v987_v25  ;;  %v2010_v37 = vmul.f32 %v1498_v26, %v1498_v26  ;;  %v488_v25 = vld [vmem:[#allocation2 + $0xc38] sm:$0xff] }
 0x301   :  { %v1000_v26 = vld [vmem:[#allocation5 + $0xc38] sm:$0xff] }
 0x302   :  { %v5085_v47 = vadd.f32 %v5084_v42, %v1997_v36  ;;  %v1500_v36 = vsub.f32 %v476_v29, %v988_v30  ;;  %v2011_v42 = vmul.f32 %v1499_v31, %v1499_v31  ;;  %v489_v30 = vld [vmem:[#allocation2 + $0xc40] sm:$0xff] }
 0x303   :  { %v1001_v31 = vld [vmem:[#allocation5 + $0xc40] sm:$0xff] }
 0x304   :  { %v5086_v52 = vadd.f32 %v5085_v47, %v1998_v41  ;;  %v1501_v41 = vsub.f32 %v477_v34, %v989_v35  ;;  %v2012_v47 = vmul.f32 %v1500_v36, %v1500_v36  ;;  %v490_v35 = vld [vmem:[#allocation2 + $0xc48] sm:$0xff] }
 0x305   :  { %v1002_v36 = vld [vmem:[#allocation5 + $0xc48] sm:$0xff] }
 0x306   :  { %v5087_v57 = vadd.f32 %v5086_v52, %v1999_v46  ;;  %v1502_v46 = vsub.f32 %v478_v39, %v990_v40  ;;  %v2013_v52 = vmul.f32 %v1501_v41, %v1501_v41  ;;  %v491_v40 = vld [vmem:[#allocation2 + $0xc50] sm:$0xff] }
 0x307   :  { %v1003_v41 = vld [vmem:[#allocation5 + $0xc50] sm:$0xff] }
 0x308   :  { %v5088_v62 = vadd.f32 %v5087_v57, %v2000_v51  ;;  %v1503_v51 = vsub.f32 %v479_v44, %v991_v45  ;;  %v2014_v57 = vmul.f32 %v1502_v46, %v1502_v46  ;;  %v492_v45 = vld [vmem:[#allocation2 + $0xc58] sm:$0xff] }
 0x309   :  { %v1004_v46 = vld [vmem:[#allocation5 + $0xc58] sm:$0xff] }
 0x30a   :  { %v5089_v3 = vadd.f32 %v5088_v62, %v2001_v56  ;;  %v1504_v56 = vsub.f32 %v480_v49, %v992_v50  ;;  %v2015_v62 = vmul.f32 %v1503_v51, %v1503_v51  ;;  %v493_v50 = vld [vmem:[#allocation2 + $0xc60] sm:$0xff] }
 0x30b   :  { %v1005_v51 = vld [vmem:[#allocation5 + $0xc60] sm:$0xff] }
 0x30c   :  { %v5090_v8 = vadd.f32 %v5089_v3, %v2002_v61  ;;  %v1505_v61 = vsub.f32 %v481_v54, %v993_v55  ;;  %v2016_v3 = vmul.f32 %v1504_v56, %v1504_v56  ;;  %v494_v55 = vld [vmem:[#allocation2 + $0xc68] sm:$0xff] }
 0x30d   :  { %v1006_v56 = vld [vmem:[#allocation5 + $0xc68] sm:$0xff] }
 0x30e   :  { %v5091_v13 = vadd.f32 %v5090_v8, %v2003_v2  ;;  %v1506_v2 = vsub.f32 %v482_v59, %v994_v60  ;;  %v2017_v8 = vmul.f32 %v1505_v61, %v1505_v61  ;;  %v495_v60 = vld [vmem:[#allocation2 + $0xc70] sm:$0xff] }
 0x30f   :  { %v1007_v61 = vld [vmem:[#allocation5 + $0xc70] sm:$0xff] }
 0x310   :  { %v5092_v18 = vadd.f32 %v5091_v13, %v2004_v7  ;;  %v1507_v7 = vsub.f32 %v483_v0, %v995_v1  ;;  %v2018_v13 = vmul.f32 %v1506_v2, %v1506_v2  ;;  %v496_v1 = vld [vmem:[#allocation2 + $0xc78] sm:$0xff] }
 0x311   :  { %v1008_v2 = vld [vmem:[#allocation5 + $0xc78] sm:$0xff] }
 0x312   :  { %v5093_v23 = vadd.f32 %v5092_v18, %v2005_v12  ;;  %v1508_v12 = vsub.f32 %v484_v5, %v996_v6  ;;  %v2019_v18 = vmul.f32 %v1507_v7, %v1507_v7  ;;  %v497_v6 = vld [vmem:[#allocation2 + $0xc80] sm:$0xff] }
 0x313   :  { %v1009_v7 = vld [vmem:[#allocation5 + $0xc80] sm:$0xff] }
 0x314   :  { %v5094_v28 = vadd.f32 %v5093_v23, %v2006_v17  ;;  %v1509_v17 = vsub.f32 %v485_v10, %v997_v11  ;;  %v2020_v23 = vmul.f32 %v1508_v12, %v1508_v12  ;;  %v498_v11 = vld [vmem:[#allocation2 + $0xc88] sm:$0xff] }
 0x315   :  { %v1010_v12 = vld [vmem:[#allocation5 + $0xc88] sm:$0xff] }
 0x316   :  { %v5095_v33 = vadd.f32 %v5094_v28, %v2007_v22  ;;  %v1510_v22 = vsub.f32 %v486_v15, %v998_v16  ;;  %v2021_v28 = vmul.f32 %v1509_v17, %v1509_v17  ;;  %v499_v16 = vld [vmem:[#allocation2 + $0xc90] sm:$0xff] }
 0x317   :  { %v1011_v17 = vld [vmem:[#allocation5 + $0xc90] sm:$0xff] }
 0x318   :  { %v5096_v38 = vadd.f32 %v5095_v33, %v2008_v27  ;;  %v1511_v27 = vsub.f32 %v487_v20, %v999_v21  ;;  %v2022_v33 = vmul.f32 %v1510_v22, %v1510_v22  ;;  %v500_v21 = vld [vmem:[#allocation2 + $0xc98] sm:$0xff] }
 0x319   :  { %v1012_v22 = vld [vmem:[#allocation5 + $0xc98] sm:$0xff] }
 0x31a   :  { %v5097_v43 = vadd.f32 %v5096_v38, %v2009_v32  ;;  %v1512_v32 = vsub.f32 %v488_v25, %v1000_v26  ;;  %v2023_v38 = vmul.f32 %v1511_v27, %v1511_v27  ;;  %v501_v26 = vld [vmem:[#allocation2 + $0xca0] sm:$0xff] }
 0x31b   :  { %v1013_v27 = vld [vmem:[#allocation5 + $0xca0] sm:$0xff] }
 0x31c   :  { %v5098_v48 = vadd.f32 %v5097_v43, %v2010_v37  ;;  %v1513_v37 = vsub.f32 %v489_v30, %v1001_v31  ;;  %v2024_v43 = vmul.f32 %v1512_v32, %v1512_v32  ;;  %v502_v31 = vld [vmem:[#allocation2 + $0xca8] sm:$0xff] }
 0x31d   :  { %v1014_v32 = vld [vmem:[#allocation5 + $0xca8] sm:$0xff] }
 0x31e   :  { %v5099_v53 = vadd.f32 %v5098_v48, %v2011_v42  ;;  %v1514_v42 = vsub.f32 %v490_v35, %v1002_v36  ;;  %v2025_v48 = vmul.f32 %v1513_v37, %v1513_v37  ;;  %v503_v36 = vld [vmem:[#allocation2 + $0xcb0] sm:$0xff] }
 0x31f   :  { %v1015_v37 = vld [vmem:[#allocation5 + $0xcb0] sm:$0xff] }
 0x320   :  { %v5100_v58 = vadd.f32 %v5099_v53, %v2012_v47  ;;  %v1515_v47 = vsub.f32 %v491_v40, %v1003_v41  ;;  %v2026_v53 = vmul.f32 %v1514_v42, %v1514_v42  ;;  %v504_v41 = vld [vmem:[#allocation2 + $0xcb8] sm:$0xff] }
 0x321   :  { %v1016_v42 = vld [vmem:[#allocation5 + $0xcb8] sm:$0xff] }
 0x322   :  { %v5101_v63 = vadd.f32 %v5100_v58, %v2013_v52  ;;  %v1516_v52 = vsub.f32 %v492_v45, %v1004_v46  ;;  %v2027_v58 = vmul.f32 %v1515_v47, %v1515_v47  ;;  %v505_v46 = vld [vmem:[#allocation2 + $0xcc0] sm:$0xff] }
 0x323   :  { %v1017_v47 = vld [vmem:[#allocation5 + $0xcc0] sm:$0xff] }
 0x324   :  { %v5102_v4 = vadd.f32 %v5101_v63, %v2014_v57  ;;  %v1517_v57 = vsub.f32 %v493_v50, %v1005_v51  ;;  %v2028_v63 = vmul.f32 %v1516_v52, %v1516_v52  ;;  %v506_v51 = vld [vmem:[#allocation2 + $0xcc8] sm:$0xff] }
 0x325   :  { %v1018_v52 = vld [vmem:[#allocation5 + $0xcc8] sm:$0xff] }
 0x326   :  { %v5103_v9 = vadd.f32 %v5102_v4, %v2015_v62  ;;  %v1518_v62 = vsub.f32 %v494_v55, %v1006_v56  ;;  %v2029_v4 = vmul.f32 %v1517_v57, %v1517_v57  ;;  %v507_v56 = vld [vmem:[#allocation2 + $0xcd0] sm:$0xff] }
 0x327   :  { %v1019_v57 = vld [vmem:[#allocation5 + $0xcd0] sm:$0xff] }
 0x328   :  { %v5104_v14 = vadd.f32 %v5103_v9, %v2016_v3  ;;  %v1519_v3 = vsub.f32 %v495_v60, %v1007_v61  ;;  %v2030_v9 = vmul.f32 %v1518_v62, %v1518_v62  ;;  %v508_v61 = vld [vmem:[#allocation2 + $0xcd8] sm:$0xff] }
 0x329   :  { %v1020_v62 = vld [vmem:[#allocation5 + $0xcd8] sm:$0xff] }
 0x32a   :  { %v5105_v19 = vadd.f32 %v5104_v14, %v2017_v8  ;;  %v1520_v8 = vsub.f32 %v496_v1, %v1008_v2  ;;  %v2031_v14 = vmul.f32 %v1519_v3, %v1519_v3  ;;  %v509_v2 = vld [vmem:[#allocation2 + $0xce0] sm:$0xff] }
 0x32b   :  { %v1021_v3 = vld [vmem:[#allocation5 + $0xce0] sm:$0xff] }
 0x32c   :  { %v5106_v24 = vadd.f32 %v5105_v19, %v2018_v13  ;;  %v1521_v13 = vsub.f32 %v497_v6, %v1009_v7  ;;  %v2032_v19 = vmul.f32 %v1520_v8, %v1520_v8  ;;  %v510_v7 = vld [vmem:[#allocation2 + $0xce8] sm:$0xff] }
 0x32d   :  { %v1022_v8 = vld [vmem:[#allocation5 + $0xce8] sm:$0xff] }
 0x32e   :  { %v5107_v29 = vadd.f32 %v5106_v24, %v2019_v18  ;;  %v1522_v18 = vsub.f32 %v498_v11, %v1010_v12  ;;  %v2033_v24 = vmul.f32 %v1521_v13, %v1521_v13  ;;  %v511_v12 = vld [vmem:[#allocation2 + $0xcf0] sm:$0xff] }
 0x32f   :  { %v1023_v13 = vld [vmem:[#allocation5 + $0xcf0] sm:$0xff] }
 0x330   :  { %v5108_v34 = vadd.f32 %v5107_v29, %v2020_v23  ;;  %v1523_v23 = vsub.f32 %v499_v16, %v1011_v17  ;;  %v2034_v29 = vmul.f32 %v1522_v18, %v1522_v18  ;;  %v512_v17 = vld [vmem:[#allocation2 + $0xcf8] sm:$0xff] }
 0x331   :  { %v1024_v18 = vld [vmem:[#allocation5 + $0xcf8] sm:$0xff] }
 0x332   :  { %v5109_v39 = vadd.f32 %v5108_v34, %v2021_v28  ;;  %v1524_v28 = vsub.f32 %v500_v21, %v1012_v22  ;;  %v2035_v34 = vmul.f32 %v1523_v23, %v1523_v23  ;;  %v513_v22 = vld [vmem:[#allocation2 + $0xd00] sm:$0xff] }
 0x333   :  { %v1025_v23 = vld [vmem:[#allocation5 + $0xd00] sm:$0xff] }
 0x334   :  { %v5110_v44 = vadd.f32 %v5109_v39, %v2022_v33  ;;  %v1525_v33 = vsub.f32 %v501_v26, %v1013_v27  ;;  %v2036_v39 = vmul.f32 %v1524_v28, %v1524_v28  ;;  %v514_v27 = vld [vmem:[#allocation2 + $0xd08] sm:$0xff] }
 0x335   :  { %v1026_v28 = vld [vmem:[#allocation5 + $0xd08] sm:$0xff] }
 0x336   :  { %v5111_v49 = vadd.f32 %v5110_v44, %v2023_v38  ;;  %v1526_v38 = vsub.f32 %v502_v31, %v1014_v32  ;;  %v2037_v44 = vmul.f32 %v1525_v33, %v1525_v33  ;;  %v515_v32 = vld [vmem:[#allocation2 + $0xd10] sm:$0xff] }
 0x337   :  { %v1027_v33 = vld [vmem:[#allocation5 + $0xd10] sm:$0xff] }
 0x338   :  { %v5112_v54 = vadd.f32 %v5111_v49, %v2024_v43  ;;  %v1527_v43 = vsub.f32 %v503_v36, %v1015_v37  ;;  %v2038_v49 = vmul.f32 %v1526_v38, %v1526_v38  ;;  %v516_v37 = vld [vmem:[#allocation2 + $0xd18] sm:$0xff] }
 0x339   :  { %v1028_v38 = vld [vmem:[#allocation5 + $0xd18] sm:$0xff] }
 0x33a   :  { %v5113_v59 = vadd.f32 %v5112_v54, %v2025_v48  ;;  %v1528_v48 = vsub.f32 %v504_v41, %v1016_v42  ;;  %v2039_v54 = vmul.f32 %v1527_v43, %v1527_v43  ;;  %v517_v42 = vld [vmem:[#allocation2 + $0xd20] sm:$0xff] }
 0x33b   :  { %v1029_v43 = vld [vmem:[#allocation5 + $0xd20] sm:$0xff] }
 0x33c   :  { %v5114_v0 = vadd.f32 %v5113_v59, %v2026_v53  ;;  %v1529_v53 = vsub.f32 %v505_v46, %v1017_v47  ;;  %v2040_v59 = vmul.f32 %v1528_v48, %v1528_v48  ;;  %v518_v47 = vld [vmem:[#allocation2 + $0xd28] sm:$0xff] }
 0x33d   :  { %v1030_v48 = vld [vmem:[#allocation5 + $0xd28] sm:$0xff] }
 0x33e   :  { %v5115_v5 = vadd.f32 %v5114_v0, %v2027_v58  ;;  %v1530_v58 = vsub.f32 %v506_v51, %v1018_v52  ;;  %v2041_v0 = vmul.f32 %v1529_v53, %v1529_v53  ;;  %v519_v52 = vld [vmem:[#allocation2 + $0xd30] sm:$0xff] }
 0x33f   :  { %v1031_v53 = vld [vmem:[#allocation5 + $0xd30] sm:$0xff] }
 0x340   :  { %v5116_v10 = vadd.f32 %v5115_v5, %v2028_v63  ;;  %v1531_v63 = vsub.f32 %v507_v56, %v1019_v57  ;;  %v2042_v5 = vmul.f32 %v1530_v58, %v1530_v58  ;;  %v520_v57 = vld [vmem:[#allocation2 + $0xd38] sm:$0xff] }
 0x341   :  { %v1032_v58 = vld [vmem:[#allocation5 + $0xd38] sm:$0xff] }
 0x342   :  { %v5117_v15 = vadd.f32 %v5116_v10, %v2029_v4  ;;  %v1532_v4 = vsub.f32 %v508_v61, %v1020_v62  ;;  %v2043_v10 = vmul.f32 %v1531_v63, %v1531_v63  ;;  %v521_v62 = vld [vmem:[#allocation2 + $0xd40] sm:$0xff] }
 0x343   :  { %v1033_v63 = vld [vmem:[#allocation5 + $0xd40] sm:$0xff] }
 0x344   :  { %v5118_v20 = vadd.f32 %v5117_v15, %v2030_v9  ;;  %v1533_v9 = vsub.f32 %v509_v2, %v1021_v3  ;;  %v2044_v15 = vmul.f32 %v1532_v4, %v1532_v4  ;;  %v522_v3 = vld [vmem:[#allocation2 + $0xd48] sm:$0xff] }
 0x345   :  { %v1034_v4 = vld [vmem:[#allocation5 + $0xd48] sm:$0xff] }
 0x346   :  { %v5119_v25 = vadd.f32 %v5118_v20, %v2031_v14  ;;  %v1534_v14 = vsub.f32 %v510_v7, %v1022_v8  ;;  %v2045_v20 = vmul.f32 %v1533_v9, %v1533_v9  ;;  %v523_v8 = vld [vmem:[#allocation2 + $0xd50] sm:$0xff] }
 0x347   :  { %v1035_v9 = vld [vmem:[#allocation5 + $0xd50] sm:$0xff] }
 0x348   :  { %v5120_v30 = vadd.f32 %v5119_v25, %v2032_v19  ;;  %v1535_v19 = vsub.f32 %v511_v12, %v1023_v13  ;;  %v2046_v25 = vmul.f32 %v1534_v14, %v1534_v14  ;;  %v524_v13 = vld [vmem:[#allocation2 + $0xd58] sm:$0xff] }
 0x349   :  { %v1036_v14 = vld [vmem:[#allocation5 + $0xd58] sm:$0xff] }
 0x34a   :  { %v5121_v35 = vadd.f32 %v5120_v30, %v2033_v24  ;;  %v1536_v24 = vsub.f32 %v512_v17, %v1024_v18  ;;  %v2047_v30 = vmul.f32 %v1535_v19, %v1535_v19  ;;  %v525_v18 = vld [vmem:[#allocation2 + $0xd60] sm:$0xff] }
 0x34b   :  { %v1037_v19 = vld [vmem:[#allocation5 + $0xd60] sm:$0xff] }
 0x34c   :  { %v5122_v40 = vadd.f32 %v5121_v35, %v2034_v29  ;;  %v1537_v29 = vsub.f32 %v513_v22, %v1025_v23  ;;  %v2048_v35 = vmul.f32 %v1536_v24, %v1536_v24  ;;  %v526_v23 = vld [vmem:[#allocation2 + $0xd68] sm:$0xff] }
 0x34d   :  { %v1038_v24 = vld [vmem:[#allocation5 + $0xd68] sm:$0xff] }
 0x34e   :  { %v5123_v45 = vadd.f32 %v5122_v40, %v2035_v34  ;;  %v1538_v34 = vsub.f32 %v514_v27, %v1026_v28  ;;  %v2049_v40 = vmul.f32 %v1537_v29, %v1537_v29  ;;  %v527_v28 = vld [vmem:[#allocation2 + $0xd70] sm:$0xff] }
 0x34f   :  { %v1039_v29 = vld [vmem:[#allocation5 + $0xd70] sm:$0xff] }
 0x350   :  { %v5124_v50 = vadd.f32 %v5123_v45, %v2036_v39  ;;  %v1539_v39 = vsub.f32 %v515_v32, %v1027_v33  ;;  %v2050_v45 = vmul.f32 %v1538_v34, %v1538_v34  ;;  %v528_v33 = vld [vmem:[#allocation2 + $0xd78] sm:$0xff] }
 0x351   :  { %v1040_v34 = vld [vmem:[#allocation5 + $0xd78] sm:$0xff] }
 0x352   :  { %v5125_v55 = vadd.f32 %v5124_v50, %v2037_v44  ;;  %v1540_v44 = vsub.f32 %v516_v37, %v1028_v38  ;;  %v2051_v50 = vmul.f32 %v1539_v39, %v1539_v39  ;;  %v529_v38 = vld [vmem:[#allocation2 + $0xd80] sm:$0xff] }
 0x353   :  { %v1041_v39 = vld [vmem:[#allocation5 + $0xd80] sm:$0xff] }
 0x354   :  { %v5126_v60 = vadd.f32 %v5125_v55, %v2038_v49  ;;  %v1541_v49 = vsub.f32 %v517_v42, %v1029_v43  ;;  %v2052_v55 = vmul.f32 %v1540_v44, %v1540_v44  ;;  %v530_v43 = vld [vmem:[#allocation2 + $0xd88] sm:$0xff] }
 0x355   :  { %v1042_v44 = vld [vmem:[#allocation5 + $0xd88] sm:$0xff] }
 0x356   :  { %v5127_v1 = vadd.f32 %v5126_v60, %v2039_v54  ;;  %v1542_v54 = vsub.f32 %v518_v47, %v1030_v48  ;;  %v2053_v60 = vmul.f32 %v1541_v49, %v1541_v49  ;;  %v531_v48 = vld [vmem:[#allocation2 + $0xd90] sm:$0xff] }
 0x357   :  { %v1043_v49 = vld [vmem:[#allocation5 + $0xd90] sm:$0xff] }
 0x358   :  { %v5128_v6 = vadd.f32 %v5127_v1, %v2040_v59  ;;  %v1543_v59 = vsub.f32 %v519_v52, %v1031_v53  ;;  %v2054_v1 = vmul.f32 %v1542_v54, %v1542_v54  ;;  %v532_v53 = vld [vmem:[#allocation2 + $0xd98] sm:$0xff] }
 0x359   :  { %v1044_v54 = vld [vmem:[#allocation5 + $0xd98] sm:$0xff] }
 0x35a   :  { %v5129_v11 = vadd.f32 %v5128_v6, %v2041_v0  ;;  %v1544_v0 = vsub.f32 %v520_v57, %v1032_v58  ;;  %v2055_v6 = vmul.f32 %v1543_v59, %v1543_v59  ;;  %v533_v58 = vld [vmem:[#allocation2 + $0xda0] sm:$0xff] }
 0x35b   :  { %v1045_v59 = vld [vmem:[#allocation5 + $0xda0] sm:$0xff] }
 0x35c   :  { %v5130_v16 = vadd.f32 %v5129_v11, %v2042_v5  ;;  %v1545_v5 = vsub.f32 %v521_v62, %v1033_v63  ;;  %v2056_v11 = vmul.f32 %v1544_v0, %v1544_v0  ;;  %v534_v63 = vld [vmem:[#allocation2 + $0xda8] sm:$0xff] }
 0x35d   :  { %v1046_v0 = vld [vmem:[#allocation5 + $0xda8] sm:$0xff] }
 0x35e   :  { %v5131_v21 = vadd.f32 %v5130_v16, %v2043_v10  ;;  %v1546_v10 = vsub.f32 %v522_v3, %v1034_v4  ;;  %v2057_v16 = vmul.f32 %v1545_v5, %v1545_v5  ;;  %v535_v4 = vld [vmem:[#allocation2 + $0xdb0] sm:$0xff] }
 0x35f   :  { %v1047_v5 = vld [vmem:[#allocation5 + $0xdb0] sm:$0xff] }
 0x360   :  { %v5132_v26 = vadd.f32 %v5131_v21, %v2044_v15  ;;  %v1547_v15 = vsub.f32 %v523_v8, %v1035_v9  ;;  %v2058_v21 = vmul.f32 %v1546_v10, %v1546_v10  ;;  %v536_v9 = vld [vmem:[#allocation2 + $0xdb8] sm:$0xff] }
 0x361   :  { %v1048_v10 = vld [vmem:[#allocation5 + $0xdb8] sm:$0xff] }
 0x362   :  { %v5133_v31 = vadd.f32 %v5132_v26, %v2045_v20  ;;  %v1548_v20 = vsub.f32 %v524_v13, %v1036_v14  ;;  %v2059_v26 = vmul.f32 %v1547_v15, %v1547_v15  ;;  %v537_v14 = vld [vmem:[#allocation2 + $0xdc0] sm:$0xff] }
 0x363   :  { %v1049_v15 = vld [vmem:[#allocation5 + $0xdc0] sm:$0xff] }
 0x364   :  { %v5134_v36 = vadd.f32 %v5133_v31, %v2046_v25  ;;  %v1549_v25 = vsub.f32 %v525_v18, %v1037_v19  ;;  %v2060_v31 = vmul.f32 %v1548_v20, %v1548_v20  ;;  %v538_v19 = vld [vmem:[#allocation2 + $0xdc8] sm:$0xff] }
 0x365   :  { %v1050_v20 = vld [vmem:[#allocation5 + $0xdc8] sm:$0xff] }
 0x366   :  { %v5135_v41 = vadd.f32 %v5134_v36, %v2047_v30  ;;  %v1550_v30 = vsub.f32 %v526_v23, %v1038_v24  ;;  %v2061_v36 = vmul.f32 %v1549_v25, %v1549_v25  ;;  %v539_v24 = vld [vmem:[#allocation2 + $0xdd0] sm:$0xff] }
 0x367   :  { %v1051_v25 = vld [vmem:[#allocation5 + $0xdd0] sm:$0xff] }
 0x368   :  { %v5136_v46 = vadd.f32 %v5135_v41, %v2048_v35  ;;  %v1551_v35 = vsub.f32 %v527_v28, %v1039_v29  ;;  %v2062_v41 = vmul.f32 %v1550_v30, %v1550_v30  ;;  %v540_v29 = vld [vmem:[#allocation2 + $0xdd8] sm:$0xff] }
 0x369   :  { %v1052_v30 = vld [vmem:[#allocation5 + $0xdd8] sm:$0xff] }
 0x36a   :  { %v5137_v51 = vadd.f32 %v5136_v46, %v2049_v40  ;;  %v1552_v40 = vsub.f32 %v528_v33, %v1040_v34  ;;  %v2063_v46 = vmul.f32 %v1551_v35, %v1551_v35  ;;  %v541_v34 = vld [vmem:[#allocation2 + $0xde0] sm:$0xff] }
 0x36b   :  { %v1053_v35 = vld [vmem:[#allocation5 + $0xde0] sm:$0xff] }
 0x36c   :  { %v5138_v56 = vadd.f32 %v5137_v51, %v2050_v45  ;;  %v1553_v45 = vsub.f32 %v529_v38, %v1041_v39  ;;  %v2064_v51 = vmul.f32 %v1552_v40, %v1552_v40  ;;  %v542_v39 = vld [vmem:[#allocation2 + $0xde8] sm:$0xff] }
 0x36d   :  { %v1054_v40 = vld [vmem:[#allocation5 + $0xde8] sm:$0xff] }
 0x36e   :  { %v5139_v61 = vadd.f32 %v5138_v56, %v2051_v50  ;;  %v1554_v50 = vsub.f32 %v530_v43, %v1042_v44  ;;  %v2065_v56 = vmul.f32 %v1553_v45, %v1553_v45  ;;  %v543_v44 = vld [vmem:[#allocation2 + $0xdf0] sm:$0xff] }
 0x36f   :  { %v1055_v45 = vld [vmem:[#allocation5 + $0xdf0] sm:$0xff] }
 0x370   :  { %v5140_v2 = vadd.f32 %v5139_v61, %v2052_v55  ;;  %v1555_v55 = vsub.f32 %v531_v48, %v1043_v49  ;;  %v2066_v61 = vmul.f32 %v1554_v50, %v1554_v50  ;;  %v544_v49 = vld [vmem:[#allocation2 + $0xdf8] sm:$0xff] }
 0x371   :  { %v1056_v50 = vld [vmem:[#allocation5 + $0xdf8] sm:$0xff] }
 0x372   :  { %v5141_v7 = vadd.f32 %v5140_v2, %v2053_v60  ;;  %v1556_v60 = vsub.f32 %v532_v53, %v1044_v54  ;;  %v2067_v2 = vmul.f32 %v1555_v55, %v1555_v55  ;;  %v545_v54 = vld [vmem:[#allocation2 + $0xe00] sm:$0xff] }
 0x373   :  { %v1057_v55 = vld [vmem:[#allocation5 + $0xe00] sm:$0xff] }
 0x374   :  { %v5142_v12 = vadd.f32 %v5141_v7, %v2054_v1  ;;  %v1557_v1 = vsub.f32 %v533_v58, %v1045_v59  ;;  %v2068_v7 = vmul.f32 %v1556_v60, %v1556_v60  ;;  %v546_v59 = vld [vmem:[#allocation2 + $0xe08] sm:$0xff] }
 0x375   :  { %v1058_v60 = vld [vmem:[#allocation5 + $0xe08] sm:$0xff] }
 0x376   :  { %v5143_v17 = vadd.f32 %v5142_v12, %v2055_v6  ;;  %v1558_v6 = vsub.f32 %v534_v63, %v1046_v0  ;;  %v2069_v12 = vmul.f32 %v1557_v1, %v1557_v1  ;;  %v547_v0 = vld [vmem:[#allocation2 + $0xe10] sm:$0xff] }
 0x377   :  { %v1059_v1 = vld [vmem:[#allocation5 + $0xe10] sm:$0xff] }
 0x378   :  { %v5144_v22 = vadd.f32 %v5143_v17, %v2056_v11  ;;  %v1559_v11 = vsub.f32 %v535_v4, %v1047_v5  ;;  %v2070_v17 = vmul.f32 %v1558_v6, %v1558_v6  ;;  %v548_v5 = vld [vmem:[#allocation2 + $0xe18] sm:$0xff] }
 0x379   :  { %v1060_v6 = vld [vmem:[#allocation5 + $0xe18] sm:$0xff] }
 0x37a   :  { %v5145_v27 = vadd.f32 %v5144_v22, %v2057_v16  ;;  %v1560_v16 = vsub.f32 %v536_v9, %v1048_v10  ;;  %v2071_v22 = vmul.f32 %v1559_v11, %v1559_v11  ;;  %v549_v10 = vld [vmem:[#allocation2 + $0xe20] sm:$0xff] }
 0x37b   :  { %v1061_v11 = vld [vmem:[#allocation5 + $0xe20] sm:$0xff] }
 0x37c   :  { %v5146_v32 = vadd.f32 %v5145_v27, %v2058_v21  ;;  %v1561_v21 = vsub.f32 %v537_v14, %v1049_v15  ;;  %v2072_v27 = vmul.f32 %v1560_v16, %v1560_v16  ;;  %v550_v15 = vld [vmem:[#allocation2 + $0xe28] sm:$0xff] }
 0x37d   :  { %v1062_v16 = vld [vmem:[#allocation5 + $0xe28] sm:$0xff] }
 0x37e   :  { %v5147_v37 = vadd.f32 %v5146_v32, %v2059_v26  ;;  %v1562_v26 = vsub.f32 %v538_v19, %v1050_v20  ;;  %v2073_v32 = vmul.f32 %v1561_v21, %v1561_v21  ;;  %v551_v20 = vld [vmem:[#allocation2 + $0xe30] sm:$0xff] }
 0x37f   :  { %v1063_v21 = vld [vmem:[#allocation5 + $0xe30] sm:$0xff] }
 0x380   :  { %v5148_v42 = vadd.f32 %v5147_v37, %v2060_v31  ;;  %v1563_v31 = vsub.f32 %v539_v24, %v1051_v25  ;;  %v2074_v37 = vmul.f32 %v1562_v26, %v1562_v26  ;;  %v552_v25 = vld [vmem:[#allocation2 + $0xe38] sm:$0xff] }
 0x381   :  { %v1064_v26 = vld [vmem:[#allocation5 + $0xe38] sm:$0xff] }
 0x382   :  { %v5149_v47 = vadd.f32 %v5148_v42, %v2061_v36  ;;  %v1564_v36 = vsub.f32 %v540_v29, %v1052_v30  ;;  %v2075_v42 = vmul.f32 %v1563_v31, %v1563_v31  ;;  %v553_v30 = vld [vmem:[#allocation2 + $0xe40] sm:$0xff] }
 0x383   :  { %v1065_v31 = vld [vmem:[#allocation5 + $0xe40] sm:$0xff] }
 0x384   :  { %v5150_v52 = vadd.f32 %v5149_v47, %v2062_v41  ;;  %v1565_v41 = vsub.f32 %v541_v34, %v1053_v35  ;;  %v2076_v47 = vmul.f32 %v1564_v36, %v1564_v36  ;;  %v554_v35 = vld [vmem:[#allocation2 + $0xe48] sm:$0xff] }
 0x385   :  { %v1066_v36 = vld [vmem:[#allocation5 + $0xe48] sm:$0xff] }
 0x386   :  { %v5151_v57 = vadd.f32 %v5150_v52, %v2063_v46  ;;  %v1566_v46 = vsub.f32 %v542_v39, %v1054_v40  ;;  %v2077_v52 = vmul.f32 %v1565_v41, %v1565_v41  ;;  %v555_v40 = vld [vmem:[#allocation2 + $0xe50] sm:$0xff] }
 0x387   :  { %v1067_v41 = vld [vmem:[#allocation5 + $0xe50] sm:$0xff] }
 0x388   :  { %v5152_v62 = vadd.f32 %v5151_v57, %v2064_v51  ;;  %v1567_v51 = vsub.f32 %v543_v44, %v1055_v45  ;;  %v2078_v57 = vmul.f32 %v1566_v46, %v1566_v46  ;;  %v556_v45 = vld [vmem:[#allocation2 + $0xe58] sm:$0xff] }
 0x389   :  { %v1068_v46 = vld [vmem:[#allocation5 + $0xe58] sm:$0xff] }
 0x38a   :  { %v5153_v3 = vadd.f32 %v5152_v62, %v2065_v56  ;;  %v1568_v56 = vsub.f32 %v544_v49, %v1056_v50  ;;  %v2079_v62 = vmul.f32 %v1567_v51, %v1567_v51  ;;  %v557_v50 = vld [vmem:[#allocation2 + $0xe60] sm:$0xff] }
 0x38b   :  { %v1069_v51 = vld [vmem:[#allocation5 + $0xe60] sm:$0xff] }
 0x38c   :  { %v5154_v8 = vadd.f32 %v5153_v3, %v2066_v61  ;;  %v1569_v61 = vsub.f32 %v545_v54, %v1057_v55  ;;  %v2080_v3 = vmul.f32 %v1568_v56, %v1568_v56  ;;  %v558_v55 = vld [vmem:[#allocation2 + $0xe68] sm:$0xff] }
 0x38d   :  { %v1070_v56 = vld [vmem:[#allocation5 + $0xe68] sm:$0xff] }
 0x38e   :  { %v5155_v13 = vadd.f32 %v5154_v8, %v2067_v2  ;;  %v1570_v2 = vsub.f32 %v546_v59, %v1058_v60  ;;  %v2081_v8 = vmul.f32 %v1569_v61, %v1569_v61  ;;  %v559_v60 = vld [vmem:[#allocation2 + $0xe70] sm:$0xff] }
 0x38f   :  { %v1071_v61 = vld [vmem:[#allocation5 + $0xe70] sm:$0xff] }
 0x390   :  { %v5156_v18 = vadd.f32 %v5155_v13, %v2068_v7  ;;  %v1571_v7 = vsub.f32 %v547_v0, %v1059_v1  ;;  %v2082_v13 = vmul.f32 %v1570_v2, %v1570_v2  ;;  %v560_v1 = vld [vmem:[#allocation2 + $0xe78] sm:$0xff] }
 0x391   :  { %v1072_v2 = vld [vmem:[#allocation5 + $0xe78] sm:$0xff] }
 0x392   :  { %v5157_v23 = vadd.f32 %v5156_v18, %v2069_v12  ;;  %v1572_v12 = vsub.f32 %v548_v5, %v1060_v6  ;;  %v2083_v18 = vmul.f32 %v1571_v7, %v1571_v7  ;;  %v561_v6 = vld [vmem:[#allocation2 + $0xe80] sm:$0xff] }
 0x393   :  { %v1073_v7 = vld [vmem:[#allocation5 + $0xe80] sm:$0xff] }
 0x394   :  { %v5158_v28 = vadd.f32 %v5157_v23, %v2070_v17  ;;  %v1573_v17 = vsub.f32 %v549_v10, %v1061_v11  ;;  %v2084_v23 = vmul.f32 %v1572_v12, %v1572_v12  ;;  %v562_v11 = vld [vmem:[#allocation2 + $0xe88] sm:$0xff] }
 0x395   :  { %v1074_v12 = vld [vmem:[#allocation5 + $0xe88] sm:$0xff] }
 0x396   :  { %v5159_v33 = vadd.f32 %v5158_v28, %v2071_v22  ;;  %v1574_v22 = vsub.f32 %v550_v15, %v1062_v16  ;;  %v2085_v28 = vmul.f32 %v1573_v17, %v1573_v17  ;;  %v563_v16 = vld [vmem:[#allocation2 + $0xe90] sm:$0xff] }
 0x397   :  { %v1075_v17 = vld [vmem:[#allocation5 + $0xe90] sm:$0xff] }
 0x398   :  { %v5160_v38 = vadd.f32 %v5159_v33, %v2072_v27  ;;  %v1575_v27 = vsub.f32 %v551_v20, %v1063_v21  ;;  %v2086_v33 = vmul.f32 %v1574_v22, %v1574_v22  ;;  %v564_v21 = vld [vmem:[#allocation2 + $0xe98] sm:$0xff] }
 0x399   :  { %v1076_v22 = vld [vmem:[#allocation5 + $0xe98] sm:$0xff] }
 0x39a   :  { %v5161_v43 = vadd.f32 %v5160_v38, %v2073_v32  ;;  %v1576_v32 = vsub.f32 %v552_v25, %v1064_v26  ;;  %v2087_v38 = vmul.f32 %v1575_v27, %v1575_v27  ;;  %v565_v26 = vld [vmem:[#allocation2 + $0xea0] sm:$0xff] }
 0x39b   :  { %v1077_v27 = vld [vmem:[#allocation5 + $0xea0] sm:$0xff] }
 0x39c   :  { %v5162_v48 = vadd.f32 %v5161_v43, %v2074_v37  ;;  %v1577_v37 = vsub.f32 %v553_v30, %v1065_v31  ;;  %v2088_v43 = vmul.f32 %v1576_v32, %v1576_v32  ;;  %v566_v31 = vld [vmem:[#allocation2 + $0xea8] sm:$0xff] }
 0x39d   :  { %v1078_v32 = vld [vmem:[#allocation5 + $0xea8] sm:$0xff] }
 0x39e   :  { %v5163_v53 = vadd.f32 %v5162_v48, %v2075_v42  ;;  %v1578_v42 = vsub.f32 %v554_v35, %v1066_v36  ;;  %v2089_v48 = vmul.f32 %v1577_v37, %v1577_v37  ;;  %v567_v36 = vld [vmem:[#allocation2 + $0xeb0] sm:$0xff] }
 0x39f   :  { %v1079_v37 = vld [vmem:[#allocation5 + $0xeb0] sm:$0xff] }
 0x3a0   :  { %v5164_v58 = vadd.f32 %v5163_v53, %v2076_v47  ;;  %v1579_v47 = vsub.f32 %v555_v40, %v1067_v41  ;;  %v2090_v53 = vmul.f32 %v1578_v42, %v1578_v42  ;;  %v568_v41 = vld [vmem:[#allocation2 + $0xeb8] sm:$0xff] }
 0x3a1   :  { %v1080_v42 = vld [vmem:[#allocation5 + $0xeb8] sm:$0xff] }
 0x3a2   :  { %v5165_v63 = vadd.f32 %v5164_v58, %v2077_v52  ;;  %v1580_v52 = vsub.f32 %v556_v45, %v1068_v46  ;;  %v2091_v58 = vmul.f32 %v1579_v47, %v1579_v47  ;;  %v569_v46 = vld [vmem:[#allocation2 + $0xec0] sm:$0xff] }
 0x3a3   :  { %v1081_v47 = vld [vmem:[#allocation5 + $0xec0] sm:$0xff] }
 0x3a4   :  { %v5166_v4 = vadd.f32 %v5165_v63, %v2078_v57  ;;  %v1581_v57 = vsub.f32 %v557_v50, %v1069_v51  ;;  %v2092_v63 = vmul.f32 %v1580_v52, %v1580_v52  ;;  %v570_v51 = vld [vmem:[#allocation2 + $0xec8] sm:$0xff] }
 0x3a5   :  { %v1082_v52 = vld [vmem:[#allocation5 + $0xec8] sm:$0xff] }
 0x3a6   :  { %v5167_v9 = vadd.f32 %v5166_v4, %v2079_v62  ;;  %v1582_v62 = vsub.f32 %v558_v55, %v1070_v56  ;;  %v2093_v4 = vmul.f32 %v1581_v57, %v1581_v57  ;;  %v571_v56 = vld [vmem:[#allocation2 + $0xed0] sm:$0xff] }
 0x3a7   :  { %v1083_v57 = vld [vmem:[#allocation5 + $0xed0] sm:$0xff] }
 0x3a8   :  { %v5168_v14 = vadd.f32 %v5167_v9, %v2080_v3  ;;  %v1583_v3 = vsub.f32 %v559_v60, %v1071_v61  ;;  %v2094_v9 = vmul.f32 %v1582_v62, %v1582_v62  ;;  %v572_v61 = vld [vmem:[#allocation2 + $0xed8] sm:$0xff] }
 0x3a9   :  { %v1084_v62 = vld [vmem:[#allocation5 + $0xed8] sm:$0xff] }
 0x3aa   :  { %v5169_v19 = vadd.f32 %v5168_v14, %v2081_v8  ;;  %v1584_v8 = vsub.f32 %v560_v1, %v1072_v2  ;;  %v2095_v14 = vmul.f32 %v1583_v3, %v1583_v3  ;;  %v573_v2 = vld [vmem:[#allocation2 + $0xee0] sm:$0xff] }
 0x3ab   :  { %v1085_v3 = vld [vmem:[#allocation5 + $0xee0] sm:$0xff] }
 0x3ac   :  { %v5170_v24 = vadd.f32 %v5169_v19, %v2082_v13  ;;  %v1585_v13 = vsub.f32 %v561_v6, %v1073_v7  ;;  %v2096_v19 = vmul.f32 %v1584_v8, %v1584_v8  ;;  %v574_v7 = vld [vmem:[#allocation2 + $0xee8] sm:$0xff] }
 0x3ad   :  { %v1086_v8 = vld [vmem:[#allocation5 + $0xee8] sm:$0xff] }
 0x3ae   :  { %v5171_v29 = vadd.f32 %v5170_v24, %v2083_v18  ;;  %v1586_v18 = vsub.f32 %v562_v11, %v1074_v12  ;;  %v2097_v24 = vmul.f32 %v1585_v13, %v1585_v13  ;;  %v575_v12 = vld [vmem:[#allocation2 + $0xef0] sm:$0xff] }
 0x3af   :  { %v1087_v13 = vld [vmem:[#allocation5 + $0xef0] sm:$0xff] }
 0x3b0   :  { %v5172_v34 = vadd.f32 %v5171_v29, %v2084_v23  ;;  %v1587_v23 = vsub.f32 %v563_v16, %v1075_v17  ;;  %v2098_v29 = vmul.f32 %v1586_v18, %v1586_v18  ;;  %v576_v17 = vld [vmem:[#allocation2 + $0xef8] sm:$0xff] }
 0x3b1   :  { %v1088_v18 = vld [vmem:[#allocation5 + $0xef8] sm:$0xff] }
 0x3b2   :  { %v5173_v39 = vadd.f32 %v5172_v34, %v2085_v28  ;;  %v1588_v28 = vsub.f32 %v564_v21, %v1076_v22  ;;  %v2099_v34 = vmul.f32 %v1587_v23, %v1587_v23  ;;  %v577_v22 = vld [vmem:[#allocation2 + $0xf00] sm:$0xff] }
 0x3b3   :  { %v1089_v23 = vld [vmem:[#allocation5 + $0xf00] sm:$0xff] }
 0x3b4   :  { %v5174_v44 = vadd.f32 %v5173_v39, %v2086_v33  ;;  %v1589_v33 = vsub.f32 %v565_v26, %v1077_v27  ;;  %v2100_v39 = vmul.f32 %v1588_v28, %v1588_v28  ;;  %v578_v27 = vld [vmem:[#allocation2 + $0xf08] sm:$0xff] }
 0x3b5   :  { %v1090_v28 = vld [vmem:[#allocation5 + $0xf08] sm:$0xff] }
 0x3b6   :  { %v5175_v49 = vadd.f32 %v5174_v44, %v2087_v38  ;;  %v1590_v38 = vsub.f32 %v566_v31, %v1078_v32  ;;  %v2101_v44 = vmul.f32 %v1589_v33, %v1589_v33  ;;  %v579_v32 = vld [vmem:[#allocation2 + $0xf10] sm:$0xff] }
 0x3b7   :  { %v1091_v33 = vld [vmem:[#allocation5 + $0xf10] sm:$0xff] }
 0x3b8   :  { %v5176_v54 = vadd.f32 %v5175_v49, %v2088_v43  ;;  %v1591_v43 = vsub.f32 %v567_v36, %v1079_v37  ;;  %v2102_v49 = vmul.f32 %v1590_v38, %v1590_v38  ;;  %v580_v37 = vld [vmem:[#allocation2 + $0xf18] sm:$0xff] }
 0x3b9   :  { %v1092_v38 = vld [vmem:[#allocation5 + $0xf18] sm:$0xff] }
 0x3ba   :  { %v5177_v59 = vadd.f32 %v5176_v54, %v2089_v48  ;;  %v1592_v48 = vsub.f32 %v568_v41, %v1080_v42  ;;  %v2103_v54 = vmul.f32 %v1591_v43, %v1591_v43  ;;  %v581_v42 = vld [vmem:[#allocation2 + $0xf20] sm:$0xff] }
 0x3bb   :  { %v1093_v43 = vld [vmem:[#allocation5 + $0xf20] sm:$0xff] }
 0x3bc   :  { %v5178_v0 = vadd.f32 %v5177_v59, %v2090_v53  ;;  %v1593_v53 = vsub.f32 %v569_v46, %v1081_v47  ;;  %v2104_v59 = vmul.f32 %v1592_v48, %v1592_v48  ;;  %v582_v47 = vld [vmem:[#allocation2 + $0xf28] sm:$0xff] }
 0x3bd   :  { %v1094_v48 = vld [vmem:[#allocation5 + $0xf28] sm:$0xff] }
 0x3be   :  { %v5179_v5 = vadd.f32 %v5178_v0, %v2091_v58  ;;  %v1594_v58 = vsub.f32 %v570_v51, %v1082_v52  ;;  %v2105_v0 = vmul.f32 %v1593_v53, %v1593_v53  ;;  %v583_v52 = vld [vmem:[#allocation2 + $0xf30] sm:$0xff] }
 0x3bf   :  { %v1095_v53 = vld [vmem:[#allocation5 + $0xf30] sm:$0xff] }
 0x3c0   :  { %v5180_v10 = vadd.f32 %v5179_v5, %v2092_v63  ;;  %v1595_v63 = vsub.f32 %v571_v56, %v1083_v57  ;;  %v2106_v5 = vmul.f32 %v1594_v58, %v1594_v58  ;;  %v584_v57 = vld [vmem:[#allocation2 + $0xf38] sm:$0xff] }
 0x3c1   :  { %v1096_v58 = vld [vmem:[#allocation5 + $0xf38] sm:$0xff] }
 0x3c2   :  { %v5181_v15 = vadd.f32 %v5180_v10, %v2093_v4  ;;  %v1596_v4 = vsub.f32 %v572_v61, %v1084_v62  ;;  %v2107_v10 = vmul.f32 %v1595_v63, %v1595_v63  ;;  %v585_v62 = vld [vmem:[#allocation2 + $0xf40] sm:$0xff] }
 0x3c3   :  { %v1097_v63 = vld [vmem:[#allocation5 + $0xf40] sm:$0xff] }
 0x3c4   :  { %v5182_v20 = vadd.f32 %v5181_v15, %v2094_v9  ;;  %v1597_v9 = vsub.f32 %v573_v2, %v1085_v3  ;;  %v2108_v15 = vmul.f32 %v1596_v4, %v1596_v4  ;;  %v586_v3 = vld [vmem:[#allocation2 + $0xf48] sm:$0xff] }
 0x3c5   :  { %v1098_v4 = vld [vmem:[#allocation5 + $0xf48] sm:$0xff] }
 0x3c6   :  { %v5183_v25 = vadd.f32 %v5182_v20, %v2095_v14  ;;  %v1598_v14 = vsub.f32 %v574_v7, %v1086_v8  ;;  %v2109_v20 = vmul.f32 %v1597_v9, %v1597_v9  ;;  %v587_v8 = vld [vmem:[#allocation2 + $0xf50] sm:$0xff] }
 0x3c7   :  { %v1099_v9 = vld [vmem:[#allocation5 + $0xf50] sm:$0xff] }
 0x3c8   :  { %v5184_v30 = vadd.f32 %v5183_v25, %v2096_v19  ;;  %v1599_v19 = vsub.f32 %v575_v12, %v1087_v13  ;;  %v2110_v25 = vmul.f32 %v1598_v14, %v1598_v14  ;;  %v588_v13 = vld [vmem:[#allocation2 + $0xf58] sm:$0xff] }
 0x3c9   :  { %v1100_v14 = vld [vmem:[#allocation5 + $0xf58] sm:$0xff] }
 0x3ca   :  { %v5185_v35 = vadd.f32 %v5184_v30, %v2097_v24  ;;  %v1600_v24 = vsub.f32 %v576_v17, %v1088_v18  ;;  %v2111_v30 = vmul.f32 %v1599_v19, %v1599_v19  ;;  %v589_v18 = vld [vmem:[#allocation2 + $0xf60] sm:$0xff] }
 0x3cb   :  { %v1101_v19 = vld [vmem:[#allocation5 + $0xf60] sm:$0xff] }
 0x3cc   :  { %v5186_v40 = vadd.f32 %v5185_v35, %v2098_v29  ;;  %v1601_v29 = vsub.f32 %v577_v22, %v1089_v23  ;;  %v2112_v35 = vmul.f32 %v1600_v24, %v1600_v24  ;;  %v590_v23 = vld [vmem:[#allocation2 + $0xf68] sm:$0xff] }
 0x3cd   :  { %v1102_v24 = vld [vmem:[#allocation5 + $0xf68] sm:$0xff] }
 0x3ce   :  { %v5187_v45 = vadd.f32 %v5186_v40, %v2099_v34  ;;  %v1602_v34 = vsub.f32 %v578_v27, %v1090_v28  ;;  %v2113_v40 = vmul.f32 %v1601_v29, %v1601_v29  ;;  %v591_v28 = vld [vmem:[#allocation2 + $0xf70] sm:$0xff] }
 0x3cf   :  { %v1103_v29 = vld [vmem:[#allocation5 + $0xf70] sm:$0xff] }
 0x3d0   :  { %v5188_v50 = vadd.f32 %v5187_v45, %v2100_v39  ;;  %v1603_v39 = vsub.f32 %v579_v32, %v1091_v33  ;;  %v2114_v45 = vmul.f32 %v1602_v34, %v1602_v34  ;;  %v592_v33 = vld [vmem:[#allocation2 + $0xf78] sm:$0xff] }
 0x3d1   :  { %v1104_v34 = vld [vmem:[#allocation5 + $0xf78] sm:$0xff] }
 0x3d2   :  { %v5189_v55 = vadd.f32 %v5188_v50, %v2101_v44  ;;  %v1604_v44 = vsub.f32 %v580_v37, %v1092_v38  ;;  %v2115_v50 = vmul.f32 %v1603_v39, %v1603_v39  ;;  %v593_v38 = vld [vmem:[#allocation2 + $0xf80] sm:$0xff] }
 0x3d3   :  { %v1105_v39 = vld [vmem:[#allocation5 + $0xf80] sm:$0xff] }
 0x3d4   :  { %v5190_v60 = vadd.f32 %v5189_v55, %v2102_v49  ;;  %v1605_v49 = vsub.f32 %v581_v42, %v1093_v43  ;;  %v2116_v55 = vmul.f32 %v1604_v44, %v1604_v44  ;;  %v594_v43 = vld [vmem:[#allocation2 + $0xf88] sm:$0xff] }
 0x3d5   :  { %v1106_v44 = vld [vmem:[#allocation5 + $0xf88] sm:$0xff] }
 0x3d6   :  { %v5191_v1 = vadd.f32 %v5190_v60, %v2103_v54  ;;  %v1606_v54 = vsub.f32 %v582_v47, %v1094_v48  ;;  %v2117_v60 = vmul.f32 %v1605_v49, %v1605_v49  ;;  %v595_v48 = vld [vmem:[#allocation2 + $0xf90] sm:$0xff] }
 0x3d7   :  { %v1107_v49 = vld [vmem:[#allocation5 + $0xf90] sm:$0xff] }
 0x3d8   :  { %v5192_v6 = vadd.f32 %v5191_v1, %v2104_v59  ;;  %v1607_v59 = vsub.f32 %v583_v52, %v1095_v53  ;;  %v2118_v1 = vmul.f32 %v1606_v54, %v1606_v54  ;;  %v596_v53 = vld [vmem:[#allocation2 + $0xf98] sm:$0xff] }
 0x3d9   :  { %v1108_v54 = vld [vmem:[#allocation5 + $0xf98] sm:$0xff] }
 0x3da   :  { %v5193_v11 = vadd.f32 %v5192_v6, %v2105_v0  ;;  %v1608_v0 = vsub.f32 %v584_v57, %v1096_v58  ;;  %v2119_v6 = vmul.f32 %v1607_v59, %v1607_v59  ;;  %v597_v58 = vld [vmem:[#allocation2 + $0xfa0] sm:$0xff] }
 0x3db   :  { %v1109_v59 = vld [vmem:[#allocation5 + $0xfa0] sm:$0xff] }
 0x3dc   :  { %v5194_v16 = vadd.f32 %v5193_v11, %v2106_v5  ;;  %v1609_v5 = vsub.f32 %v585_v62, %v1097_v63  ;;  %v2120_v11 = vmul.f32 %v1608_v0, %v1608_v0  ;;  %v598_v63 = vld [vmem:[#allocation2 + $0xfa8] sm:$0xff] }
 0x3dd   :  { %v1110_v0 = vld [vmem:[#allocation5 + $0xfa8] sm:$0xff] }
 0x3de   :  { %v5195_v21 = vadd.f32 %v5194_v16, %v2107_v10  ;;  %v1610_v10 = vsub.f32 %v586_v3, %v1098_v4  ;;  %v2121_v16 = vmul.f32 %v1609_v5, %v1609_v5  ;;  %v599_v4 = vld [vmem:[#allocation2 + $0xfb0] sm:$0xff] }
 0x3df   :  { %v1111_v5 = vld [vmem:[#allocation5 + $0xfb0] sm:$0xff] }
 0x3e0   :  { %v5196_v26 = vadd.f32 %v5195_v21, %v2108_v15  ;;  %v1611_v15 = vsub.f32 %v587_v8, %v1099_v9  ;;  %v2122_v21 = vmul.f32 %v1610_v10, %v1610_v10  ;;  %v600_v9 = vld [vmem:[#allocation2 + $0xfb8] sm:$0xff] }
 0x3e1   :  { %v1112_v10 = vld [vmem:[#allocation5 + $0xfb8] sm:$0xff] }
 0x3e2   :  { %v5197_v31 = vadd.f32 %v5196_v26, %v2109_v20  ;;  %v1612_v20 = vsub.f32 %v588_v13, %v1100_v14  ;;  %v2123_v26 = vmul.f32 %v1611_v15, %v1611_v15  ;;  %v601_v14 = vld [vmem:[#allocation2 + $0xfc0] sm:$0xff] }
 0x3e3   :  { %v1113_v15 = vld [vmem:[#allocation5 + $0xfc0] sm:$0xff] }
 0x3e4   :  { %v5198_v36 = vadd.f32 %v5197_v31, %v2110_v25  ;;  %v1613_v25 = vsub.f32 %v589_v18, %v1101_v19  ;;  %v2124_v31 = vmul.f32 %v1612_v20, %v1612_v20  ;;  %v602_v19 = vld [vmem:[#allocation2 + $0xfc8] sm:$0xff] }
 0x3e5   :  { %v1114_v20 = vld [vmem:[#allocation5 + $0xfc8] sm:$0xff] }
 0x3e6   :  { %v5199_v41 = vadd.f32 %v5198_v36, %v2111_v30  ;;  %v1614_v30 = vsub.f32 %v590_v23, %v1102_v24  ;;  %v2125_v36 = vmul.f32 %v1613_v25, %v1613_v25  ;;  %v603_v24 = vld [vmem:[#allocation2 + $0xfd0] sm:$0xff] }
 0x3e7   :  { %v1115_v25 = vld [vmem:[#allocation5 + $0xfd0] sm:$0xff] }
 0x3e8   :  { %v5200_v46 = vadd.f32 %v5199_v41, %v2112_v35  ;;  %v1615_v35 = vsub.f32 %v591_v28, %v1103_v29  ;;  %v2126_v41 = vmul.f32 %v1614_v30, %v1614_v30  ;;  %v604_v29 = vld [vmem:[#allocation2 + $0xfd8] sm:$0xff] }
 0x3e9   :  { %v1116_v30 = vld [vmem:[#allocation5 + $0xfd8] sm:$0xff] }
 0x3ea   :  { %v5201_v51 = vadd.f32 %v5200_v46, %v2113_v40  ;;  %v1616_v40 = vsub.f32 %v592_v33, %v1104_v34  ;;  %v2127_v46 = vmul.f32 %v1615_v35, %v1615_v35  ;;  %v605_v34 = vld [vmem:[#allocation2 + $0xfe0] sm:$0xff] }
 0x3eb   :  { %v1117_v35 = vld [vmem:[#allocation5 + $0xfe0] sm:$0xff] }
 0x3ec   :  { %v5202_v56 = vadd.f32 %v5201_v51, %v2114_v45  ;;  %v1617_v45 = vsub.f32 %v593_v38, %v1105_v39  ;;  %v2128_v51 = vmul.f32 %v1616_v40, %v1616_v40  ;;  %v606_v39 = vld [vmem:[#allocation2 + $0xfe8] sm:$0xff] }
 0x3ed   :  { %v1118_v40 = vld [vmem:[#allocation5 + $0xfe8] sm:$0xff] }
 0x3ee   :  { %v5203_v61 = vadd.f32 %v5202_v56, %v2115_v50  ;;  %v1618_v50 = vsub.f32 %v594_v43, %v1106_v44  ;;  %v2129_v56 = vmul.f32 %v1617_v45, %v1617_v45  ;;  %v607_v44 = vld [vmem:[#allocation2 + $0xff0] sm:$0xff] }
 0x3ef   :  { %v1119_v45 = vld [vmem:[#allocation5 + $0xff0] sm:$0xff] }
 0x3f0   :  { %v5204_v2 = vadd.f32 %v5203_v61, %v2116_v55  ;;  %v1619_v55 = vsub.f32 %v595_v48, %v1107_v49  ;;  %v2130_v61 = vmul.f32 %v1618_v50, %v1618_v50  ;;  %v608_v49 = vld [vmem:[#allocation2 + $0xff8] sm:$0xff] }
 0x3f1   :  { %v1120_v50 = vld [vmem:[#allocation5 + $0xff8] sm:$0xff] }
 0x3f2   :  { %v5205_v7 = vadd.f32 %v5204_v2, %v2117_v60  ;;  %v1620_v60 = vsub.f32 %v596_v53, %v1108_v54  ;;  %v2131_v2 = vmul.f32 %v1619_v55, %v1619_v55  ;;  %v1632_v54 = vsub.f32 %v608_v49, %v1120_v50 }
 0x3f4   :  { %v5206_v12 = vadd.f32 %v5205_v7, %v2118_v1  ;;  %v1621_v1 = vsub.f32 %v597_v58, %v1109_v59  ;;  %v2132_v7 = vmul.f32 %v1620_v60, %v1620_v60  ;;  %v2144_v59 = vmul.f32 %v1632_v54, %v1632_v54 }
 0x3f6   :  { %v5207_v17 = vadd.f32 %v5206_v12, %v2119_v6  ;;  %v1622_v6 = vsub.f32 %v598_v63, %v1110_v0  ;;  %v2133_v12 = vmul.f32 %v1621_v1, %v1621_v1 }
 0x3f8   :  { %v5208_v22 = vadd.f32 %v5207_v17, %v2120_v11  ;;  %v1623_v11 = vsub.f32 %v599_v4, %v1111_v5  ;;  %v2134_v17 = vmul.f32 %v1622_v6, %v1622_v6 }
 0x3fa   :  { %v5209_v27 = vadd.f32 %v5208_v22, %v2121_v16  ;;  %v1624_v16 = vsub.f32 %v600_v9, %v1112_v10  ;;  %v2135_v22 = vmul.f32 %v1623_v11, %v1623_v11 }
 0x3fc   :  { %v5210_v32 = vadd.f32 %v5209_v27, %v2122_v21  ;;  %v1625_v21 = vsub.f32 %v601_v14, %v1113_v15  ;;  %v2136_v27 = vmul.f32 %v1624_v16, %v1624_v16 }
 0x3fe   :  { %v5211_v37 = vadd.f32 %v5210_v32, %v2123_v26  ;;  %v1626_v26 = vsub.f32 %v602_v19, %v1114_v20  ;;  %v2137_v32 = vmul.f32 %v1625_v21, %v1625_v21 }
 0x400   :  { %v5212_v42 = vadd.f32 %v5211_v37, %v2124_v31  ;;  %v1627_v31 = vsub.f32 %v603_v24, %v1115_v25  ;;  %v2138_v37 = vmul.f32 %v1626_v26, %v1626_v26 }
 0x402   :  { %v5213_v47 = vadd.f32 %v5212_v42, %v2125_v36  ;;  %v1628_v36 = vsub.f32 %v604_v29, %v1116_v30  ;;  %v2139_v42 = vmul.f32 %v1627_v31, %v1627_v31 }
 0x404   :  { %v5214_v52 = vadd.f32 %v5213_v47, %v2126_v41  ;;  %v1629_v41 = vsub.f32 %v605_v34, %v1117_v35  ;;  %v2140_v47 = vmul.f32 %v1628_v36, %v1628_v36 }
 0x406   :  { %v5215_v57 = vadd.f32 %v5214_v52, %v2127_v46  ;;  %v1630_v46 = vsub.f32 %v606_v39, %v1118_v40  ;;  %v2141_v52 = vmul.f32 %v1629_v41, %v1629_v41 }
 0x408   :  { %v5216_v62 = vadd.f32 %v5215_v57, %v2128_v51  ;;  %v1631_v51 = vsub.f32 %v607_v44, %v1119_v45  ;;  %v2142_v55 = vmul.f32 %v1630_v46, %v1630_v46 }
 0x40a   :  { %v5217_v3 = vadd.f32 %v5216_v62, %v2129_v56  ;;  %v2143_v57 = vmul.f32 %v1631_v51, %v1631_v51 }
 0x40c   :  { %v5218_v8 = vadd.f32 %v5217_v3, %v2130_v61 }
 0x40e   :  { %v5219_v13 = vadd.f32 %v5218_v8, %v2131_v2 }
 0x410   :  { %v5220_v18 = vadd.f32 %v5219_v13, %v2132_v7 }
 0x412   :  { %v5221_v23 = vadd.f32 %v5220_v18, %v2133_v12 }
 0x414   :  { %v5222_v28 = vadd.f32 %v5221_v23, %v2134_v17 }
 0x416   :  { %v5223_v33 = vadd.f32 %v5222_v28, %v2135_v22 }
 0x418   :  { %v5224_v38 = vadd.f32 %v5223_v33, %v2136_v27 }
 0x41a   :  { %v5225_v43 = vadd.f32 %v5224_v38, %v2137_v32 }
 0x41c   :  { %v5226_v48 = vadd.f32 %v5225_v43, %v2138_v37 }
 0x41e   :  { %v5227_v53 = vadd.f32 %v5226_v48, %v2139_v42 }
 0x420   :  { %v5228_v56 = vadd.f32 %v5227_v53, %v2140_v47 }
 0x422   :  { %v5229_v58 = vadd.f32 %v5228_v56, %v2141_v52 }
 0x424   :  { %v5230_v60 = vadd.f32 %v5229_v58, %v2142_v55 }
 0x426   :  { %v5231_v61 = vadd.f32 %v5230_v60, %v2143_v57 }
 0x428   :  { %v5232_v62 = vadd.f32 %v5231_v61, %v2144_v59 }
 0x42a   :  { %5234 = vst [vmem:[#allocation7] sm:$0xff] %v5232_v62 }
 0x42b   :  { %5316 = shalt.err (!%p5313_p6)
}
 0x42c   :  { %s5317_s10 = scalar_lea.hbm %s5391_s2, 128 }
 0x42d   :  { %p5318_p7 = scmp.ne.s32.totalorder %s5391_s2, %s5317_s10  ;;  %p5321_p8 = scmp.lt.u32.totalorder %s5317_s10, %s5391_s2 }
 0x42f   :  { %p5323_p9 = pnand %p5321_p8, %p5318_p7 }
 0x431   :  { %5326 = shalt.err (!%p5323_p9)
}
 0x432   :  { %5244 = dma.vmem_to_hbm [thread:$0]  %s5242_s6, 128, %s5391_s2, [#allocation4]  }
 0x433   :  { %5331 = dma.done.wait [#allocation4], 128  }
 0x434   :  { %5332 = vsyncadd [#allocation4], 4294967168 }
 0x435   :  { %5248 = vsyncpa [#allocation3], 1 }
 0x436   :  { %5249 = vsyncpa [#allocation6], 1 }
 0x437   :  { %5250 = vsyncpa [#allocation4], 1 }

</bundles_post_ra>
